<compile_context>
chip_gen: v6e
topology: v6e:2x2x1
jax: 0.10.0
libtpu: 0.0.40
codegen_flags: <defaults>
</compile_context>

<pallas_src>
import functools
import math

import jax
import jax.numpy as jnp
import numpy as np
from jax.experimental import pallas as pl
from jax.experimental.pallas import tpu as pltpu

# ----- hyperparameters (the PyTorch module reads these as module globals) -----
SX_ONE_HOT = False
ATTR_ONE_HOT = False
DEC_ADD_POS = True
ENC_ADD_POS = True
DEC_EMB_DIM = 32          # == ENC_EMB_DIM (shared embeddings)
DEC_NUM_HEADS = 4
ENC_NUM_HEADS = 4
DEC_DIM_FEEDFORWARD = 64
DEC_NUM_LAYERS = 2
ENC_NUM_LAYERS = 2        # NB: original code also uses this as the encoder FFN width
POS_MAX_LEN = 64
NUM_SXS = 40
NUM_ATTRS = 8
NUM_DIS = 10
PAD_IDX = 0
LN_EPS = 1e-5
LEAKY_SLOPE = 0.01
NEG_INF = -1e9            # stand-in for float('-inf') key-padding bias

# canonical ordering of the per-stack stacked weights passed to the kernel
STACK_KEYS = ("wqkv", "bqkv", "wo", "bo", "w1", "b1", "w2", "b2",
              "g1", "be1", "g2", "be2")


# ----------------------------- in-kernel helpers ------------------------------

def _mm(a, b):
    """a @ b on the MXU with f32 accumulation."""
    return jax.lax.dot_general(a, b, (((1,), (0,)), ((), ())),
                               preferred_element_type=jnp.float32)


def _mm_tb(a, b):
    """a @ b.T on the MXU (transposed contraction, no explicit XLU transpose)."""
    return jax.lax.dot_general(a, b, (((1,), (1,)), ((), ())),
                               preferred_element_type=jnp.float32)


# ============================ fused Pallas kernel =============================

def _agent_fused_kernel(*refs, num_dec_heads, num_enc_heads,
                        num_dec_layers, num_enc_layers):
    """Single-program kernel: decoder stack + sx_fc, encoder stack + pool + dis_fc.

    refs layout (all full-array VMEM blocks):
      [0:5)    xd (BS,E), xe (BS,E), attn bias (BS,BS), sel (B,BS), poolw (B,BS)
      [5:17)   decoder stacked weights, STACK_KEYS order (leading dim = layer)
      [17:29)  encoder stacked weights, STACK_KEYS order
      [29:33)  sx_fc_w, sx_fc_b, dis_fc_w, dis_fc_b
      [33:36)  outputs: dec_out (BS,E), dec_feat (B,num_sxs), dis_feat (B,num_dis)
    """
    xd_ref, xe_ref, bias_ref, sel_ref, pool_ref = refs[0:5]
    dec_w = refs[5:17]
    enc_w = refs[17:29]
    sxw_ref, sxb_ref, disw_ref, disb_ref = refs[29:33]
    dec_out_ref, dec_feat_ref, dis_feat_ref = refs[33:36]

    bias = bias_ref[...]          # (BS, BS) block-diagonal + key-padding bias

    def layer_norm(x, g, b):
        mu = jnp.mean(x, axis=-1, keepdims=True)
        var = jnp.mean((x - mu) ** 2, axis=-1, keepdims=True)
        return (x - mu) * jax.lax.rsqrt(var + LN_EPS) * g + b

    def xfmr_layer(x, num_heads, wqkv, bqkv, wo, bo, w1, b1, w2, b2,
                   g1, be1, g2, be2):
        M, E = x.shape
        D = E // num_heads
        scale = 1.0 / math.sqrt(D)

        # fused Q/K/V projection: one (M,E)x(E,3E) MXU op
        qkv = _mm(x, wqkv) + bqkv

        # per-head attention (static, unrolled); head outputs are folded into
        # the output projection (attn += o_h @ Wo[hD:(h+1)D, :]) so no lane
        # concatenate is needed.
        attn = jnp.zeros((M, E), jnp.float32)
        for h in range(num_heads):
            qh = qkv[:, h * D:(h + 1) * D]
            kh = qkv[:, E + h * D:E + (h + 1) * D]
            vh = qkv[:, 2 * E + h * D:2 * E + (h + 1) * D]
            s = _mm_tb(qh, kh) * scale + bias
            m = jnp.max(s, axis=-1, keepdims=True)
            p = jnp.exp(s - m)
            p = p * pl.reciprocal(jnp.sum(p, axis=-1, keepdims=True), approx=True)
            oh = _mm(p, vh)
            attn = attn + _mm(oh, wo[h * D:(h + 1) * D, :])

        # residual + LayerNorm1  (post-norm, PyTorch default norm_first=False)
        x = layer_norm(x + attn + bo, g1, be1)

        # FFN with leaky_relu
        h1 = _mm(x, w1) + b1
        h1 = jnp.where(h1 >= 0, h1, LEAKY_SLOPE * h1)
        ff = _mm(h1, w2) + b2

        # residual + LayerNorm2
        return layer_norm(x + ff, g2, be2)

    def run_stack(x, n_layers, num_heads, w):
        (wqkv, bqkv, wo, bo, w1, b1, w2, b2, g1, be1, g2, be2) = w
        for l in range(n_layers):                    # static unrolled layer loop
            x = xfmr_layer(x, num_heads,
                           wqkv[l], bqkv[l], wo[l], bo[l], w1[l], b1[l],
                           w2[l], b2[l], g1[l], be1[l], g2[l], be2[l])
        return x

    # ---- SymptomDecoderXFMR: transformer stack + sx_fc(outputs[-1]) ----
    xd = run_stack(xd_ref[...].astype(jnp.float32), num_dec_layers,
                   num_dec_heads, dec_w)
    dec_out_ref[...] = xd.astype(dec_out_ref.dtype)
    last = _mm(sel_ref[...], xd)                                   # (B, E)
    dec_feat_ref[...] = _mm(last, sxw_ref[...]) + sxb_ref[...]

    # ---- SymptomEncoderXFMR: transformer stack + masked mean pool + dis_fc ----
    xe = run_stack(xe_ref[...].astype(jnp.float32), num_enc_layers,
                   num_enc_heads, enc_w)
    avg = _mm(pool_ref[...], xe)                                   # (B, E)
    dis_feat_ref[...] = _mm(avg, disw_ref[...]) + disb_ref[...]


def agent_fused_pallas(xd0, xe0, bias, sel, poolw, dec_stack, enc_stack,
                       sx_w, sx_b, dis_w, dis_b):
    BS, E = xd0.shape
    B = sel.shape[0]
    kernel = functools.partial(
        _agent_fused_kernel,
        num_dec_heads=DEC_NUM_HEADS, num_enc_heads=ENC_NUM_HEADS,
        num_dec_layers=dec_stack["wqkv"].shape[0],
        num_enc_layers=enc_stack["wqkv"].shape[0])
    out_shape = (
        jax.ShapeDtypeStruct((BS, E), jnp.float32),                # decoder outputs
        jax.ShapeDtypeStruct((B, sx_w.shape[1]), jnp.float32),     # sx features
        jax.ShapeDtypeStruct((B, dis_w.shape[1]), jnp.float32),    # dis features
    )
    args = [xd0, xe0, bias, sel, poolw]
    args += [dec_stack[k] for k in STACK_KEYS]
    args += [enc_stack[k] for k in STACK_KEYS]
    args += [sx_w, sx_b, dis_w, dis_b]
    return pl.pallas_call(
        kernel,
        out_shape=out_shape,
        compiler_params=pltpu.CompilerParams(vmem_limit_bytes=32 * 1024 * 1024),
    )(*args)


# ============================ parameter setup =================================

def _make_pe(max_len, emb):
    pos = jnp.arange(max_len, dtype=jnp.float32)[:, None]
    div = jnp.exp(jnp.arange(0, emb, 2, dtype=jnp.float32) * (-math.log(10000.0) / emb))
    pe = jnp.zeros((max_len, emb), jnp.float32)
    pe = pe.at[:, 0::2].set(jnp.sin(pos * div))
    pe = pe.at[:, 1::2].set(jnp.cos(pos * div))
    return pe


def _init_layer(key, emb, ff):
    ks = jax.random.split(key, 12)
    n = lambda k, s, scale=0.1: (scale * jax.random.normal(k, s)).astype(jnp.float32)
    return dict(
        wq=n(ks[0], (emb, emb)), wk=n(ks[1], (emb, emb)), wv=n(ks[2], (emb, emb)),
        bq=n(ks[3], (1, emb), 0.01), bk=n(ks[4], (1, emb), 0.01), bv=n(ks[5], (1, emb), 0.01),
        wo=n(ks[6], (emb, emb)), bo=n(ks[7], (1, emb), 0.01),
        w1=n(ks[8], (emb, ff)), b1=n(ks[9], (1, ff), 0.01),
        w2=n(ks[10], (ff, emb)), b2=n(ks[11], (1, emb), 0.01),
        g1=jnp.ones((1, emb), jnp.float32), be1=jnp.zeros((1, emb), jnp.float32),
        g2=jnp.ones((1, emb), jnp.float32), be2=jnp.zeros((1, emb), jnp.float32),
    )


def _stack_layers(layers):
    """Stack per-layer weights along a leading layer axis; fuse Q/K/V."""
    stack = {k: jnp.stack([lp[k] for lp in layers])
             for k in ("wo", "bo", "w1", "b1", "w2", "b2", "g1", "be1", "g2", "be2")}
    stack["wqkv"] = jnp.stack(
        [jnp.concatenate([lp["wq"], lp["wk"], lp["wv"]], axis=1) for lp in layers])
    stack["bqkv"] = jnp.stack(
        [jnp.concatenate([lp["bq"], lp["bk"], lp["bv"]], axis=1) for lp in layers])
    return stack


def init_params(key):
    keys = jax.random.split(key, 10)
    n = lambda k, s, scale=0.1: (scale * jax.random.normal(k, s)).astype(jnp.float32)
    emb = DEC_EMB_DIM
    sx_emb = n(keys[0], (NUM_SXS, emb)).at[PAD_IDX].set(0.0)      # padding_idx=0
    attr_emb = n(keys[1], (NUM_ATTRS, emb)).at[PAD_IDX].set(0.0)  # padding_idx=0
    dec_layers = [_init_layer(keys[2 + i], emb, DEC_DIM_FEEDFORWARD)
                  for i in range(DEC_NUM_LAYERS)]
    enc_layers = [_init_layer(keys[2 + DEC_NUM_LAYERS + i], emb, ENC_NUM_LAYERS)
                  for i in range(ENC_NUM_LAYERS)]
    return dict(
        sx_emb=sx_emb, attr_emb=attr_emb, pe=_make_pe(POS_MAX_LEN, emb),
        dec_layers=dec_layers, enc_layers=enc_layers,
        dec_stack=_stack_layers(dec_layers), enc_stack=_stack_layers(enc_layers),
        sx_fc_w=n(keys[6], (emb, NUM_SXS)), sx_fc_b=n(keys[7], (1, NUM_SXS), 0.01),
        dis_fc_w=n(keys[8], (emb, NUM_DIS)), dis_fc_b=n(keys[9], (1, NUM_DIS), 0.01),
    )


# ====================== model forward (host-side glue) ========================

def _embed(params, sx_ids, attr_ids, add_pos):
    # ids: (S, B) int32 -> (B, S, E) f32 ; plain JAX (XLA fuses gathers + adds)
    S, _ = sx_ids.shape
    sx_e = jnp.take(params["sx_emb"], sx_ids, axis=0)      # (S, B, E)
    at_e = jnp.take(params["attr_emb"], attr_ids, axis=0)  # (S, B, E)
    x = jnp.transpose(sx_e + at_e, (1, 0, 2))              # (B, S, E)
    if add_pos:
        x = x + params["pe"][:S][None]
    return x


def _layer_norm_ref(x, g, b):
    mu = jnp.mean(x, axis=-1, keepdims=True)
    var = jnp.mean((x - mu) ** 2, axis=-1, keepdims=True)
    return (x - mu) * jax.lax.rsqrt(var + LN_EPS) * g + b


def _transformer_layer_ref(x, key_bias, lp, num_heads):
    B, S, E = x.shape
    D = E // num_heads
    q = x @ lp["wq"] + lp["bq"]
    k = x @ lp["wk"] + lp["bk"]
    v = x @ lp["wv"] + lp["bv"]
    qh = q.reshape(B, S, num_heads, D).transpose(0, 2, 1, 3)
    kh = k.reshape(B, S, num_heads, D).transpose(0, 2, 1, 3)
    vh = v.reshape(B, S, num_heads, D).transpose(0, 2, 1, 3)
    s = jnp.einsum("bhqd,bhkd->bhqk", qh, kh) / math.sqrt(D) + key_bias[:, None, None, :]
    p = jax.nn.softmax(s, axis=-1)
    o = jnp.einsum("bhqk,bhkd->bhqd", p, vh).transpose(0, 2, 1, 3).reshape(B, S, E)
    o = o @ lp["wo"] + lp["bo"]
    x = _layer_norm_ref(x + o, lp["g1"], lp["be1"])
    h = x @ lp["w1"] + lp["b1"]
    h = jnp.where(h >= 0, h, LEAKY_SLOPE * h)
    x = _layer_norm_ref(x + h @ lp["w2"] + lp["b2"], lp["g2"], lp["be2"])
    return x


@functools.partial(jax.jit, static_argnames=("use_pallas",))
def agent_forward(params, sx_ids, attr_ids, use_pallas=True):
    """Returns (decoder outputs (S,B,E), decoder features (B,num_sxs),
                disease features (B,num_dis))."""
    S, B = sx_ids.shape
    E = params["sx_emb"].shape[1]
    kpm = jnp.transpose(sx_ids == PAD_IDX, (1, 0))           # (B, S) bool

    xd = _embed(params, sx_ids, attr_ids, DEC_ADD_POS)       # (B, S, E)
    xe = _embed(params, sx_ids, attr_ids, ENC_ADD_POS)       # (B, S, E)

    if use_pallas:
        # block-diagonal additive attention bias over the flattened (B*S) tokens:
        # 0 where query/key share a batch element and the key is not padded.
        pad_flat = kpm.reshape(B * S)
        same = jnp.kron(jnp.eye(B, dtype=jnp.float32), jnp.ones((S, S), jnp.float32))
        bias = jnp.where((same > 0.5) & (~pad_flat)[None, :], 0.0, NEG_INF)
        bias = bias.astype(jnp.float32)

        # selector for outputs[-1] per batch element (row b*S + S-1)
        cols = jnp.arange(B * S)
        sel = (cols[None, :] == (jnp.arange(B) * S + (S - 1))[:, None]).astype(jnp.float32)

        # masked-mean pooling weights, laid out over the flattened token axis
        mp = 1.0 - kpm.astype(jnp.float32)                   # (B, S)
        cnt = jnp.maximum(jnp.sum(mp, axis=1, keepdims=True), 1.0)   # guard 0/0
        poolw = (jnp.eye(B, dtype=jnp.float32)[:, :, None]
                 * (mp / cnt)[:, None, :]).reshape(B, B * S)

        dec_out_flat, dec_features, dis_features = agent_fused_pallas(
            xd.reshape(B * S, E), xe.reshape(B * S, E), bias, sel, poolw,
            params["dec_stack"], params["enc_stack"],
            params["sx_fc_w"], params["sx_fc_b"],
            params["dis_fc_w"], params["dis_fc_b"])
        dec_outputs = jnp.transpose(dec_out_flat.reshape(B, S, E), (1, 0, 2))
        return dec_outputs, dec_features, dis_features

    # ------------------ pure-JAX reference path ------------------
    with jax.default_matmul_precision("highest"):
        key_bias = jnp.where(kpm, NEG_INF, 0.0).astype(jnp.float32)
        for lp in params["dec_layers"]:
            xd = _transformer_layer_ref(xd, key_bias, lp, DEC_NUM_HEADS)
        dec_outputs = jnp.transpose(xd, (1, 0, 2))            # (S, B, E)
        dec_features = xd[:, -1, :] @ params["sx_fc_w"] + params["sx_fc_b"]

        for lp in params["enc_layers"]:
            xe = _transformer_layer_ref(xe, key_bias, lp, ENC_NUM_HEADS)
        mp = 1.0 - kpm.astype(jnp.float32)
        avg = jnp.sum(xe * mp[:, :, None], axis=1) / jnp.maximum(
            jnp.sum(mp, axis=1, keepdims=True), 1.0)
        dis_features = avg @ params["dis_fc_w"] + params["dis_fc_b"]
        return dec_outputs, dec_features, dis_features


# =================================== main =====================================

if __name__ == "__main__":
    key = jax.random.PRNGKey(0)
    pkey, k1, k2 = jax.random.split(key, 3)
    params = init_params(pkey)

    S, B = 8, 2                                   # seq=8, batch=2
    sx_ids = jax.random.randint(k1, (S, B), 1, NUM_SXS).astype(jnp.int32)
    attr_ids = jax.random.randint(k2, (S, B), 1, NUM_ATTRS).astype(jnp.int32)
    # pad the tail of batch element 0 to exercise the key-padding / pooling masks
    sx_ids = sx_ids.at[S - 2:, 0].set(PAD_IDX)
    attr_ids = attr_ids.at[S - 2:, 0].set(PAD_IDX)

    dec_out, dec_feat, dis_feat = agent_forward(params, sx_ids, attr_ids, use_pallas=True)
    jax.block_until_ready((dec_out, dec_feat, dis_feat))

    # pure-JAX reference check
    r_dec_out, r_dec_feat, r_dis_feat = agent_forward(params, sx_ids, attr_ids,
                                                      use_pallas=False)
    assert dec_out.shape == (S, B, DEC_EMB_DIM)
    assert dec_feat.shape == (B, NUM_SXS)
    assert dis_feat.shape == (B, NUM_DIS)
    assert np.all(np.isfinite(np.asarray(dec_out)))
    assert np.allclose(np.asarray(dec_out), np.asarray(r_dec_out), atol=3e-2, rtol=3e-2)
    assert np.allclose(np.asarray(dec_feat), np.asarray(r_dec_feat), atol=3e-2, rtol=3e-2)
    assert np.allclose(np.asarray(dis_feat), np.asarray(r_dis_feat), atol=3e-2, rtol=3e-2)

    print("KERNEL_OK")
</pallas_src>

<mosaic_0001>
module attributes {stable_mosaic.version = 11 : i64} {
  func.func @_agent_fused_kernel(%arg0: memref<16x32xf32, #tpu.memory_space<vmem>>, %arg1: memref<16x32xf32, #tpu.memory_space<vmem>>, %arg2: memref<16x16xf32, #tpu.memory_space<vmem>>, %arg3: memref<2x16xf32, #tpu.memory_space<vmem>>, %arg4: memref<2x16xf32, #tpu.memory_space<vmem>>, %arg5: memref<2x32x96xf32, #tpu.memory_space<vmem>>, %arg6: memref<2x1x96xf32, #tpu.memory_space<vmem>>, %arg7: memref<2x32x32xf32, #tpu.memory_space<vmem>>, %arg8: memref<2x1x32xf32, #tpu.memory_space<vmem>>, %arg9: memref<2x32x64xf32, #tpu.memory_space<vmem>>, %arg10: memref<2x1x64xf32, #tpu.memory_space<vmem>>, %arg11: memref<2x64x32xf32, #tpu.memory_space<vmem>>, %arg12: memref<2x1x32xf32, #tpu.memory_space<vmem>>, %arg13: memref<2x1x32xf32, #tpu.memory_space<vmem>>, %arg14: memref<2x1x32xf32, #tpu.memory_space<vmem>>, %arg15: memref<2x1x32xf32, #tpu.memory_space<vmem>>, %arg16: memref<2x1x32xf32, #tpu.memory_space<vmem>>, %arg17: memref<2x32x96xf32, #tpu.memory_space<vmem>>, %arg18: memref<2x1x96xf32, #tpu.memory_space<vmem>>, %arg19: memref<2x32x32xf32, #tpu.memory_space<vmem>>, %arg20: memref<2x1x32xf32, #tpu.memory_space<vmem>>, %arg21: memref<2x32x2xf32, #tpu.memory_space<vmem>>, %arg22: memref<2x1x2xf32, #tpu.memory_space<vmem>>, %arg23: memref<2x2x32xf32, #tpu.memory_space<vmem>>, %arg24: memref<2x1x32xf32, #tpu.memory_space<vmem>>, %arg25: memref<2x1x32xf32, #tpu.memory_space<vmem>>, %arg26: memref<2x1x32xf32, #tpu.memory_space<vmem>>, %arg27: memref<2x1x32xf32, #tpu.memory_space<vmem>>, %arg28: memref<2x1x32xf32, #tpu.memory_space<vmem>>, %arg29: memref<32x40xf32, #tpu.memory_space<vmem>>, %arg30: memref<1x40xf32, #tpu.memory_space<vmem>>, %arg31: memref<32x10xf32, #tpu.memory_space<vmem>>, %arg32: memref<1x10xf32, #tpu.memory_space<vmem>>, %arg33: memref<16x32xf32, #tpu.memory_space<vmem>>, %arg34: memref<2x40xf32, #tpu.memory_space<vmem>>, %arg35: memref<2x10xf32, #tpu.memory_space<vmem>>) attributes {dimension_semantics = [], scalar_prefetch = 0 : i64, scratch_operands = 0 : i64, tpu.core_type = #tpu.core_type<tc>} {
    %c0 = arith.constant 0 : index
    %c0_0 = arith.constant 0 : index
    %0 = vector.load %arg2[%c0, %c0_0] : memref<16x16xf32, #tpu.memory_space<vmem>>, vector<16x16xf32>
    %c0_1 = arith.constant 0 : index
    %c0_2 = arith.constant 0 : index
    %1 = vector.load %arg0[%c0_1, %c0_2] : memref<16x32xf32, #tpu.memory_space<vmem>>, vector<16x32xf32>
    %c0_3 = arith.constant 0 : index
    %c0_4 = arith.constant 0 : index
    %c0_5 = arith.constant 0 : index
    %2 = vector.load %arg5[%c0_3, %c0_4, %c0_5] : memref<2x32x96xf32, #tpu.memory_space<vmem>>, vector<1x32x96xf32>
    %3 = vector.shape_cast %2 : vector<1x32x96xf32> to vector<32x96xf32>
    %c0_6 = arith.constant 0 : index
    %c0_7 = arith.constant 0 : index
    %c0_8 = arith.constant 0 : index
    %4 = vector.load %arg6[%c0_6, %c0_7, %c0_8] : memref<2x1x96xf32, #tpu.memory_space<vmem>>, vector<1x1x96xf32>
    %5 = vector.shape_cast %4 : vector<1x1x96xf32> to vector<1x96xf32>
    %c0_9 = arith.constant 0 : index
    %c0_10 = arith.constant 0 : index
    %c0_11 = arith.constant 0 : index
    %6 = vector.load %arg7[%c0_9, %c0_10, %c0_11] : memref<2x32x32xf32, #tpu.memory_space<vmem>>, vector<1x32x32xf32>
    %7 = vector.shape_cast %6 : vector<1x32x32xf32> to vector<32x32xf32>
    %c0_12 = arith.constant 0 : index
    %c0_13 = arith.constant 0 : index
    %c0_14 = arith.constant 0 : index
    %8 = vector.load %arg8[%c0_12, %c0_13, %c0_14] : memref<2x1x32xf32, #tpu.memory_space<vmem>>, vector<1x1x32xf32>
    %9 = vector.shape_cast %8 : vector<1x1x32xf32> to vector<1x32xf32>
    %c0_15 = arith.constant 0 : index
    %c0_16 = arith.constant 0 : index
    %c0_17 = arith.constant 0 : index
    %10 = vector.load %arg9[%c0_15, %c0_16, %c0_17] : memref<2x32x64xf32, #tpu.memory_space<vmem>>, vector<1x32x64xf32>
    %11 = vector.shape_cast %10 : vector<1x32x64xf32> to vector<32x64xf32>
    %c0_18 = arith.constant 0 : index
    %c0_19 = arith.constant 0 : index
    %c0_20 = arith.constant 0 : index
    %12 = vector.load %arg10[%c0_18, %c0_19, %c0_20] : memref<2x1x64xf32, #tpu.memory_space<vmem>>, vector<1x1x64xf32>
    %13 = vector.shape_cast %12 : vector<1x1x64xf32> to vector<1x64xf32>
    %c0_21 = arith.constant 0 : index
    %c0_22 = arith.constant 0 : index
    %c0_23 = arith.constant 0 : index
    %14 = vector.load %arg11[%c0_21, %c0_22, %c0_23] : memref<2x64x32xf32, #tpu.memory_space<vmem>>, vector<1x64x32xf32>
    %15 = vector.shape_cast %14 : vector<1x64x32xf32> to vector<64x32xf32>
    %c0_24 = arith.constant 0 : index
    %c0_25 = arith.constant 0 : index
    %c0_26 = arith.constant 0 : index
    %16 = vector.load %arg12[%c0_24, %c0_25, %c0_26] : memref<2x1x32xf32, #tpu.memory_space<vmem>>, vector<1x1x32xf32>
    %17 = vector.shape_cast %16 : vector<1x1x32xf32> to vector<1x32xf32>
    %c0_27 = arith.constant 0 : index
    %c0_28 = arith.constant 0 : index
    %c0_29 = arith.constant 0 : index
    %18 = vector.load %arg13[%c0_27, %c0_28, %c0_29] : memref<2x1x32xf32, #tpu.memory_space<vmem>>, vector<1x1x32xf32>
    %19 = vector.shape_cast %18 : vector<1x1x32xf32> to vector<1x32xf32>
    %c0_30 = arith.constant 0 : index
    %c0_31 = arith.constant 0 : index
    %c0_32 = arith.constant 0 : index
    %20 = vector.load %arg14[%c0_30, %c0_31, %c0_32] : memref<2x1x32xf32, #tpu.memory_space<vmem>>, vector<1x1x32xf32>
    %21 = vector.shape_cast %20 : vector<1x1x32xf32> to vector<1x32xf32>
    %c0_33 = arith.constant 0 : index
    %c0_34 = arith.constant 0 : index
    %c0_35 = arith.constant 0 : index
    %22 = vector.load %arg15[%c0_33, %c0_34, %c0_35] : memref<2x1x32xf32, #tpu.memory_space<vmem>>, vector<1x1x32xf32>
    %23 = vector.shape_cast %22 : vector<1x1x32xf32> to vector<1x32xf32>
    %c0_36 = arith.constant 0 : index
    %c0_37 = arith.constant 0 : index
    %c0_38 = arith.constant 0 : index
    %24 = vector.load %arg16[%c0_36, %c0_37, %c0_38] : memref<2x1x32xf32, #tpu.memory_space<vmem>>, vector<1x1x32xf32>
    %25 = vector.shape_cast %24 : vector<1x1x32xf32> to vector<1x32xf32>
    %cst = arith.constant dense<0.000000e+00> : vector<16x96xf32>
    %26 = tpu.matmul %1, %3, %cst {dimension_numbers = #tpu.dot_dimension_numbers<[1], [0], [0], [1], [0, 0, 1, 1], [], []>} : vector<16x32xf32>, vector<32x96xf32>, vector<16x96xf32> -> vector<16x96xf32>
    %27 = vector.broadcast %5 : vector<1x96xf32> to vector<16x96xf32>
    %28 = arith.addf %26, %27 : vector<16x96xf32>
    %cst_39 = arith.constant 0.000000e+00 : f32
    %29 = vector.broadcast %cst_39 : f32 to vector<16x32xf32>
    %30 = vector.extract_strided_slice %28 {offsets = [0, 0], sizes = [16, 8], strides = [1, 1]} : vector<16x96xf32> to vector<16x8xf32>
    %31 = vector.extract_strided_slice %28 {offsets = [0, 32], sizes = [16, 8], strides = [1, 1]} : vector<16x96xf32> to vector<16x8xf32>
    %32 = vector.extract_strided_slice %28 {offsets = [0, 64], sizes = [16, 8], strides = [1, 1]} : vector<16x96xf32> to vector<16x8xf32>
    %cst_40 = arith.constant dense<0.000000e+00> : vector<16x16xf32>
    %33 = tpu.matmul %30, %31, %cst_40 {dimension_numbers = #tpu.dot_dimension_numbers<[1], [1], [0], [0], [0, 0, 1, 0], [], []>} : vector<16x8xf32>, vector<16x8xf32>, vector<16x16xf32> -> vector<16x16xf32>
    %cst_41 = arith.constant 0.353553385 : f32
    %34 = vector.broadcast %cst_41 : f32 to vector<16x16xf32>
    %35 = arith.mulf %33, %34 : vector<16x16xf32>
    %36 = arith.addf %35, %0 : vector<16x16xf32>
    %cst_42 = arith.constant dense<0xFF800000> : vector<16xf32>
    %37 = vector.multi_reduction <maximumf>, %36, %cst_42 [1] : vector<16x16xf32> to vector<16xf32>
    %38 = vector.shape_cast %37 : vector<16xf32> to vector<16x1xf32>
    %39 = vector.broadcast %38 : vector<16x1xf32> to vector<16x16xf32>
    %40 = arith.subf %36, %39 : vector<16x16xf32>
    %41 = math.exp %40 : vector<16x16xf32>
    %cst_43 = arith.constant dense<0.000000e+00> : vector<16xf32>
    %42 = vector.multi_reduction <add>, %41, %cst_43 [1] : vector<16x16xf32> to vector<16xf32>
    %43 = vector.shape_cast %42 : vector<16xf32> to vector<16x1xf32>
    %44 = tpu.reciprocal %43 {approx = true} : vector<16x1xf32> -> vector<16x1xf32>
    %45 = vector.broadcast %44 : vector<16x1xf32> to vector<16x16xf32>
    %46 = arith.mulf %41, %45 : vector<16x16xf32>
    %cst_44 = arith.constant dense<0.000000e+00> : vector<16x8xf32>
    %47 = tpu.matmul %46, %32, %cst_44 {dimension_numbers = #tpu.dot_dimension_numbers<[1], [0], [0], [1], [0, 0, 1, 1], [], []>} : vector<16x16xf32>, vector<16x8xf32>, vector<16x8xf32> -> vector<16x8xf32>
    %48 = vector.extract_strided_slice %7 {offsets = [0, 0], sizes = [8, 32], strides = [1, 1]} : vector<32x32xf32> to vector<8x32xf32>
    %cst_45 = arith.constant dense<0.000000e+00> : vector<16x32xf32>
    %49 = tpu.matmul %47, %48, %cst_45 {dimension_numbers = #tpu.dot_dimension_numbers<[1], [0], [0], [1], [0, 0, 1, 1], [], []>} : vector<16x8xf32>, vector<8x32xf32>, vector<16x32xf32> -> vector<16x32xf32>
    %50 = arith.addf %29, %49 : vector<16x32xf32>
    %51 = vector.extract_strided_slice %28 {offsets = [0, 8], sizes = [16, 8], strides = [1, 1]} : vector<16x96xf32> to vector<16x8xf32>
    %52 = vector.extract_strided_slice %28 {offsets = [0, 40], sizes = [16, 8], strides = [1, 1]} : vector<16x96xf32> to vector<16x8xf32>
    %53 = vector.extract_strided_slice %28 {offsets = [0, 72], sizes = [16, 8], strides = [1, 1]} : vector<16x96xf32> to vector<16x8xf32>
    %cst_46 = arith.constant dense<0.000000e+00> : vector<16x16xf32>
    %54 = tpu.matmul %51, %52, %cst_46 {dimension_numbers = #tpu.dot_dimension_numbers<[1], [1], [0], [0], [0, 0, 1, 0], [], []>} : vector<16x8xf32>, vector<16x8xf32>, vector<16x16xf32> -> vector<16x16xf32>
    %cst_47 = arith.constant 0.353553385 : f32
    %55 = vector.broadcast %cst_47 : f32 to vector<16x16xf32>
    %56 = arith.mulf %54, %55 : vector<16x16xf32>
    %57 = arith.addf %56, %0 : vector<16x16xf32>
    %cst_48 = arith.constant dense<0xFF800000> : vector<16xf32>
    %58 = vector.multi_reduction <maximumf>, %57, %cst_48 [1] : vector<16x16xf32> to vector<16xf32>
    %59 = vector.shape_cast %58 : vector<16xf32> to vector<16x1xf32>
    %60 = vector.broadcast %59 : vector<16x1xf32> to vector<16x16xf32>
    %61 = arith.subf %57, %60 : vector<16x16xf32>
    %62 = math.exp %61 : vector<16x16xf32>
    %cst_49 = arith.constant dense<0.000000e+00> : vector<16xf32>
    %63 = vector.multi_reduction <add>, %62, %cst_49 [1] : vector<16x16xf32> to vector<16xf32>
    %64 = vector.shape_cast %63 : vector<16xf32> to vector<16x1xf32>
    %65 = tpu.reciprocal %64 {approx = true} : vector<16x1xf32> -> vector<16x1xf32>
    %66 = vector.broadcast %65 : vector<16x1xf32> to vector<16x16xf32>
    %67 = arith.mulf %62, %66 : vector<16x16xf32>
    %cst_50 = arith.constant dense<0.000000e+00> : vector<16x8xf32>
    %68 = tpu.matmul %67, %53, %cst_50 {dimension_numbers = #tpu.dot_dimension_numbers<[1], [0], [0], [1], [0, 0, 1, 1], [], []>} : vector<16x16xf32>, vector<16x8xf32>, vector<16x8xf32> -> vector<16x8xf32>
    %69 = vector.extract_strided_slice %7 {offsets = [8, 0], sizes = [8, 32], strides = [1, 1]} : vector<32x32xf32> to vector<8x32xf32>
    %cst_51 = arith.constant dense<0.000000e+00> : vector<16x32xf32>
    %70 = tpu.matmul %68, %69, %cst_51 {dimension_numbers = #tpu.dot_dimension_numbers<[1], [0], [0], [1], [0, 0, 1, 1], [], []>} : vector<16x8xf32>, vector<8x32xf32>, vector<16x32xf32> -> vector<16x32xf32>
    %71 = arith.addf %50, %70 : vector<16x32xf32>
    %72 = vector.extract_strided_slice %28 {offsets = [0, 16], sizes = [16, 8], strides = [1, 1]} : vector<16x96xf32> to vector<16x8xf32>
    %73 = vector.extract_strided_slice %28 {offsets = [0, 48], sizes = [16, 8], strides = [1, 1]} : vector<16x96xf32> to vector<16x8xf32>
    %74 = vector.extract_strided_slice %28 {offsets = [0, 80], sizes = [16, 8], strides = [1, 1]} : vector<16x96xf32> to vector<16x8xf32>
    %cst_52 = arith.constant dense<0.000000e+00> : vector<16x16xf32>
    %75 = tpu.matmul %72, %73, %cst_52 {dimension_numbers = #tpu.dot_dimension_numbers<[1], [1], [0], [0], [0, 0, 1, 0], [], []>} : vector<16x8xf32>, vector<16x8xf32>, vector<16x16xf32> -> vector<16x16xf32>
    %cst_53 = arith.constant 0.353553385 : f32
    %76 = vector.broadcast %cst_53 : f32 to vector<16x16xf32>
    %77 = arith.mulf %75, %76 : vector<16x16xf32>
    %78 = arith.addf %77, %0 : vector<16x16xf32>
    %cst_54 = arith.constant dense<0xFF800000> : vector<16xf32>
    %79 = vector.multi_reduction <maximumf>, %78, %cst_54 [1] : vector<16x16xf32> to vector<16xf32>
    %80 = vector.shape_cast %79 : vector<16xf32> to vector<16x1xf32>
    %81 = vector.broadcast %80 : vector<16x1xf32> to vector<16x16xf32>
    %82 = arith.subf %78, %81 : vector<16x16xf32>
    %83 = math.exp %82 : vector<16x16xf32>
    %cst_55 = arith.constant dense<0.000000e+00> : vector<16xf32>
    %84 = vector.multi_reduction <add>, %83, %cst_55 [1] : vector<16x16xf32> to vector<16xf32>
    %85 = vector.shape_cast %84 : vector<16xf32> to vector<16x1xf32>
    %86 = tpu.reciprocal %85 {approx = true} : vector<16x1xf32> -> vector<16x1xf32>
    %87 = vector.broadcast %86 : vector<16x1xf32> to vector<16x16xf32>
    %88 = arith.mulf %83, %87 : vector<16x16xf32>
    %cst_56 = arith.constant dense<0.000000e+00> : vector<16x8xf32>
    %89 = tpu.matmul %88, %74, %cst_56 {dimension_numbers = #tpu.dot_dimension_numbers<[1], [0], [0], [1], [0, 0, 1, 1], [], []>} : vector<16x16xf32>, vector<16x8xf32>, vector<16x8xf32> -> vector<16x8xf32>
    %90 = vector.extract_strided_slice %7 {offsets = [16, 0], sizes = [8, 32], strides = [1, 1]} : vector<32x32xf32> to vector<8x32xf32>
    %cst_57 = arith.constant dense<0.000000e+00> : vector<16x32xf32>
    %91 = tpu.matmul %89, %90, %cst_57 {dimension_numbers = #tpu.dot_dimension_numbers<[1], [0], [0], [1], [0, 0, 1, 1], [], []>} : vector<16x8xf32>, vector<8x32xf32>, vector<16x32xf32> -> vector<16x32xf32>
    %92 = arith.addf %71, %91 : vector<16x32xf32>
    %93 = vector.extract_strided_slice %28 {offsets = [0, 24], sizes = [16, 8], strides = [1, 1]} : vector<16x96xf32> to vector<16x8xf32>
    %94 = vector.extract_strided_slice %28 {offsets = [0, 56], sizes = [16, 8], strides = [1, 1]} : vector<16x96xf32> to vector<16x8xf32>
    %95 = vector.extract_strided_slice %28 {offsets = [0, 88], sizes = [16, 8], strides = [1, 1]} : vector<16x96xf32> to vector<16x8xf32>
    %cst_58 = arith.constant dense<0.000000e+00> : vector<16x16xf32>
    %96 = tpu.matmul %93, %94, %cst_58 {dimension_numbers = #tpu.dot_dimension_numbers<[1], [1], [0], [0], [0, 0, 1, 0], [], []>} : vector<16x8xf32>, vector<16x8xf32>, vector<16x16xf32> -> vector<16x16xf32>
    %cst_59 = arith.constant 0.353553385 : f32
    %97 = vector.broadcast %cst_59 : f32 to vector<16x16xf32>
    %98 = arith.mulf %96, %97 : vector<16x16xf32>
    %99 = arith.addf %98, %0 : vector<16x16xf32>
    %cst_60 = arith.constant dense<0xFF800000> : vector<16xf32>
    %100 = vector.multi_reduction <maximumf>, %99, %cst_60 [1] : vector<16x16xf32> to vector<16xf32>
    %101 = vector.shape_cast %100 : vector<16xf32> to vector<16x1xf32>
    %102 = vector.broadcast %101 : vector<16x1xf32> to vector<16x16xf32>
    %103 = arith.subf %99, %102 : vector<16x16xf32>
    %104 = math.exp %103 : vector<16x16xf32>
    %cst_61 = arith.constant dense<0.000000e+00> : vector<16xf32>
    %105 = vector.multi_reduction <add>, %104, %cst_61 [1] : vector<16x16xf32> to vector<16xf32>
    %106 = vector.shape_cast %105 : vector<16xf32> to vector<16x1xf32>
    %107 = tpu.reciprocal %106 {approx = true} : vector<16x1xf32> -> vector<16x1xf32>
    %108 = vector.broadcast %107 : vector<16x1xf32> to vector<16x16xf32>
    %109 = arith.mulf %104, %108 : vector<16x16xf32>
    %cst_62 = arith.constant dense<0.000000e+00> : vector<16x8xf32>
    %110 = tpu.matmul %109, %95, %cst_62 {dimension_numbers = #tpu.dot_dimension_numbers<[1], [0], [0], [1], [0, 0, 1, 1], [], []>} : vector<16x16xf32>, vector<16x8xf32>, vector<16x8xf32> -> vector<16x8xf32>
    %111 = vector.extract_strided_slice %7 {offsets = [24, 0], sizes = [8, 32], strides = [1, 1]} : vector<32x32xf32> to vector<8x32xf32>
    %cst_63 = arith.constant dense<0.000000e+00> : vector<16x32xf32>
    %112 = tpu.matmul %110, %111, %cst_63 {dimension_numbers = #tpu.dot_dimension_numbers<[1], [0], [0], [1], [0, 0, 1, 1], [], []>} : vector<16x8xf32>, vector<8x32xf32>, vector<16x32xf32> -> vector<16x32xf32>
    %113 = arith.addf %92, %112 : vector<16x32xf32>
    %114 = arith.addf %1, %113 : vector<16x32xf32>
    %115 = vector.broadcast %9 : vector<1x32xf32> to vector<16x32xf32>
    %116 = arith.addf %114, %115 : vector<16x32xf32>
    %cst_64 = arith.constant dense<0.000000e+00> : vector<16xf32>
    %117 = vector.multi_reduction <add>, %116, %cst_64 [1] : vector<16x32xf32> to vector<16xf32>
    %118 = vector.shape_cast %117 : vector<16xf32> to vector<16x1xf32>
    %cst_65 = arith.constant 3.200000e+01 : f32
    %119 = vector.broadcast %cst_65 : f32 to vector<16x1xf32>
    %120 = arith.divf %118, %119 : vector<16x1xf32>
    %121 = vector.broadcast %120 : vector<16x1xf32> to vector<16x32xf32>
    %122 = arith.subf %116, %121 : vector<16x32xf32>
    %123 = arith.mulf %122, %122 : vector<16x32xf32>
    %cst_66 = arith.constant dense<0.000000e+00> : vector<16xf32>
    %124 = vector.multi_reduction <add>, %123, %cst_66 [1] : vector<16x32xf32> to vector<16xf32>
    %125 = vector.shape_cast %124 : vector<16xf32> to vector<16x1xf32>
    %cst_67 = arith.constant 3.200000e+01 : f32
    %126 = vector.broadcast %cst_67 : f32 to vector<16x1xf32>
    %127 = arith.divf %125, %126 : vector<16x1xf32>
    %128 = vector.broadcast %120 : vector<16x1xf32> to vector<16x32xf32>
    %129 = arith.subf %116, %128 : vector<16x32xf32>
    %cst_68 = arith.constant 9.99999974E-6 : f32
    %130 = vector.broadcast %cst_68 : f32 to vector<16x1xf32>
    %131 = arith.addf %127, %130 : vector<16x1xf32>
    %132 = math.rsqrt %131 : vector<16x1xf32>
    %133 = vector.broadcast %132 : vector<16x1xf32> to vector<16x32xf32>
    %134 = arith.mulf %129, %133 : vector<16x32xf32>
    %135 = vector.broadcast %19 : vector<1x32xf32> to vector<16x32xf32>
    %136 = arith.mulf %134, %135 : vector<16x32xf32>
    %137 = vector.broadcast %21 : vector<1x32xf32> to vector<16x32xf32>
    %138 = arith.addf %136, %137 : vector<16x32xf32>
    %cst_69 = arith.constant dense<0.000000e+00> : vector<16x64xf32>
    %139 = tpu.matmul %138, %11, %cst_69 {dimension_numbers = #tpu.dot_dimension_numbers<[1], [0], [0], [1], [0, 0, 1, 1], [], []>} : vector<16x32xf32>, vector<32x64xf32>, vector<16x64xf32> -> vector<16x64xf32>
    %140 = vector.broadcast %13 : vector<1x64xf32> to vector<16x64xf32>
    %141 = arith.addf %139, %140 : vector<16x64xf32>
    %cst_70 = arith.constant 0.000000e+00 : f32
    %142 = vector.broadcast %cst_70 : f32 to vector<16x64xf32>
    %143 = arith.cmpf oge, %141, %142 : vector<16x64xf32>
    %cst_71 = arith.constant 0.00999999977 : f32
    %144 = vector.broadcast %cst_71 : f32 to vector<16x64xf32>
    %145 = arith.mulf %144, %141 : vector<16x64xf32>
    %146 = arith.select %143, %141, %145 : vector<16x64xi1>, vector<16x64xf32>
    %cst_72 = arith.constant dense<0.000000e+00> : vector<16x32xf32>
    %147 = tpu.matmul %146, %15, %cst_72 {dimension_numbers = #tpu.dot_dimension_numbers<[1], [0], [0], [1], [0, 0, 1, 1], [], []>} : vector<16x64xf32>, vector<64x32xf32>, vector<16x32xf32> -> vector<16x32xf32>
    %148 = vector.broadcast %17 : vector<1x32xf32> to vector<16x32xf32>
    %149 = arith.addf %147, %148 : vector<16x32xf32>
    %150 = arith.addf %138, %149 : vector<16x32xf32>
    %cst_73 = arith.constant dense<0.000000e+00> : vector<16xf32>
    %151 = vector.multi_reduction <add>, %150, %cst_73 [1] : vector<16x32xf32> to vector<16xf32>
    %152 = vector.shape_cast %151 : vector<16xf32> to vector<16x1xf32>
    %cst_74 = arith.constant 3.200000e+01 : f32
    %153 = vector.broadcast %cst_74 : f32 to vector<16x1xf32>
    %154 = arith.divf %152, %153 : vector<16x1xf32>
    %155 = vector.broadcast %154 : vector<16x1xf32> to vector<16x32xf32>
    %156 = arith.subf %150, %155 : vector<16x32xf32>
    %157 = arith.mulf %156, %156 : vector<16x32xf32>
    %cst_75 = arith.constant dense<0.000000e+00> : vector<16xf32>
    %158 = vector.multi_reduction <add>, %157, %cst_75 [1] : vector<16x32xf32> to vector<16xf32>
    %159 = vector.shape_cast %158 : vector<16xf32> to vector<16x1xf32>
    %cst_76 = arith.constant 3.200000e+01 : f32
    %160 = vector.broadcast %cst_76 : f32 to vector<16x1xf32>
    %161 = arith.divf %159, %160 : vector<16x1xf32>
    %162 = vector.broadcast %154 : vector<16x1xf32> to vector<16x32xf32>
    %163 = arith.subf %150, %162 : vector<16x32xf32>
    %cst_77 = arith.constant 9.99999974E-6 : f32
    %164 = vector.broadcast %cst_77 : f32 to vector<16x1xf32>
    %165 = arith.addf %161, %164 : vector<16x1xf32>
    %166 = math.rsqrt %165 : vector<16x1xf32>
    %167 = vector.broadcast %166 : vector<16x1xf32> to vector<16x32xf32>
    %168 = arith.mulf %163, %167 : vector<16x32xf32>
    %169 = vector.broadcast %23 : vector<1x32xf32> to vector<16x32xf32>
    %170 = arith.mulf %168, %169 : vector<16x32xf32>
    %171 = vector.broadcast %25 : vector<1x32xf32> to vector<16x32xf32>
    %172 = arith.addf %170, %171 : vector<16x32xf32>
    %c1 = arith.constant 1 : index
    %c0_78 = arith.constant 0 : index
    %c0_79 = arith.constant 0 : index
    %173 = vector.load %arg5[%c1, %c0_78, %c0_79] : memref<2x32x96xf32, #tpu.memory_space<vmem>>, vector<1x32x96xf32>
    %174 = vector.shape_cast %173 : vector<1x32x96xf32> to vector<32x96xf32>
    %c1_80 = arith.constant 1 : index
    %c0_81 = arith.constant 0 : index
    %c0_82 = arith.constant 0 : index
    %175 = vector.load %arg6[%c1_80, %c0_81, %c0_82] : memref<2x1x96xf32, #tpu.memory_space<vmem>>, vector<1x1x96xf32>
    %176 = vector.shape_cast %175 : vector<1x1x96xf32> to vector<1x96xf32>
    %c1_83 = arith.constant 1 : index
    %c0_84 = arith.constant 0 : index
    %c0_85 = arith.constant 0 : index
    %177 = vector.load %arg7[%c1_83, %c0_84, %c0_85] : memref<2x32x32xf32, #tpu.memory_space<vmem>>, vector<1x32x32xf32>
    %178 = vector.shape_cast %177 : vector<1x32x32xf32> to vector<32x32xf32>
    %c1_86 = arith.constant 1 : index
    %c0_87 = arith.constant 0 : index
    %c0_88 = arith.constant 0 : index
    %179 = vector.load %arg8[%c1_86, %c0_87, %c0_88] : memref<2x1x32xf32, #tpu.memory_space<vmem>>, vector<1x1x32xf32>
    %180 = vector.shape_cast %179 : vector<1x1x32xf32> to vector<1x32xf32>
    %c1_89 = arith.constant 1 : index
    %c0_90 = arith.constant 0 : index
    %c0_91 = arith.constant 0 : index
    %181 = vector.load %arg9[%c1_89, %c0_90, %c0_91] : memref<2x32x64xf32, #tpu.memory_space<vmem>>, vector<1x32x64xf32>
    %182 = vector.shape_cast %181 : vector<1x32x64xf32> to vector<32x64xf32>
    %c1_92 = arith.constant 1 : index
    %c0_93 = arith.constant 0 : index
    %c0_94 = arith.constant 0 : index
    %183 = vector.load %arg10[%c1_92, %c0_93, %c0_94] : memref<2x1x64xf32, #tpu.memory_space<vmem>>, vector<1x1x64xf32>
    %184 = vector.shape_cast %183 : vector<1x1x64xf32> to vector<1x64xf32>
    %c1_95 = arith.constant 1 : index
    %c0_96 = arith.constant 0 : index
    %c0_97 = arith.constant 0 : index
    %185 = vector.load %arg11[%c1_95, %c0_96, %c0_97] : memref<2x64x32xf32, #tpu.memory_space<vmem>>, vector<1x64x32xf32>
    %186 = vector.shape_cast %185 : vector<1x64x32xf32> to vector<64x32xf32>
    %c1_98 = arith.constant 1 : index
    %c0_99 = arith.constant 0 : index
    %c0_100 = arith.constant 0 : index
    %187 = vector.load %arg12[%c1_98, %c0_99, %c0_100] : memref<2x1x32xf32, #tpu.memory_space<vmem>>, vector<1x1x32xf32>
    %188 = vector.shape_cast %187 : vector<1x1x32xf32> to vector<1x32xf32>
    %c1_101 = arith.constant 1 : index
    %c0_102 = arith.constant 0 : index
    %c0_103 = arith.constant 0 : index
    %189 = vector.load %arg13[%c1_101, %c0_102, %c0_103] : memref<2x1x32xf32, #tpu.memory_space<vmem>>, vector<1x1x32xf32>
    %190 = vector.shape_cast %189 : vector<1x1x32xf32> to vector<1x32xf32>
    %c1_104 = arith.constant 1 : index
    %c0_105 = arith.constant 0 : index
    %c0_106 = arith.constant 0 : index
    %191 = vector.load %arg14[%c1_104, %c0_105, %c0_106] : memref<2x1x32xf32, #tpu.memory_space<vmem>>, vector<1x1x32xf32>
    %192 = vector.shape_cast %191 : vector<1x1x32xf32> to vector<1x32xf32>
    %c1_107 = arith.constant 1 : index
    %c0_108 = arith.constant 0 : index
    %c0_109 = arith.constant 0 : index
    %193 = vector.load %arg15[%c1_107, %c0_108, %c0_109] : memref<2x1x32xf32, #tpu.memory_space<vmem>>, vector<1x1x32xf32>
    %194 = vector.shape_cast %193 : vector<1x1x32xf32> to vector<1x32xf32>
    %c1_110 = arith.constant 1 : index
    %c0_111 = arith.constant 0 : index
    %c0_112 = arith.constant 0 : index
    %195 = vector.load %arg16[%c1_110, %c0_111, %c0_112] : memref<2x1x32xf32, #tpu.memory_space<vmem>>, vector<1x1x32xf32>
    %196 = vector.shape_cast %195 : vector<1x1x32xf32> to vector<1x32xf32>
    %cst_113 = arith.constant dense<0.000000e+00> : vector<16x96xf32>
    %197 = tpu.matmul %172, %174, %cst_113 {dimension_numbers = #tpu.dot_dimension_numbers<[1], [0], [0], [1], [0, 0, 1, 1], [], []>} : vector<16x32xf32>, vector<32x96xf32>, vector<16x96xf32> -> vector<16x96xf32>
    %198 = vector.broadcast %176 : vector<1x96xf32> to vector<16x96xf32>
    %199 = arith.addf %197, %198 : vector<16x96xf32>
    %cst_114 = arith.constant 0.000000e+00 : f32
    %200 = vector.broadcast %cst_114 : f32 to vector<16x32xf32>
    %201 = vector.extract_strided_slice %199 {offsets = [0, 0], sizes = [16, 8], strides = [1, 1]} : vector<16x96xf32> to vector<16x8xf32>
    %202 = vector.extract_strided_slice %199 {offsets = [0, 32], sizes = [16, 8], strides = [1, 1]} : vector<16x96xf32> to vector<16x8xf32>
    %203 = vector.extract_strided_slice %199 {offsets = [0, 64], sizes = [16, 8], strides = [1, 1]} : vector<16x96xf32> to vector<16x8xf32>
    %cst_115 = arith.constant dense<0.000000e+00> : vector<16x16xf32>
    %204 = tpu.matmul %201, %202, %cst_115 {dimension_numbers = #tpu.dot_dimension_numbers<[1], [1], [0], [0], [0, 0, 1, 0], [], []>} : vector<16x8xf32>, vector<16x8xf32>, vector<16x16xf32> -> vector<16x16xf32>
    %cst_116 = arith.constant 0.353553385 : f32
    %205 = vector.broadcast %cst_116 : f32 to vector<16x16xf32>
    %206 = arith.mulf %204, %205 : vector<16x16xf32>
    %207 = arith.addf %206, %0 : vector<16x16xf32>
    %cst_117 = arith.constant dense<0xFF800000> : vector<16xf32>
    %208 = vector.multi_reduction <maximumf>, %207, %cst_117 [1] : vector<16x16xf32> to vector<16xf32>
    %209 = vector.shape_cast %208 : vector<16xf32> to vector<16x1xf32>
    %210 = vector.broadcast %209 : vector<16x1xf32> to vector<16x16xf32>
    %211 = arith.subf %207, %210 : vector<16x16xf32>
    %212 = math.exp %211 : vector<16x16xf32>
    %cst_118 = arith.constant dense<0.000000e+00> : vector<16xf32>
    %213 = vector.multi_reduction <add>, %212, %cst_118 [1] : vector<16x16xf32> to vector<16xf32>
    %214 = vector.shape_cast %213 : vector<16xf32> to vector<16x1xf32>
    %215 = tpu.reciprocal %214 {approx = true} : vector<16x1xf32> -> vector<16x1xf32>
    %216 = vector.broadcast %215 : vector<16x1xf32> to vector<16x16xf32>
    %217 = arith.mulf %212, %216 : vector<16x16xf32>
    %cst_119 = arith.constant dense<0.000000e+00> : vector<16x8xf32>
    %218 = tpu.matmul %217, %203, %cst_119 {dimension_numbers = #tpu.dot_dimension_numbers<[1], [0], [0], [1], [0, 0, 1, 1], [], []>} : vector<16x16xf32>, vector<16x8xf32>, vector<16x8xf32> -> vector<16x8xf32>
    %219 = vector.extract_strided_slice %178 {offsets = [0, 0], sizes = [8, 32], strides = [1, 1]} : vector<32x32xf32> to vector<8x32xf32>
    %cst_120 = arith.constant dense<0.000000e+00> : vector<16x32xf32>
    %220 = tpu.matmul %218, %219, %cst_120 {dimension_numbers = #tpu.dot_dimension_numbers<[1], [0], [0], [1], [0, 0, 1, 1], [], []>} : vector<16x8xf32>, vector<8x32xf32>, vector<16x32xf32> -> vector<16x32xf32>
    %221 = arith.addf %200, %220 : vector<16x32xf32>
    %222 = vector.extract_strided_slice %199 {offsets = [0, 8], sizes = [16, 8], strides = [1, 1]} : vector<16x96xf32> to vector<16x8xf32>
    %223 = vector.extract_strided_slice %199 {offsets = [0, 40], sizes = [16, 8], strides = [1, 1]} : vector<16x96xf32> to vector<16x8xf32>
    %224 = vector.extract_strided_slice %199 {offsets = [0, 72], sizes = [16, 8], strides = [1, 1]} : vector<16x96xf32> to vector<16x8xf32>
    %cst_121 = arith.constant dense<0.000000e+00> : vector<16x16xf32>
    %225 = tpu.matmul %222, %223, %cst_121 {dimension_numbers = #tpu.dot_dimension_numbers<[1], [1], [0], [0], [0, 0, 1, 0], [], []>} : vector<16x8xf32>, vector<16x8xf32>, vector<16x16xf32> -> vector<16x16xf32>
    %cst_122 = arith.constant 0.353553385 : f32
    %226 = vector.broadcast %cst_122 : f32 to vector<16x16xf32>
    %227 = arith.mulf %225, %226 : vector<16x16xf32>
    %228 = arith.addf %227, %0 : vector<16x16xf32>
    %cst_123 = arith.constant dense<0xFF800000> : vector<16xf32>
    %229 = vector.multi_reduction <maximumf>, %228, %cst_123 [1] : vector<16x16xf32> to vector<16xf32>
    %230 = vector.shape_cast %229 : vector<16xf32> to vector<16x1xf32>
    %231 = vector.broadcast %230 : vector<16x1xf32> to vector<16x16xf32>
    %232 = arith.subf %228, %231 : vector<16x16xf32>
    %233 = math.exp %232 : vector<16x16xf32>
    %cst_124 = arith.constant dense<0.000000e+00> : vector<16xf32>
    %234 = vector.multi_reduction <add>, %233, %cst_124 [1] : vector<16x16xf32> to vector<16xf32>
    %235 = vector.shape_cast %234 : vector<16xf32> to vector<16x1xf32>
    %236 = tpu.reciprocal %235 {approx = true} : vector<16x1xf32> -> vector<16x1xf32>
    %237 = vector.broadcast %236 : vector<16x1xf32> to vector<16x16xf32>
    %238 = arith.mulf %233, %237 : vector<16x16xf32>
    %cst_125 = arith.constant dense<0.000000e+00> : vector<16x8xf32>
    %239 = tpu.matmul %238, %224, %cst_125 {dimension_numbers = #tpu.dot_dimension_numbers<[1], [0], [0], [1], [0, 0, 1, 1], [], []>} : vector<16x16xf32>, vector<16x8xf32>, vector<16x8xf32> -> vector<16x8xf32>
    %240 = vector.extract_strided_slice %178 {offsets = [8, 0], sizes = [8, 32], strides = [1, 1]} : vector<32x32xf32> to vector<8x32xf32>
    %cst_126 = arith.constant dense<0.000000e+00> : vector<16x32xf32>
    %241 = tpu.matmul %239, %240, %cst_126 {dimension_numbers = #tpu.dot_dimension_numbers<[1], [0], [0], [1], [0, 0, 1, 1], [], []>} : vector<16x8xf32>, vector<8x32xf32>, vector<16x32xf32> -> vector<16x32xf32>
    %242 = arith.addf %221, %241 : vector<16x32xf32>
    %243 = vector.extract_strided_slice %199 {offsets = [0, 16], sizes = [16, 8], strides = [1, 1]} : vector<16x96xf32> to vector<16x8xf32>
    %244 = vector.extract_strided_slice %199 {offsets = [0, 48], sizes = [16, 8], strides = [1, 1]} : vector<16x96xf32> to vector<16x8xf32>
    %245 = vector.extract_strided_slice %199 {offsets = [0, 80], sizes = [16, 8], strides = [1, 1]} : vector<16x96xf32> to vector<16x8xf32>
    %cst_127 = arith.constant dense<0.000000e+00> : vector<16x16xf32>
    %246 = tpu.matmul %243, %244, %cst_127 {dimension_numbers = #tpu.dot_dimension_numbers<[1], [1], [0], [0], [0, 0, 1, 0], [], []>} : vector<16x8xf32>, vector<16x8xf32>, vector<16x16xf32> -> vector<16x16xf32>
    %cst_128 = arith.constant 0.353553385 : f32
    %247 = vector.broadcast %cst_128 : f32 to vector<16x16xf32>
    %248 = arith.mulf %246, %247 : vector<16x16xf32>
    %249 = arith.addf %248, %0 : vector<16x16xf32>
    %cst_129 = arith.constant dense<0xFF800000> : vector<16xf32>
    %250 = vector.multi_reduction <maximumf>, %249, %cst_129 [1] : vector<16x16xf32> to vector<16xf32>
    %251 = vector.shape_cast %250 : vector<16xf32> to vector<16x1xf32>
    %252 = vector.broadcast %251 : vector<16x1xf32> to vector<16x16xf32>
    %253 = arith.subf %249, %252 : vector<16x16xf32>
    %254 = math.exp %253 : vector<16x16xf32>
    %cst_130 = arith.constant dense<0.000000e+00> : vector<16xf32>
    %255 = vector.multi_reduction <add>, %254, %cst_130 [1] : vector<16x16xf32> to vector<16xf32>
    %256 = vector.shape_cast %255 : vector<16xf32> to vector<16x1xf32>
    %257 = tpu.reciprocal %256 {approx = true} : vector<16x1xf32> -> vector<16x1xf32>
    %258 = vector.broadcast %257 : vector<16x1xf32> to vector<16x16xf32>
    %259 = arith.mulf %254, %258 : vector<16x16xf32>
    %cst_131 = arith.constant dense<0.000000e+00> : vector<16x8xf32>
    %260 = tpu.matmul %259, %245, %cst_131 {dimension_numbers = #tpu.dot_dimension_numbers<[1], [0], [0], [1], [0, 0, 1, 1], [], []>} : vector<16x16xf32>, vector<16x8xf32>, vector<16x8xf32> -> vector<16x8xf32>
    %261 = vector.extract_strided_slice %178 {offsets = [16, 0], sizes = [8, 32], strides = [1, 1]} : vector<32x32xf32> to vector<8x32xf32>
    %cst_132 = arith.constant dense<0.000000e+00> : vector<16x32xf32>
    %262 = tpu.matmul %260, %261, %cst_132 {dimension_numbers = #tpu.dot_dimension_numbers<[1], [0], [0], [1], [0, 0, 1, 1], [], []>} : vector<16x8xf32>, vector<8x32xf32>, vector<16x32xf32> -> vector<16x32xf32>
    %263 = arith.addf %242, %262 : vector<16x32xf32>
    %264 = vector.extract_strided_slice %199 {offsets = [0, 24], sizes = [16, 8], strides = [1, 1]} : vector<16x96xf32> to vector<16x8xf32>
    %265 = vector.extract_strided_slice %199 {offsets = [0, 56], sizes = [16, 8], strides = [1, 1]} : vector<16x96xf32> to vector<16x8xf32>
    %266 = vector.extract_strided_slice %199 {offsets = [0, 88], sizes = [16, 8], strides = [1, 1]} : vector<16x96xf32> to vector<16x8xf32>
    %cst_133 = arith.constant dense<0.000000e+00> : vector<16x16xf32>
    %267 = tpu.matmul %264, %265, %cst_133 {dimension_numbers = #tpu.dot_dimension_numbers<[1], [1], [0], [0], [0, 0, 1, 0], [], []>} : vector<16x8xf32>, vector<16x8xf32>, vector<16x16xf32> -> vector<16x16xf32>
    %cst_134 = arith.constant 0.353553385 : f32
    %268 = vector.broadcast %cst_134 : f32 to vector<16x16xf32>
    %269 = arith.mulf %267, %268 : vector<16x16xf32>
    %270 = arith.addf %269, %0 : vector<16x16xf32>
    %cst_135 = arith.constant dense<0xFF800000> : vector<16xf32>
    %271 = vector.multi_reduction <maximumf>, %270, %cst_135 [1] : vector<16x16xf32> to vector<16xf32>
    %272 = vector.shape_cast %271 : vector<16xf32> to vector<16x1xf32>
    %273 = vector.broadcast %272 : vector<16x1xf32> to vector<16x16xf32>
    %274 = arith.subf %270, %273 : vector<16x16xf32>
    %275 = math.exp %274 : vector<16x16xf32>
    %cst_136 = arith.constant dense<0.000000e+00> : vector<16xf32>
    %276 = vector.multi_reduction <add>, %275, %cst_136 [1] : vector<16x16xf32> to vector<16xf32>
    %277 = vector.shape_cast %276 : vector<16xf32> to vector<16x1xf32>
    %278 = tpu.reciprocal %277 {approx = true} : vector<16x1xf32> -> vector<16x1xf32>
    %279 = vector.broadcast %278 : vector<16x1xf32> to vector<16x16xf32>
    %280 = arith.mulf %275, %279 : vector<16x16xf32>
    %cst_137 = arith.constant dense<0.000000e+00> : vector<16x8xf32>
    %281 = tpu.matmul %280, %266, %cst_137 {dimension_numbers = #tpu.dot_dimension_numbers<[1], [0], [0], [1], [0, 0, 1, 1], [], []>} : vector<16x16xf32>, vector<16x8xf32>, vector<16x8xf32> -> vector<16x8xf32>
    %282 = vector.extract_strided_slice %178 {offsets = [24, 0], sizes = [8, 32], strides = [1, 1]} : vector<32x32xf32> to vector<8x32xf32>
    %cst_138 = arith.constant dense<0.000000e+00> : vector<16x32xf32>
    %283 = tpu.matmul %281, %282, %cst_138 {dimension_numbers = #tpu.dot_dimension_numbers<[1], [0], [0], [1], [0, 0, 1, 1], [], []>} : vector<16x8xf32>, vector<8x32xf32>, vector<16x32xf32> -> vector<16x32xf32>
    %284 = arith.addf %263, %283 : vector<16x32xf32>
    %285 = arith.addf %172, %284 : vector<16x32xf32>
    %286 = vector.broadcast %180 : vector<1x32xf32> to vector<16x32xf32>
    %287 = arith.addf %285, %286 : vector<16x32xf32>
    %cst_139 = arith.constant dense<0.000000e+00> : vector<16xf32>
    %288 = vector.multi_reduction <add>, %287, %cst_139 [1] : vector<16x32xf32> to vector<16xf32>
    %289 = vector.shape_cast %288 : vector<16xf32> to vector<16x1xf32>
    %cst_140 = arith.constant 3.200000e+01 : f32
    %290 = vector.broadcast %cst_140 : f32 to vector<16x1xf32>
    %291 = arith.divf %289, %290 : vector<16x1xf32>
    %292 = vector.broadcast %291 : vector<16x1xf32> to vector<16x32xf32>
    %293 = arith.subf %287, %292 : vector<16x32xf32>
    %294 = arith.mulf %293, %293 : vector<16x32xf32>
    %cst_141 = arith.constant dense<0.000000e+00> : vector<16xf32>
    %295 = vector.multi_reduction <add>, %294, %cst_141 [1] : vector<16x32xf32> to vector<16xf32>
    %296 = vector.shape_cast %295 : vector<16xf32> to vector<16x1xf32>
    %cst_142 = arith.constant 3.200000e+01 : f32
    %297 = vector.broadcast %cst_142 : f32 to vector<16x1xf32>
    %298 = arith.divf %296, %297 : vector<16x1xf32>
    %299 = vector.broadcast %291 : vector<16x1xf32> to vector<16x32xf32>
    %300 = arith.subf %287, %299 : vector<16x32xf32>
    %cst_143 = arith.constant 9.99999974E-6 : f32
    %301 = vector.broadcast %cst_143 : f32 to vector<16x1xf32>
    %302 = arith.addf %298, %301 : vector<16x1xf32>
    %303 = math.rsqrt %302 : vector<16x1xf32>
    %304 = vector.broadcast %303 : vector<16x1xf32> to vector<16x32xf32>
    %305 = arith.mulf %300, %304 : vector<16x32xf32>
    %306 = vector.broadcast %190 : vector<1x32xf32> to vector<16x32xf32>
    %307 = arith.mulf %305, %306 : vector<16x32xf32>
    %308 = vector.broadcast %192 : vector<1x32xf32> to vector<16x32xf32>
    %309 = arith.addf %307, %308 : vector<16x32xf32>
    %cst_144 = arith.constant dense<0.000000e+00> : vector<16x64xf32>
    %310 = tpu.matmul %309, %182, %cst_144 {dimension_numbers = #tpu.dot_dimension_numbers<[1], [0], [0], [1], [0, 0, 1, 1], [], []>} : vector<16x32xf32>, vector<32x64xf32>, vector<16x64xf32> -> vector<16x64xf32>
    %311 = vector.broadcast %184 : vector<1x64xf32> to vector<16x64xf32>
    %312 = arith.addf %310, %311 : vector<16x64xf32>
    %cst_145 = arith.constant 0.000000e+00 : f32
    %313 = vector.broadcast %cst_145 : f32 to vector<16x64xf32>
    %314 = arith.cmpf oge, %312, %313 : vector<16x64xf32>
    %cst_146 = arith.constant 0.00999999977 : f32
    %315 = vector.broadcast %cst_146 : f32 to vector<16x64xf32>
    %316 = arith.mulf %315, %312 : vector<16x64xf32>
    %317 = arith.select %314, %312, %316 : vector<16x64xi1>, vector<16x64xf32>
    %cst_147 = arith.constant dense<0.000000e+00> : vector<16x32xf32>
    %318 = tpu.matmul %317, %186, %cst_147 {dimension_numbers = #tpu.dot_dimension_numbers<[1], [0], [0], [1], [0, 0, 1, 1], [], []>} : vector<16x64xf32>, vector<64x32xf32>, vector<16x32xf32> -> vector<16x32xf32>
    %319 = vector.broadcast %188 : vector<1x32xf32> to vector<16x32xf32>
    %320 = arith.addf %318, %319 : vector<16x32xf32>
    %321 = arith.addf %309, %320 : vector<16x32xf32>
    %cst_148 = arith.constant dense<0.000000e+00> : vector<16xf32>
    %322 = vector.multi_reduction <add>, %321, %cst_148 [1] : vector<16x32xf32> to vector<16xf32>
    %323 = vector.shape_cast %322 : vector<16xf32> to vector<16x1xf32>
    %cst_149 = arith.constant 3.200000e+01 : f32
    %324 = vector.broadcast %cst_149 : f32 to vector<16x1xf32>
    %325 = arith.divf %323, %324 : vector<16x1xf32>
    %326 = vector.broadcast %325 : vector<16x1xf32> to vector<16x32xf32>
    %327 = arith.subf %321, %326 : vector<16x32xf32>
    %328 = arith.mulf %327, %327 : vector<16x32xf32>
    %cst_150 = arith.constant dense<0.000000e+00> : vector<16xf32>
    %329 = vector.multi_reduction <add>, %328, %cst_150 [1] : vector<16x32xf32> to vector<16xf32>
    %330 = vector.shape_cast %329 : vector<16xf32> to vector<16x1xf32>
    %cst_151 = arith.constant 3.200000e+01 : f32
    %331 = vector.broadcast %cst_151 : f32 to vector<16x1xf32>
    %332 = arith.divf %330, %331 : vector<16x1xf32>
    %333 = vector.broadcast %325 : vector<16x1xf32> to vector<16x32xf32>
    %334 = arith.subf %321, %333 : vector<16x32xf32>
    %cst_152 = arith.constant 9.99999974E-6 : f32
    %335 = vector.broadcast %cst_152 : f32 to vector<16x1xf32>
    %336 = arith.addf %332, %335 : vector<16x1xf32>
    %337 = math.rsqrt %336 : vector<16x1xf32>
    %338 = vector.broadcast %337 : vector<16x1xf32> to vector<16x32xf32>
    %339 = arith.mulf %334, %338 : vector<16x32xf32>
    %340 = vector.broadcast %194 : vector<1x32xf32> to vector<16x32xf32>
    %341 = arith.mulf %339, %340 : vector<16x32xf32>
    %342 = vector.broadcast %196 : vector<1x32xf32> to vector<16x32xf32>
    %343 = arith.addf %341, %342 : vector<16x32xf32>
    %c0_153 = arith.constant 0 : index
    %c0_154 = arith.constant 0 : index
    %344 = vector.load %arg33[%c0_153, %c0_154] : memref<16x32xf32, #tpu.memory_space<vmem>>, vector<16x32xf32>
    tpu.vector_store %arg33[%c0_153, %c0_154], %343 {strides = array<i32>} : memref<16x32xf32, #tpu.memory_space<vmem>>, vector<16x32xf32>,
    %c0_155 = arith.constant 0 : index
    %c0_156 = arith.constant 0 : index
    %345 = vector.load %arg3[%c0_155, %c0_156] : memref<2x16xf32, #tpu.memory_space<vmem>>, vector<2x16xf32>
    %cst_157 = arith.constant dense<0.000000e+00> : vector<2x32xf32>
    %346 = tpu.matmul %345, %343, %cst_157 {dimension_numbers = #tpu.dot_dimension_numbers<[1], [0], [0], [1], [0, 0, 1, 1], [], []>} : vector<2x16xf32>, vector<16x32xf32>, vector<2x32xf32> -> vector<2x32xf32>
    %c0_158 = arith.constant 0 : index
    %c0_159 = arith.constant 0 : index
    %347 = vector.load %arg29[%c0_158, %c0_159] : memref<32x40xf32, #tpu.memory_space<vmem>>, vector<32x40xf32>
    %cst_160 = arith.constant dense<0.000000e+00> : vector<2x40xf32>
    %348 = tpu.matmul %346, %347, %cst_160 {dimension_numbers = #tpu.dot_dimension_numbers<[1], [0], [0], [1], [0, 0, 1, 1], [], []>} : vector<2x32xf32>, vector<32x40xf32>, vector<2x40xf32> -> vector<2x40xf32>
    %c0_161 = arith.constant 0 : index
    %c0_162 = arith.constant 0 : index
    %349 = vector.load %arg30[%c0_161, %c0_162] : memref<1x40xf32, #tpu.memory_space<vmem>>, vector<1x40xf32>
    %350 = vector.broadcast %349 : vector<1x40xf32> to vector<2x40xf32>
    %351 = arith.addf %348, %350 : vector<2x40xf32>
    %c0_163 = arith.constant 0 : index
    %c0_164 = arith.constant 0 : index
    %352 = vector.load %arg34[%c0_163, %c0_164] : memref<2x40xf32, #tpu.memory_space<vmem>>, vector<2x40xf32>
    tpu.vector_store %arg34[%c0_163, %c0_164], %351 {strides = array<i32>} : memref<2x40xf32, #tpu.memory_space<vmem>>, vector<2x40xf32>,
    %c0_165 = arith.constant 0 : index
    %c0_166 = arith.constant 0 : index
    %353 = vector.load %arg1[%c0_165, %c0_166] : memref<16x32xf32, #tpu.memory_space<vmem>>, vector<16x32xf32>
    %c0_167 = arith.constant 0 : index
    %c0_168 = arith.constant 0 : index
    %c0_169 = arith.constant 0 : index
    %354 = vector.load %arg17[%c0_167, %c0_168, %c0_169] : memref<2x32x96xf32, #tpu.memory_space<vmem>>, vector<1x32x96xf32>
    %355 = vector.shape_cast %354 : vector<1x32x96xf32> to vector<32x96xf32>
    %c0_170 = arith.constant 0 : index
    %c0_171 = arith.constant 0 : index
    %c0_172 = arith.constant 0 : index
    %356 = vector.load %arg18[%c0_170, %c0_171, %c0_172] : memref<2x1x96xf32, #tpu.memory_space<vmem>>, vector<1x1x96xf32>
    %357 = vector.shape_cast %356 : vector<1x1x96xf32> to vector<1x96xf32>
    %c0_173 = arith.constant 0 : index
    %c0_174 = arith.constant 0 : index
    %c0_175 = arith.constant 0 : index
    %358 = vector.load %arg19[%c0_173, %c0_174, %c0_175] : memref<2x32x32xf32, #tpu.memory_space<vmem>>, vector<1x32x32xf32>
    %359 = vector.shape_cast %358 : vector<1x32x32xf32> to vector<32x32xf32>
    %c0_176 = arith.constant 0 : index
    %c0_177 = arith.constant 0 : index
    %c0_178 = arith.constant 0 : index
    %360 = vector.load %arg20[%c0_176, %c0_177, %c0_178] : memref<2x1x32xf32, #tpu.memory_space<vmem>>, vector<1x1x32xf32>
    %361 = vector.shape_cast %360 : vector<1x1x32xf32> to vector<1x32xf32>
    %c0_179 = arith.constant 0 : index
    %c0_180 = arith.constant 0 : index
    %c0_181 = arith.constant 0 : index
    %362 = vector.load %arg21[%c0_179, %c0_180, %c0_181] : memref<2x32x2xf32, #tpu.memory_space<vmem>>, vector<1x32x2xf32>
    %363 = vector.shape_cast %362 : vector<1x32x2xf32> to vector<32x2xf32>
    %c0_182 = arith.constant 0 : index
    %c0_183 = arith.constant 0 : index
    %c0_184 = arith.constant 0 : index
    %364 = vector.load %arg22[%c0_182, %c0_183, %c0_184] : memref<2x1x2xf32, #tpu.memory_space<vmem>>, vector<1x1x2xf32>
    %365 = vector.shape_cast %364 : vector<1x1x2xf32> to vector<1x2xf32>
    %c0_185 = arith.constant 0 : index
    %c0_186 = arith.constant 0 : index
    %c0_187 = arith.constant 0 : index
    %366 = vector.load %arg23[%c0_185, %c0_186, %c0_187] : memref<2x2x32xf32, #tpu.memory_space<vmem>>, vector<1x2x32xf32>
    %367 = vector.shape_cast %366 : vector<1x2x32xf32> to vector<2x32xf32>
    %c0_188 = arith.constant 0 : index
    %c0_189 = arith.constant 0 : index
    %c0_190 = arith.constant 0 : index
    %368 = vector.load %arg24[%c0_188, %c0_189, %c0_190] : memref<2x1x32xf32, #tpu.memory_space<vmem>>, vector<1x1x32xf32>
    %369 = vector.shape_cast %368 : vector<1x1x32xf32> to vector<1x32xf32>
    %c0_191 = arith.constant 0 : index
    %c0_192 = arith.constant 0 : index
    %c0_193 = arith.constant 0 : index
    %370 = vector.load %arg25[%c0_191, %c0_192, %c0_193] : memref<2x1x32xf32, #tpu.memory_space<vmem>>, vector<1x1x32xf32>
    %371 = vector.shape_cast %370 : vector<1x1x32xf32> to vector<1x32xf32>
    %c0_194 = arith.constant 0 : index
    %c0_195 = arith.constant 0 : index
    %c0_196 = arith.constant 0 : index
    %372 = vector.load %arg26[%c0_194, %c0_195, %c0_196] : memref<2x1x32xf32, #tpu.memory_space<vmem>>, vector<1x1x32xf32>
    %373 = vector.shape_cast %372 : vector<1x1x32xf32> to vector<1x32xf32>
    %c0_197 = arith.constant 0 : index
    %c0_198 = arith.constant 0 : index
    %c0_199 = arith.constant 0 : index
    %374 = vector.load %arg27[%c0_197, %c0_198, %c0_199] : memref<2x1x32xf32, #tpu.memory_space<vmem>>, vector<1x1x32xf32>
    %375 = vector.shape_cast %374 : vector<1x1x32xf32> to vector<1x32xf32>
    %c0_200 = arith.constant 0 : index
    %c0_201 = arith.constant 0 : index
    %c0_202 = arith.constant 0 : index
    %376 = vector.load %arg28[%c0_200, %c0_201, %c0_202] : memref<2x1x32xf32, #tpu.memory_space<vmem>>, vector<1x1x32xf32>
    %377 = vector.shape_cast %376 : vector<1x1x32xf32> to vector<1x32xf32>
    %cst_203 = arith.constant dense<0.000000e+00> : vector<16x96xf32>
    %378 = tpu.matmul %353, %355, %cst_203 {dimension_numbers = #tpu.dot_dimension_numbers<[1], [0], [0], [1], [0, 0, 1, 1], [], []>} : vector<16x32xf32>, vector<32x96xf32>, vector<16x96xf32> -> vector<16x96xf32>
    %379 = vector.broadcast %357 : vector<1x96xf32> to vector<16x96xf32>
    %380 = arith.addf %378, %379 : vector<16x96xf32>
    %cst_204 = arith.constant 0.000000e+00 : f32
    %381 = vector.broadcast %cst_204 : f32 to vector<16x32xf32>
    %382 = vector.extract_strided_slice %380 {offsets = [0, 0], sizes = [16, 8], strides = [1, 1]} : vector<16x96xf32> to vector<16x8xf32>
    %383 = vector.extract_strided_slice %380 {offsets = [0, 32], sizes = [16, 8], strides = [1, 1]} : vector<16x96xf32> to vector<16x8xf32>
    %384 = vector.extract_strided_slice %380 {offsets = [0, 64], sizes = [16, 8], strides = [1, 1]} : vector<16x96xf32> to vector<16x8xf32>
    %cst_205 = arith.constant dense<0.000000e+00> : vector<16x16xf32>
    %385 = tpu.matmul %382, %383, %cst_205 {dimension_numbers = #tpu.dot_dimension_numbers<[1], [1], [0], [0], [0, 0, 1, 0], [], []>} : vector<16x8xf32>, vector<16x8xf32>, vector<16x16xf32> -> vector<16x16xf32>
    %cst_206 = arith.constant 0.353553385 : f32
    %386 = vector.broadcast %cst_206 : f32 to vector<16x16xf32>
    %387 = arith.mulf %385, %386 : vector<16x16xf32>
    %388 = arith.addf %387, %0 : vector<16x16xf32>
    %cst_207 = arith.constant dense<0xFF800000> : vector<16xf32>
    %389 = vector.multi_reduction <maximumf>, %388, %cst_207 [1] : vector<16x16xf32> to vector<16xf32>
    %390 = vector.shape_cast %389 : vector<16xf32> to vector<16x1xf32>
    %391 = vector.broadcast %390 : vector<16x1xf32> to vector<16x16xf32>
    %392 = arith.subf %388, %391 : vector<16x16xf32>
    %393 = math.exp %392 : vector<16x16xf32>
    %cst_208 = arith.constant dense<0.000000e+00> : vector<16xf32>
    %394 = vector.multi_reduction <add>, %393, %cst_208 [1] : vector<16x16xf32> to vector<16xf32>
    %395 = vector.shape_cast %394 : vector<16xf32> to vector<16x1xf32>
    %396 = tpu.reciprocal %395 {approx = true} : vector<16x1xf32> -> vector<16x1xf32>
    %397 = vector.broadcast %396 : vector<16x1xf32> to vector<16x16xf32>
    %398 = arith.mulf %393, %397 : vector<16x16xf32>
    %cst_209 = arith.constant dense<0.000000e+00> : vector<16x8xf32>
    %399 = tpu.matmul %398, %384, %cst_209 {dimension_numbers = #tpu.dot_dimension_numbers<[1], [0], [0], [1], [0, 0, 1, 1], [], []>} : vector<16x16xf32>, vector<16x8xf32>, vector<16x8xf32> -> vector<16x8xf32>
    %400 = vector.extract_strided_slice %359 {offsets = [0, 0], sizes = [8, 32], strides = [1, 1]} : vector<32x32xf32> to vector<8x32xf32>
    %cst_210 = arith.constant dense<0.000000e+00> : vector<16x32xf32>
    %401 = tpu.matmul %399, %400, %cst_210 {dimension_numbers = #tpu.dot_dimension_numbers<[1], [0], [0], [1], [0, 0, 1, 1], [], []>} : vector<16x8xf32>, vector<8x32xf32>, vector<16x32xf32> -> vector<16x32xf32>
    %402 = arith.addf %381, %401 : vector<16x32xf32>
    %403 = vector.extract_strided_slice %380 {offsets = [0, 8], sizes = [16, 8], strides = [1, 1]} : vector<16x96xf32> to vector<16x8xf32>
    %404 = vector.extract_strided_slice %380 {offsets = [0, 40], sizes = [16, 8], strides = [1, 1]} : vector<16x96xf32> to vector<16x8xf32>
    %405 = vector.extract_strided_slice %380 {offsets = [0, 72], sizes = [16, 8], strides = [1, 1]} : vector<16x96xf32> to vector<16x8xf32>
    %cst_211 = arith.constant dense<0.000000e+00> : vector<16x16xf32>
    %406 = tpu.matmul %403, %404, %cst_211 {dimension_numbers = #tpu.dot_dimension_numbers<[1], [1], [0], [0], [0, 0, 1, 0], [], []>} : vector<16x8xf32>, vector<16x8xf32>, vector<16x16xf32> -> vector<16x16xf32>
    %cst_212 = arith.constant 0.353553385 : f32
    %407 = vector.broadcast %cst_212 : f32 to vector<16x16xf32>
    %408 = arith.mulf %406, %407 : vector<16x16xf32>
    %409 = arith.addf %408, %0 : vector<16x16xf32>
    %cst_213 = arith.constant dense<0xFF800000> : vector<16xf32>
    %410 = vector.multi_reduction <maximumf>, %409, %cst_213 [1] : vector<16x16xf32> to vector<16xf32>
    %411 = vector.shape_cast %410 : vector<16xf32> to vector<16x1xf32>
    %412 = vector.broadcast %411 : vector<16x1xf32> to vector<16x16xf32>
    %413 = arith.subf %409, %412 : vector<16x16xf32>
    %414 = math.exp %413 : vector<16x16xf32>
    %cst_214 = arith.constant dense<0.000000e+00> : vector<16xf32>
    %415 = vector.multi_reduction <add>, %414, %cst_214 [1] : vector<16x16xf32> to vector<16xf32>
    %416 = vector.shape_cast %415 : vector<16xf32> to vector<16x1xf32>
    %417 = tpu.reciprocal %416 {approx = true} : vector<16x1xf32> -> vector<16x1xf32>
    %418 = vector.broadcast %417 : vector<16x1xf32> to vector<16x16xf32>
    %419 = arith.mulf %414, %418 : vector<16x16xf32>
    %cst_215 = arith.constant dense<0.000000e+00> : vector<16x8xf32>
    %420 = tpu.matmul %419, %405, %cst_215 {dimension_numbers = #tpu.dot_dimension_numbers<[1], [0], [0], [1], [0, 0, 1, 1], [], []>} : vector<16x16xf32>, vector<16x8xf32>, vector<16x8xf32> -> vector<16x8xf32>
    %421 = vector.extract_strided_slice %359 {offsets = [8, 0], sizes = [8, 32], strides = [1, 1]} : vector<32x32xf32> to vector<8x32xf32>
    %cst_216 = arith.constant dense<0.000000e+00> : vector<16x32xf32>
    %422 = tpu.matmul %420, %421, %cst_216 {dimension_numbers = #tpu.dot_dimension_numbers<[1], [0], [0], [1], [0, 0, 1, 1], [], []>} : vector<16x8xf32>, vector<8x32xf32>, vector<16x32xf32> -> vector<16x32xf32>
    %423 = arith.addf %402, %422 : vector<16x32xf32>
    %424 = vector.extract_strided_slice %380 {offsets = [0, 16], sizes = [16, 8], strides = [1, 1]} : vector<16x96xf32> to vector<16x8xf32>
    %425 = vector.extract_strided_slice %380 {offsets = [0, 48], sizes = [16, 8], strides = [1, 1]} : vector<16x96xf32> to vector<16x8xf32>
    %426 = vector.extract_strided_slice %380 {offsets = [0, 80], sizes = [16, 8], strides = [1, 1]} : vector<16x96xf32> to vector<16x8xf32>
    %cst_217 = arith.constant dense<0.000000e+00> : vector<16x16xf32>
    %427 = tpu.matmul %424, %425, %cst_217 {dimension_numbers = #tpu.dot_dimension_numbers<[1], [1], [0], [0], [0, 0, 1, 0], [], []>} : vector<16x8xf32>, vector<16x8xf32>, vector<16x16xf32> -> vector<16x16xf32>
    %cst_218 = arith.constant 0.353553385 : f32
    %428 = vector.broadcast %cst_218 : f32 to vector<16x16xf32>
    %429 = arith.mulf %427, %428 : vector<16x16xf32>
    %430 = arith.addf %429, %0 : vector<16x16xf32>
    %cst_219 = arith.constant dense<0xFF800000> : vector<16xf32>
    %431 = vector.multi_reduction <maximumf>, %430, %cst_219 [1] : vector<16x16xf32> to vector<16xf32>
    %432 = vector.shape_cast %431 : vector<16xf32> to vector<16x1xf32>
    %433 = vector.broadcast %432 : vector<16x1xf32> to vector<16x16xf32>
    %434 = arith.subf %430, %433 : vector<16x16xf32>
    %435 = math.exp %434 : vector<16x16xf32>
    %cst_220 = arith.constant dense<0.000000e+00> : vector<16xf32>
    %436 = vector.multi_reduction <add>, %435, %cst_220 [1] : vector<16x16xf32> to vector<16xf32>
    %437 = vector.shape_cast %436 : vector<16xf32> to vector<16x1xf32>
    %438 = tpu.reciprocal %437 {approx = true} : vector<16x1xf32> -> vector<16x1xf32>
    %439 = vector.broadcast %438 : vector<16x1xf32> to vector<16x16xf32>
    %440 = arith.mulf %435, %439 : vector<16x16xf32>
    %cst_221 = arith.constant dense<0.000000e+00> : vector<16x8xf32>
    %441 = tpu.matmul %440, %426, %cst_221 {dimension_numbers = #tpu.dot_dimension_numbers<[1], [0], [0], [1], [0, 0, 1, 1], [], []>} : vector<16x16xf32>, vector<16x8xf32>, vector<16x8xf32> -> vector<16x8xf32>
    %442 = vector.extract_strided_slice %359 {offsets = [16, 0], sizes = [8, 32], strides = [1, 1]} : vector<32x32xf32> to vector<8x32xf32>
    %cst_222 = arith.constant dense<0.000000e+00> : vector<16x32xf32>
    %443 = tpu.matmul %441, %442, %cst_222 {dimension_numbers = #tpu.dot_dimension_numbers<[1], [0], [0], [1], [0, 0, 1, 1], [], []>} : vector<16x8xf32>, vector<8x32xf32>, vector<16x32xf32> -> vector<16x32xf32>
    %444 = arith.addf %423, %443 : vector<16x32xf32>
    %445 = vector.extract_strided_slice %380 {offsets = [0, 24], sizes = [16, 8], strides = [1, 1]} : vector<16x96xf32> to vector<16x8xf32>
    %446 = vector.extract_strided_slice %380 {offsets = [0, 56], sizes = [16, 8], strides = [1, 1]} : vector<16x96xf32> to vector<16x8xf32>
    %447 = vector.extract_strided_slice %380 {offsets = [0, 88], sizes = [16, 8], strides = [1, 1]} : vector<16x96xf32> to vector<16x8xf32>
    %cst_223 = arith.constant dense<0.000000e+00> : vector<16x16xf32>
    %448 = tpu.matmul %445, %446, %cst_223 {dimension_numbers = #tpu.dot_dimension_numbers<[1], [1], [0], [0], [0, 0, 1, 0], [], []>} : vector<16x8xf32>, vector<16x8xf32>, vector<16x16xf32> -> vector<16x16xf32>
    %cst_224 = arith.constant 0.353553385 : f32
    %449 = vector.broadcast %cst_224 : f32 to vector<16x16xf32>
    %450 = arith.mulf %448, %449 : vector<16x16xf32>
    %451 = arith.addf %450, %0 : vector<16x16xf32>
    %cst_225 = arith.constant dense<0xFF800000> : vector<16xf32>
    %452 = vector.multi_reduction <maximumf>, %451, %cst_225 [1] : vector<16x16xf32> to vector<16xf32>
    %453 = vector.shape_cast %452 : vector<16xf32> to vector<16x1xf32>
    %454 = vector.broadcast %453 : vector<16x1xf32> to vector<16x16xf32>
    %455 = arith.subf %451, %454 : vector<16x16xf32>
    %456 = math.exp %455 : vector<16x16xf32>
    %cst_226 = arith.constant dense<0.000000e+00> : vector<16xf32>
    %457 = vector.multi_reduction <add>, %456, %cst_226 [1] : vector<16x16xf32> to vector<16xf32>
    %458 = vector.shape_cast %457 : vector<16xf32> to vector<16x1xf32>
    %459 = tpu.reciprocal %458 {approx = true} : vector<16x1xf32> -> vector<16x1xf32>
    %460 = vector.broadcast %459 : vector<16x1xf32> to vector<16x16xf32>
    %461 = arith.mulf %456, %460 : vector<16x16xf32>
    %cst_227 = arith.constant dense<0.000000e+00> : vector<16x8xf32>
    %462 = tpu.matmul %461, %447, %cst_227 {dimension_numbers = #tpu.dot_dimension_numbers<[1], [0], [0], [1], [0, 0, 1, 1], [], []>} : vector<16x16xf32>, vector<16x8xf32>, vector<16x8xf32> -> vector<16x8xf32>
    %463 = vector.extract_strided_slice %359 {offsets = [24, 0], sizes = [8, 32], strides = [1, 1]} : vector<32x32xf32> to vector<8x32xf32>
    %cst_228 = arith.constant dense<0.000000e+00> : vector<16x32xf32>
    %464 = tpu.matmul %462, %463, %cst_228 {dimension_numbers = #tpu.dot_dimension_numbers<[1], [0], [0], [1], [0, 0, 1, 1], [], []>} : vector<16x8xf32>, vector<8x32xf32>, vector<16x32xf32> -> vector<16x32xf32>
    %465 = arith.addf %444, %464 : vector<16x32xf32>
    %466 = arith.addf %353, %465 : vector<16x32xf32>
    %467 = vector.broadcast %361 : vector<1x32xf32> to vector<16x32xf32>
    %468 = arith.addf %466, %467 : vector<16x32xf32>
    %cst_229 = arith.constant dense<0.000000e+00> : vector<16xf32>
    %469 = vector.multi_reduction <add>, %468, %cst_229 [1] : vector<16x32xf32> to vector<16xf32>
    %470 = vector.shape_cast %469 : vector<16xf32> to vector<16x1xf32>
    %cst_230 = arith.constant 3.200000e+01 : f32
    %471 = vector.broadcast %cst_230 : f32 to vector<16x1xf32>
    %472 = arith.divf %470, %471 : vector<16x1xf32>
    %473 = vector.broadcast %472 : vector<16x1xf32> to vector<16x32xf32>
    %474 = arith.subf %468, %473 : vector<16x32xf32>
    %475 = arith.mulf %474, %474 : vector<16x32xf32>
    %cst_231 = arith.constant dense<0.000000e+00> : vector<16xf32>
    %476 = vector.multi_reduction <add>, %475, %cst_231 [1] : vector<16x32xf32> to vector<16xf32>
    %477 = vector.shape_cast %476 : vector<16xf32> to vector<16x1xf32>
    %cst_232 = arith.constant 3.200000e+01 : f32
    %478 = vector.broadcast %cst_232 : f32 to vector<16x1xf32>
    %479 = arith.divf %477, %478 : vector<16x1xf32>
    %480 = vector.broadcast %472 : vector<16x1xf32> to vector<16x32xf32>
    %481 = arith.subf %468, %480 : vector<16x32xf32>
    %cst_233 = arith.constant 9.99999974E-6 : f32
    %482 = vector.broadcast %cst_233 : f32 to vector<16x1xf32>
    %483 = arith.addf %479, %482 : vector<16x1xf32>
    %484 = math.rsqrt %483 : vector<16x1xf32>
    %485 = vector.broadcast %484 : vector<16x1xf32> to vector<16x32xf32>
    %486 = arith.mulf %481, %485 : vector<16x32xf32>
    %487 = vector.broadcast %371 : vector<1x32xf32> to vector<16x32xf32>
    %488 = arith.mulf %486, %487 : vector<16x32xf32>
    %489 = vector.broadcast %373 : vector<1x32xf32> to vector<16x32xf32>
    %490 = arith.addf %488, %489 : vector<16x32xf32>
    %cst_234 = arith.constant dense<0.000000e+00> : vector<16x2xf32>
    %491 = tpu.matmul %490, %363, %cst_234 {dimension_numbers = #tpu.dot_dimension_numbers<[1], [0], [0], [1], [0, 0, 1, 1], [], []>} : vector<16x32xf32>, vector<32x2xf32>, vector<16x2xf32> -> vector<16x2xf32>
    %492 = vector.broadcast %365 : vector<1x2xf32> to vector<16x2xf32>
    %493 = arith.addf %491, %492 : vector<16x2xf32>
    %cst_235 = arith.constant 0.000000e+00 : f32
    %494 = vector.broadcast %cst_235 : f32 to vector<16x2xf32>
    %495 = arith.cmpf oge, %493, %494 : vector<16x2xf32>
    %cst_236 = arith.constant 0.00999999977 : f32
    %496 = vector.broadcast %cst_236 : f32 to vector<16x2xf32>
    %497 = arith.mulf %496, %493 : vector<16x2xf32>
    %498 = arith.select %495, %493, %497 : vector<16x2xi1>, vector<16x2xf32>
    %cst_237 = arith.constant dense<0.000000e+00> : vector<16x32xf32>
    %499 = tpu.matmul %498, %367, %cst_237 {dimension_numbers = #tpu.dot_dimension_numbers<[1], [0], [0], [1], [0, 0, 1, 1], [], []>} : vector<16x2xf32>, vector<2x32xf32>, vector<16x32xf32> -> vector<16x32xf32>
    %500 = vector.broadcast %369 : vector<1x32xf32> to vector<16x32xf32>
    %501 = arith.addf %499, %500 : vector<16x32xf32>
    %502 = arith.addf %490, %501 : vector<16x32xf32>
    %cst_238 = arith.constant dense<0.000000e+00> : vector<16xf32>
    %503 = vector.multi_reduction <add>, %502, %cst_238 [1] : vector<16x32xf32> to vector<16xf32>
    %504 = vector.shape_cast %503 : vector<16xf32> to vector<16x1xf32>
    %cst_239 = arith.constant 3.200000e+01 : f32
    %505 = vector.broadcast %cst_239 : f32 to vector<16x1xf32>
    %506 = arith.divf %504, %505 : vector<16x1xf32>
    %507 = vector.broadcast %506 : vector<16x1xf32> to vector<16x32xf32>
    %508 = arith.subf %502, %507 : vector<16x32xf32>
    %509 = arith.mulf %508, %508 : vector<16x32xf32>
    %cst_240 = arith.constant dense<0.000000e+00> : vector<16xf32>
    %510 = vector.multi_reduction <add>, %509, %cst_240 [1] : vector<16x32xf32> to vector<16xf32>
    %511 = vector.shape_cast %510 : vector<16xf32> to vector<16x1xf32>
    %cst_241 = arith.constant 3.200000e+01 : f32
    %512 = vector.broadcast %cst_241 : f32 to vector<16x1xf32>
    %513 = arith.divf %511, %512 : vector<16x1xf32>
    %514 = vector.broadcast %506 : vector<16x1xf32> to vector<16x32xf32>
    %515 = arith.subf %502, %514 : vector<16x32xf32>
    %cst_242 = arith.constant 9.99999974E-6 : f32
    %516 = vector.broadcast %cst_242 : f32 to vector<16x1xf32>
    %517 = arith.addf %513, %516 : vector<16x1xf32>
    %518 = math.rsqrt %517 : vector<16x1xf32>
    %519 = vector.broadcast %518 : vector<16x1xf32> to vector<16x32xf32>
    %520 = arith.mulf %515, %519 : vector<16x32xf32>
    %521 = vector.broadcast %375 : vector<1x32xf32> to vector<16x32xf32>
    %522 = arith.mulf %520, %521 : vector<16x32xf32>
    %523 = vector.broadcast %377 : vector<1x32xf32> to vector<16x32xf32>
    %524 = arith.addf %522, %523 : vector<16x32xf32>
    %c1_243 = arith.constant 1 : index
    %c0_244 = arith.constant 0 : index
    %c0_245 = arith.constant 0 : index
    %525 = vector.load %arg17[%c1_243, %c0_244, %c0_245] : memref<2x32x96xf32, #tpu.memory_space<vmem>>, vector<1x32x96xf32>
    %526 = vector.shape_cast %525 : vector<1x32x96xf32> to vector<32x96xf32>
    %c1_246 = arith.constant 1 : index
    %c0_247 = arith.constant 0 : index
    %c0_248 = arith.constant 0 : index
    %527 = vector.load %arg18[%c1_246, %c0_247, %c0_248] : memref<2x1x96xf32, #tpu.memory_space<vmem>>, vector<1x1x96xf32>
    %528 = vector.shape_cast %527 : vector<1x1x96xf32> to vector<1x96xf32>
    %c1_249 = arith.constant 1 : index
    %c0_250 = arith.constant 0 : index
    %c0_251 = arith.constant 0 : index
    %529 = vector.load %arg19[%c1_249, %c0_250, %c0_251] : memref<2x32x32xf32, #tpu.memory_space<vmem>>, vector<1x32x32xf32>
    %530 = vector.shape_cast %529 : vector<1x32x32xf32> to vector<32x32xf32>
    %c1_252 = arith.constant 1 : index
    %c0_253 = arith.constant 0 : index
    %c0_254 = arith.constant 0 : index
    %531 = vector.load %arg20[%c1_252, %c0_253, %c0_254] : memref<2x1x32xf32, #tpu.memory_space<vmem>>, vector<1x1x32xf32>
    %532 = vector.shape_cast %531 : vector<1x1x32xf32> to vector<1x32xf32>
    %c1_255 = arith.constant 1 : index
    %c0_256 = arith.constant 0 : index
    %c0_257 = arith.constant 0 : index
    %533 = vector.load %arg21[%c1_255, %c0_256, %c0_257] : memref<2x32x2xf32, #tpu.memory_space<vmem>>, vector<1x32x2xf32>
    %534 = vector.shape_cast %533 : vector<1x32x2xf32> to vector<32x2xf32>
    %c1_258 = arith.constant 1 : index
    %c0_259 = arith.constant 0 : index
    %c0_260 = arith.constant 0 : index
    %535 = vector.load %arg22[%c1_258, %c0_259, %c0_260] : memref<2x1x2xf32, #tpu.memory_space<vmem>>, vector<1x1x2xf32>
    %536 = vector.shape_cast %535 : vector<1x1x2xf32> to vector<1x2xf32>
    %c1_261 = arith.constant 1 : index
    %c0_262 = arith.constant 0 : index
    %c0_263 = arith.constant 0 : index
    %537 = vector.load %arg23[%c1_261, %c0_262, %c0_263] : memref<2x2x32xf32, #tpu.memory_space<vmem>>, vector<1x2x32xf32>
    %538 = vector.shape_cast %537 : vector<1x2x32xf32> to vector<2x32xf32>
    %c1_264 = arith.constant 1 : index
    %c0_265 = arith.constant 0 : index
    %c0_266 = arith.constant 0 : index
    %539 = vector.load %arg24[%c1_264, %c0_265, %c0_266] : memref<2x1x32xf32, #tpu.memory_space<vmem>>, vector<1x1x32xf32>
    %540 = vector.shape_cast %539 : vector<1x1x32xf32> to vector<1x32xf32>
    %c1_267 = arith.constant 1 : index
    %c0_268 = arith.constant 0 : index
    %c0_269 = arith.constant 0 : index
    %541 = vector.load %arg25[%c1_267, %c0_268, %c0_269] : memref<2x1x32xf32, #tpu.memory_space<vmem>>, vector<1x1x32xf32>
    %542 = vector.shape_cast %541 : vector<1x1x32xf32> to vector<1x32xf32>
    %c1_270 = arith.constant 1 : index
    %c0_271 = arith.constant 0 : index
    %c0_272 = arith.constant 0 : index
    %543 = vector.load %arg26[%c1_270, %c0_271, %c0_272] : memref<2x1x32xf32, #tpu.memory_space<vmem>>, vector<1x1x32xf32>
    %544 = vector.shape_cast %543 : vector<1x1x32xf32> to vector<1x32xf32>
    %c1_273 = arith.constant 1 : index
    %c0_274 = arith.constant 0 : index
    %c0_275 = arith.constant 0 : index
    %545 = vector.load %arg27[%c1_273, %c0_274, %c0_275] : memref<2x1x32xf32, #tpu.memory_space<vmem>>, vector<1x1x32xf32>
    %546 = vector.shape_cast %545 : vector<1x1x32xf32> to vector<1x32xf32>
    %c1_276 = arith.constant 1 : index
    %c0_277 = arith.constant 0 : index
    %c0_278 = arith.constant 0 : index
    %547 = vector.load %arg28[%c1_276, %c0_277, %c0_278] : memref<2x1x32xf32, #tpu.memory_space<vmem>>, vector<1x1x32xf32>
    %548 = vector.shape_cast %547 : vector<1x1x32xf32> to vector<1x32xf32>
    %cst_279 = arith.constant dense<0.000000e+00> : vector<16x96xf32>
    %549 = tpu.matmul %524, %526, %cst_279 {dimension_numbers = #tpu.dot_dimension_numbers<[1], [0], [0], [1], [0, 0, 1, 1], [], []>} : vector<16x32xf32>, vector<32x96xf32>, vector<16x96xf32> -> vector<16x96xf32>
    %550 = vector.broadcast %528 : vector<1x96xf32> to vector<16x96xf32>
    %551 = arith.addf %549, %550 : vector<16x96xf32>
    %cst_280 = arith.constant 0.000000e+00 : f32
    %552 = vector.broadcast %cst_280 : f32 to vector<16x32xf32>
    %553 = vector.extract_strided_slice %551 {offsets = [0, 0], sizes = [16, 8], strides = [1, 1]} : vector<16x96xf32> to vector<16x8xf32>
    %554 = vector.extract_strided_slice %551 {offsets = [0, 32], sizes = [16, 8], strides = [1, 1]} : vector<16x96xf32> to vector<16x8xf32>
    %555 = vector.extract_strided_slice %551 {offsets = [0, 64], sizes = [16, 8], strides = [1, 1]} : vector<16x96xf32> to vector<16x8xf32>
    %cst_281 = arith.constant dense<0.000000e+00> : vector<16x16xf32>
    %556 = tpu.matmul %553, %554, %cst_281 {dimension_numbers = #tpu.dot_dimension_numbers<[1], [1], [0], [0], [0, 0, 1, 0], [], []>} : vector<16x8xf32>, vector<16x8xf32>, vector<16x16xf32> -> vector<16x16xf32>
    %cst_282 = arith.constant 0.353553385 : f32
    %557 = vector.broadcast %cst_282 : f32 to vector<16x16xf32>
    %558 = arith.mulf %556, %557 : vector<16x16xf32>
    %559 = arith.addf %558, %0 : vector<16x16xf32>
    %cst_283 = arith.constant dense<0xFF800000> : vector<16xf32>
    %560 = vector.multi_reduction <maximumf>, %559, %cst_283 [1] : vector<16x16xf32> to vector<16xf32>
    %561 = vector.shape_cast %560 : vector<16xf32> to vector<16x1xf32>
    %562 = vector.broadcast %561 : vector<16x1xf32> to vector<16x16xf32>
    %563 = arith.subf %559, %562 : vector<16x16xf32>
    %564 = math.exp %563 : vector<16x16xf32>
    %cst_284 = arith.constant dense<0.000000e+00> : vector<16xf32>
    %565 = vector.multi_reduction <add>, %564, %cst_284 [1] : vector<16x16xf32> to vector<16xf32>
    %566 = vector.shape_cast %565 : vector<16xf32> to vector<16x1xf32>
    %567 = tpu.reciprocal %566 {approx = true} : vector<16x1xf32> -> vector<16x1xf32>
    %568 = vector.broadcast %567 : vector<16x1xf32> to vector<16x16xf32>
    %569 = arith.mulf %564, %568 : vector<16x16xf32>
    %cst_285 = arith.constant dense<0.000000e+00> : vector<16x8xf32>
    %570 = tpu.matmul %569, %555, %cst_285 {dimension_numbers = #tpu.dot_dimension_numbers<[1], [0], [0], [1], [0, 0, 1, 1], [], []>} : vector<16x16xf32>, vector<16x8xf32>, vector<16x8xf32> -> vector<16x8xf32>
    %571 = vector.extract_strided_slice %530 {offsets = [0, 0], sizes = [8, 32], strides = [1, 1]} : vector<32x32xf32> to vector<8x32xf32>
    %cst_286 = arith.constant dense<0.000000e+00> : vector<16x32xf32>
    %572 = tpu.matmul %570, %571, %cst_286 {dimension_numbers = #tpu.dot_dimension_numbers<[1], [0], [0], [1], [0, 0, 1, 1], [], []>} : vector<16x8xf32>, vector<8x32xf32>, vector<16x32xf32> -> vector<16x32xf32>
    %573 = arith.addf %552, %572 : vector<16x32xf32>
    %574 = vector.extract_strided_slice %551 {offsets = [0, 8], sizes = [16, 8], strides = [1, 1]} : vector<16x96xf32> to vector<16x8xf32>
    %575 = vector.extract_strided_slice %551 {offsets = [0, 40], sizes = [16, 8], strides = [1, 1]} : vector<16x96xf32> to vector<16x8xf32>
    %576 = vector.extract_strided_slice %551 {offsets = [0, 72], sizes = [16, 8], strides = [1, 1]} : vector<16x96xf32> to vector<16x8xf32>
    %cst_287 = arith.constant dense<0.000000e+00> : vector<16x16xf32>
    %577 = tpu.matmul %574, %575, %cst_287 {dimension_numbers = #tpu.dot_dimension_numbers<[1], [1], [0], [0], [0, 0, 1, 0], [], []>} : vector<16x8xf32>, vector<16x8xf32>, vector<16x16xf32> -> vector<16x16xf32>
    %cst_288 = arith.constant 0.353553385 : f32
    %578 = vector.broadcast %cst_288 : f32 to vector<16x16xf32>
    %579 = arith.mulf %577, %578 : vector<16x16xf32>
    %580 = arith.addf %579, %0 : vector<16x16xf32>
    %cst_289 = arith.constant dense<0xFF800000> : vector<16xf32>
    %581 = vector.multi_reduction <maximumf>, %580, %cst_289 [1] : vector<16x16xf32> to vector<16xf32>
    %582 = vector.shape_cast %581 : vector<16xf32> to vector<16x1xf32>
    %583 = vector.broadcast %582 : vector<16x1xf32> to vector<16x16xf32>
    %584 = arith.subf %580, %583 : vector<16x16xf32>
    %585 = math.exp %584 : vector<16x16xf32>
    %cst_290 = arith.constant dense<0.000000e+00> : vector<16xf32>
    %586 = vector.multi_reduction <add>, %585, %cst_290 [1] : vector<16x16xf32> to vector<16xf32>
    %587 = vector.shape_cast %586 : vector<16xf32> to vector<16x1xf32>
    %588 = tpu.reciprocal %587 {approx = true} : vector<16x1xf32> -> vector<16x1xf32>
    %589 = vector.broadcast %588 : vector<16x1xf32> to vector<16x16xf32>
    %590 = arith.mulf %585, %589 : vector<16x16xf32>
    %cst_291 = arith.constant dense<0.000000e+00> : vector<16x8xf32>
    %591 = tpu.matmul %590, %576, %cst_291 {dimension_numbers = #tpu.dot_dimension_numbers<[1], [0], [0], [1], [0, 0, 1, 1], [], []>} : vector<16x16xf32>, vector<16x8xf32>, vector<16x8xf32> -> vector<16x8xf32>
    %592 = vector.extract_strided_slice %530 {offsets = [8, 0], sizes = [8, 32], strides = [1, 1]} : vector<32x32xf32> to vector<8x32xf32>
    %cst_292 = arith.constant dense<0.000000e+00> : vector<16x32xf32>
    %593 = tpu.matmul %591, %592, %cst_292 {dimension_numbers = #tpu.dot_dimension_numbers<[1], [0], [0], [1], [0, 0, 1, 1], [], []>} : vector<16x8xf32>, vector<8x32xf32>, vector<16x32xf32> -> vector<16x32xf32>
    %594 = arith.addf %573, %593 : vector<16x32xf32>
    %595 = vector.extract_strided_slice %551 {offsets = [0, 16], sizes = [16, 8], strides = [1, 1]} : vector<16x96xf32> to vector<16x8xf32>
    %596 = vector.extract_strided_slice %551 {offsets = [0, 48], sizes = [16, 8], strides = [1, 1]} : vector<16x96xf32> to vector<16x8xf32>
    %597 = vector.extract_strided_slice %551 {offsets = [0, 80], sizes = [16, 8], strides = [1, 1]} : vector<16x96xf32> to vector<16x8xf32>
    %cst_293 = arith.constant dense<0.000000e+00> : vector<16x16xf32>
    %598 = tpu.matmul %595, %596, %cst_293 {dimension_numbers = #tpu.dot_dimension_numbers<[1], [1], [0], [0], [0, 0, 1, 0], [], []>} : vector<16x8xf32>, vector<16x8xf32>, vector<16x16xf32> -> vector<16x16xf32>
    %cst_294 = arith.constant 0.353553385 : f32
    %599 = vector.broadcast %cst_294 : f32 to vector<16x16xf32>
    %600 = arith.mulf %598, %599 : vector<16x16xf32>
    %601 = arith.addf %600, %0 : vector<16x16xf32>
    %cst_295 = arith.constant dense<0xFF800000> : vector<16xf32>
    %602 = vector.multi_reduction <maximumf>, %601, %cst_295 [1] : vector<16x16xf32> to vector<16xf32>
    %603 = vector.shape_cast %602 : vector<16xf32> to vector<16x1xf32>
    %604 = vector.broadcast %603 : vector<16x1xf32> to vector<16x16xf32>
    %605 = arith.subf %601, %604 : vector<16x16xf32>
    %606 = math.exp %605 : vector<16x16xf32>
    %cst_296 = arith.constant dense<0.000000e+00> : vector<16xf32>
    %607 = vector.multi_reduction <add>, %606, %cst_296 [1] : vector<16x16xf32> to vector<16xf32>
    %608 = vector.shape_cast %607 : vector<16xf32> to vector<16x1xf32>
    %609 = tpu.reciprocal %608 {approx = true} : vector<16x1xf32> -> vector<16x1xf32>
    %610 = vector.broadcast %609 : vector<16x1xf32> to vector<16x16xf32>
    %611 = arith.mulf %606, %610 : vector<16x16xf32>
    %cst_297 = arith.constant dense<0.000000e+00> : vector<16x8xf32>
    %612 = tpu.matmul %611, %597, %cst_297 {dimension_numbers = #tpu.dot_dimension_numbers<[1], [0], [0], [1], [0, 0, 1, 1], [], []>} : vector<16x16xf32>, vector<16x8xf32>, vector<16x8xf32> -> vector<16x8xf32>
    %613 = vector.extract_strided_slice %530 {offsets = [16, 0], sizes = [8, 32], strides = [1, 1]} : vector<32x32xf32> to vector<8x32xf32>
    %cst_298 = arith.constant dense<0.000000e+00> : vector<16x32xf32>
    %614 = tpu.matmul %612, %613, %cst_298 {dimension_numbers = #tpu.dot_dimension_numbers<[1], [0], [0], [1], [0, 0, 1, 1], [], []>} : vector<16x8xf32>, vector<8x32xf32>, vector<16x32xf32> -> vector<16x32xf32>
    %615 = arith.addf %594, %614 : vector<16x32xf32>
    %616 = vector.extract_strided_slice %551 {offsets = [0, 24], sizes = [16, 8], strides = [1, 1]} : vector<16x96xf32> to vector<16x8xf32>
    %617 = vector.extract_strided_slice %551 {offsets = [0, 56], sizes = [16, 8], strides = [1, 1]} : vector<16x96xf32> to vector<16x8xf32>
    %618 = vector.extract_strided_slice %551 {offsets = [0, 88], sizes = [16, 8], strides = [1, 1]} : vector<16x96xf32> to vector<16x8xf32>
    %cst_299 = arith.constant dense<0.000000e+00> : vector<16x16xf32>
    %619 = tpu.matmul %616, %617, %cst_299 {dimension_numbers = #tpu.dot_dimension_numbers<[1], [1], [0], [0], [0, 0, 1, 0], [], []>} : vector<16x8xf32>, vector<16x8xf32>, vector<16x16xf32> -> vector<16x16xf32>
    %cst_300 = arith.constant 0.353553385 : f32
    %620 = vector.broadcast %cst_300 : f32 to vector<16x16xf32>
    %621 = arith.mulf %619, %620 : vector<16x16xf32>
    %622 = arith.addf %621, %0 : vector<16x16xf32>
    %cst_301 = arith.constant dense<0xFF800000> : vector<16xf32>
    %623 = vector.multi_reduction <maximumf>, %622, %cst_301 [1] : vector<16x16xf32> to vector<16xf32>
    %624 = vector.shape_cast %623 : vector<16xf32> to vector<16x1xf32>
    %625 = vector.broadcast %624 : vector<16x1xf32> to vector<16x16xf32>
    %626 = arith.subf %622, %625 : vector<16x16xf32>
    %627 = math.exp %626 : vector<16x16xf32>
    %cst_302 = arith.constant dense<0.000000e+00> : vector<16xf32>
    %628 = vector.multi_reduction <add>, %627, %cst_302 [1] : vector<16x16xf32> to vector<16xf32>
    %629 = vector.shape_cast %628 : vector<16xf32> to vector<16x1xf32>
    %630 = tpu.reciprocal %629 {approx = true} : vector<16x1xf32> -> vector<16x1xf32>
    %631 = vector.broadcast %630 : vector<16x1xf32> to vector<16x16xf32>
    %632 = arith.mulf %627, %631 : vector<16x16xf32>
    %cst_303 = arith.constant dense<0.000000e+00> : vector<16x8xf32>
    %633 = tpu.matmul %632, %618, %cst_303 {dimension_numbers = #tpu.dot_dimension_numbers<[1], [0], [0], [1], [0, 0, 1, 1], [], []>} : vector<16x16xf32>, vector<16x8xf32>, vector<16x8xf32> -> vector<16x8xf32>
    %634 = vector.extract_strided_slice %530 {offsets = [24, 0], sizes = [8, 32], strides = [1, 1]} : vector<32x32xf32> to vector<8x32xf32>
    %cst_304 = arith.constant dense<0.000000e+00> : vector<16x32xf32>
    %635 = tpu.matmul %633, %634, %cst_304 {dimension_numbers = #tpu.dot_dimension_numbers<[1], [0], [0], [1], [0, 0, 1, 1], [], []>} : vector<16x8xf32>, vector<8x32xf32>, vector<16x32xf32> -> vector<16x32xf32>
    %636 = arith.addf %615, %635 : vector<16x32xf32>
    %637 = arith.addf %524, %636 : vector<16x32xf32>
    %638 = vector.broadcast %532 : vector<1x32xf32> to vector<16x32xf32>
    %639 = arith.addf %637, %638 : vector<16x32xf32>
    %cst_305 = arith.constant dense<0.000000e+00> : vector<16xf32>
    %640 = vector.multi_reduction <add>, %639, %cst_305 [1] : vector<16x32xf32> to vector<16xf32>
    %641 = vector.shape_cast %640 : vector<16xf32> to vector<16x1xf32>
    %cst_306 = arith.constant 3.200000e+01 : f32
    %642 = vector.broadcast %cst_306 : f32 to vector<16x1xf32>
    %643 = arith.divf %641, %642 : vector<16x1xf32>
    %644 = vector.broadcast %643 : vector<16x1xf32> to vector<16x32xf32>
    %645 = arith.subf %639, %644 : vector<16x32xf32>
    %646 = arith.mulf %645, %645 : vector<16x32xf32>
    %cst_307 = arith.constant dense<0.000000e+00> : vector<16xf32>
    %647 = vector.multi_reduction <add>, %646, %cst_307 [1] : vector<16x32xf32> to vector<16xf32>
    %648 = vector.shape_cast %647 : vector<16xf32> to vector<16x1xf32>
    %cst_308 = arith.constant 3.200000e+01 : f32
    %649 = vector.broadcast %cst_308 : f32 to vector<16x1xf32>
    %650 = arith.divf %648, %649 : vector<16x1xf32>
    %651 = vector.broadcast %643 : vector<16x1xf32> to vector<16x32xf32>
    %652 = arith.subf %639, %651 : vector<16x32xf32>
    %cst_309 = arith.constant 9.99999974E-6 : f32
    %653 = vector.broadcast %cst_309 : f32 to vector<16x1xf32>
    %654 = arith.addf %650, %653 : vector<16x1xf32>
    %655 = math.rsqrt %654 : vector<16x1xf32>
    %656 = vector.broadcast %655 : vector<16x1xf32> to vector<16x32xf32>
    %657 = arith.mulf %652, %656 : vector<16x32xf32>
    %658 = vector.broadcast %542 : vector<1x32xf32> to vector<16x32xf32>
    %659 = arith.mulf %657, %658 : vector<16x32xf32>
    %660 = vector.broadcast %544 : vector<1x32xf32> to vector<16x32xf32>
    %661 = arith.addf %659, %660 : vector<16x32xf32>
    %cst_310 = arith.constant dense<0.000000e+00> : vector<16x2xf32>
    %662 = tpu.matmul %661, %534, %cst_310 {dimension_numbers = #tpu.dot_dimension_numbers<[1], [0], [0], [1], [0, 0, 1, 1], [], []>} : vector<16x32xf32>, vector<32x2xf32>, vector<16x2xf32> -> vector<16x2xf32>
    %663 = vector.broadcast %536 : vector<1x2xf32> to vector<16x2xf32>
    %664 = arith.addf %662, %663 : vector<16x2xf32>
    %cst_311 = arith.constant 0.000000e+00 : f32
    %665 = vector.broadcast %cst_311 : f32 to vector<16x2xf32>
    %666 = arith.cmpf oge, %664, %665 : vector<16x2xf32>
    %cst_312 = arith.constant 0.00999999977 : f32
    %667 = vector.broadcast %cst_312 : f32 to vector<16x2xf32>
    %668 = arith.mulf %667, %664 : vector<16x2xf32>
    %669 = arith.select %666, %664, %668 : vector<16x2xi1>, vector<16x2xf32>
    %cst_313 = arith.constant dense<0.000000e+00> : vector<16x32xf32>
    %670 = tpu.matmul %669, %538, %cst_313 {dimension_numbers = #tpu.dot_dimension_numbers<[1], [0], [0], [1], [0, 0, 1, 1], [], []>} : vector<16x2xf32>, vector<2x32xf32>, vector<16x32xf32> -> vector<16x32xf32>
    %671 = vector.broadcast %540 : vector<1x32xf32> to vector<16x32xf32>
    %672 = arith.addf %670, %671 : vector<16x32xf32>
    %673 = arith.addf %661, %672 : vector<16x32xf32>
    %cst_314 = arith.constant dense<0.000000e+00> : vector<16xf32>
    %674 = vector.multi_reduction <add>, %673, %cst_314 [1] : vector<16x32xf32> to vector<16xf32>
    %675 = vector.shape_cast %674 : vector<16xf32> to vector<16x1xf32>
    %cst_315 = arith.constant 3.200000e+01 : f32
    %676 = vector.broadcast %cst_315 : f32 to vector<16x1xf32>
    %677 = arith.divf %675, %676 : vector<16x1xf32>
    %678 = vector.broadcast %677 : vector<16x1xf32> to vector<16x32xf32>
    %679 = arith.subf %673, %678 : vector<16x32xf32>
    %680 = arith.mulf %679, %679 : vector<16x32xf32>
    %cst_316 = arith.constant dense<0.000000e+00> : vector<16xf32>
    %681 = vector.multi_reduction <add>, %680, %cst_316 [1] : vector<16x32xf32> to vector<16xf32>
    %682 = vector.shape_cast %681 : vector<16xf32> to vector<16x1xf32>
    %cst_317 = arith.constant 3.200000e+01 : f32
    %683 = vector.broadcast %cst_317 : f32 to vector<16x1xf32>
    %684 = arith.divf %682, %683 : vector<16x1xf32>
    %685 = vector.broadcast %677 : vector<16x1xf32> to vector<16x32xf32>
    %686 = arith.subf %673, %685 : vector<16x32xf32>
    %cst_318 = arith.constant 9.99999974E-6 : f32
    %687 = vector.broadcast %cst_318 : f32 to vector<16x1xf32>
    %688 = arith.addf %684, %687 : vector<16x1xf32>
    %689 = math.rsqrt %688 : vector<16x1xf32>
    %690 = vector.broadcast %689 : vector<16x1xf32> to vector<16x32xf32>
    %691 = arith.mulf %686, %690 : vector<16x32xf32>
    %692 = vector.broadcast %546 : vector<1x32xf32> to vector<16x32xf32>
    %693 = arith.mulf %691, %692 : vector<16x32xf32>
    %694 = vector.broadcast %548 : vector<1x32xf32> to vector<16x32xf32>
    %695 = arith.addf %693, %694 : vector<16x32xf32>
    %c0_319 = arith.constant 0 : index
    %c0_320 = arith.constant 0 : index
    %696 = vector.load %arg4[%c0_319, %c0_320] : memref<2x16xf32, #tpu.memory_space<vmem>>, vector<2x16xf32>
    %cst_321 = arith.constant dense<0.000000e+00> : vector<2x32xf32>
    %697 = tpu.matmul %696, %695, %cst_321 {dimension_numbers = #tpu.dot_dimension_numbers<[1], [0], [0], [1], [0, 0, 1, 1], [], []>} : vector<2x16xf32>, vector<16x32xf32>, vector<2x32xf32> -> vector<2x32xf32>
    %c0_322 = arith.constant 0 : index
    %c0_323 = arith.constant 0 : index
    %698 = vector.load %arg31[%c0_322, %c0_323] : memref<32x10xf32, #tpu.memory_space<vmem>>, vector<32x10xf32>
    %cst_324 = arith.constant dense<0.000000e+00> : vector<2x10xf32>
    %699 = tpu.matmul %697, %698, %cst_324 {dimension_numbers = #tpu.dot_dimension_numbers<[1], [0], [0], [1], [0, 0, 1, 1], [], []>} : vector<2x32xf32>, vector<32x10xf32>, vector<2x10xf32> -> vector<2x10xf32>
    %c0_325 = arith.constant 0 : index
    %c0_326 = arith.constant 0 : index
    %700 = vector.load %arg32[%c0_325, %c0_326] : memref<1x10xf32, #tpu.memory_space<vmem>>, vector<1x10xf32>
    %701 = vector.broadcast %700 : vector<1x10xf32> to vector<2x10xf32>
    %702 = arith.addf %699, %701 : vector<2x10xf32>
    %c0_327 = arith.constant 0 : index
    %c0_328 = arith.constant 0 : index
    %703 = vector.load %arg35[%c0_327, %c0_328] : memref<2x10xf32, #tpu.memory_space<vmem>>, vector<2x10xf32>
    tpu.vector_store %arg35[%c0_327, %c0_328], %702 {strides = array<i32>} : memref<2x10xf32, #tpu.memory_space<vmem>>, vector<2x10xf32>,
    return
  }
}

</mosaic_0001>

<bundles_post_ra>
// kernel: agent_forward.1
= control target key start
LH: loop header
LB: loop body
LE: loop exit
PB: predicated region body
PF: predicated region fallthrough
CT: control target
= control target key end

     0   :  { %s7936_s6 = smov 1   ;;  %s7937_s10 = smov 2   ;;  %s8905_s0 = inlined_call_operand.smem [shape: u32[36], index: -1, kind: input, shape index: {}] }
   0x1   :  { %s7994_s5 = sld [smem:[%s8905_s0]]   ;;  %s7938_s14 = smov 3  }
   0x2   :  { %s7999_s9 = sld [smem:[%s8905_s0 + %s7936_s6]]   ;;  %s7939_s18 = smov 4  }
   0x3   :  { %s8004_s13 = sld [smem:[%s8905_s0 + %s7937_s10]]   ;;  %s7940_s22 = smov 5  }
   0x4   :  { %s8009_s17 = sld [smem:[%s8905_s0 + %s7938_s14]]   ;;  %s7941_s26 = smov 6  }
   0x5   :  { %s8014_s21 = sld [smem:[%s8905_s0 + %s7939_s18]]   ;;  %s7942_s30 = smov 7  }
   0x6   :  { %s8019_s25 = sld [smem:[%s8905_s0 + %s7940_s22]]   ;;  %s7943_s4 = smov 8  }
   0x7   :  { %s8024_s29 = sld [smem:[%s8905_s0 + %s7941_s26]]   ;;  %s7944_s10 = smov 9  }
   0x8   :  { %8921 = sst [smem:[#allocation8_spill]] %s7999_s9  ;;  %s7945_s15 = smov 10  }
   0x9   :  { %s8029_s3 = sld [smem:[%s8905_s0 + %s7942_s30]]   ;;  %s7946_s20 = smov 11  }
   0xa   :  { %8922 = sst [smem:[#allocation9_spill]] %s8009_s17  ;;  %s7947_s26 = smov 12  }
   0xb   :  { %8923 = sst [smem:[#allocation10_spill]] %s8014_s21  ;;  %s7948_s1 = smov 13  }
   0xc   :  { %s8034_s8 = sld [smem:[%s8905_s0 + %s7943_s4]]   ;;  %s7949_s7 = smov 14  }
   0xd   :  { %s8039_s14 = sld [smem:[%s8905_s0 + %s7944_s10]]   ;;  %s7951_s22 = smov 16  }
   0xe   :  { %s8044_s19 = sld [smem:[%s8905_s0 + %s7945_s15]]   ;;  %s7950_s15 = smov 15  }
   0xf   :  { %s8049_s24 = sld [smem:[%s8905_s0 + %s7946_s20]]   ;;  %s7952_s28 = smov 17  }
  0x10   :  { %s8054_s30 = sld [smem:[%s8905_s0 + %s7947_s26]]  }
  0x11   :  { %s8059_s6 = sld [smem:[%s8905_s0 + %s7948_s1]]  }
  0x12   :  { %s8064_s12 = sld [smem:[%s8905_s0 + %s7949_s7]]   ;;  %s7953_s7 = smov 18  }
  0x13   :  { %s8069_s20 = sld [smem:[%s8905_s0 + %s7950_s15]]   ;;  %s7954_s15 = smov 19  }
  0x14   :  { %s8074_s27 = sld [smem:[%s8905_s0 + %s7951_s22]]   ;;  %s7955_s22 = smov 20  }
  0x15   :  { %s8079_s4 = sld [smem:[%s8905_s0 + %s7952_s28]]   ;;  %s7956_s28 = smov 21  }
  0x16   :  { %s8084_s21 = sld [smem:[%s8905_s0 + %s7953_s7]]   ;;  %s7957_s7 = smov 22  }
  0x17   :  { %s8089_s17 = sld [smem:[%s8905_s0 + %s7954_s15]]   ;;  %s7958_s15 = smov 23  }
  0x18   :  { %s8094_s9 = sld [smem:[%s8905_s0 + %s7955_s22]]   ;;  %s7959_s22 = smov 24  }
  0x1b   :  { %8924 = sst [smem:[#allocation11_spill]] %s8079_s4 }
  0x1c   :  { %8925 = sst [smem:[#allocation12_spill]] %s8084_s21 }
  0x1d   :  { %8926 = sst [smem:[#allocation13_spill]] %s8089_s17 }
  0x1e   :  { %8927 = sst [smem:[#allocation14_spill]] %s8094_s9 }
  0x1f   :  { %s8099_s4 = sld [smem:[%s8905_s0 + %s7956_s28]]   ;;  %s7960_s28 = smov 25  }
  0x20   :  { %s8104_s21 = sld [smem:[%s8905_s0 + %s7957_s7]]   ;;  %s7961_s7 = smov 26  }
  0x21   :  { %s8109_s17 = sld [smem:[%s8905_s0 + %s7958_s15]]   ;;  %s7962_s15 = smov 27  }
  0x22   :  { %s8114_s9 = sld [smem:[%s8905_s0 + %s7959_s22]]   ;;  %s7963_s22 = smov 28  }
  0x25   :  { %8928 = sst [smem:[#allocation15_spill]] %s8099_s4 }
  0x26   :  { %8929 = sst [smem:[#allocation16_spill]] %s8104_s21 }
  0x27   :  { %8930 = sst [smem:[#allocation17_spill]] %s8109_s17 }
  0x28   :  { %8931 = sst [smem:[#allocation18_spill]] %s8114_s9 }
  0x29   :  { %s8119_s4 = sld [smem:[%s8905_s0 + %s7960_s28]]   ;;  %s7964_s28 = smov 29  }
  0x2a   :  { %s8124_s21 = sld [smem:[%s8905_s0 + %s7961_s7]]   ;;  %s7965_s7 = smov 30  }
  0x2b   :  { %s8129_s17 = sld [smem:[%s8905_s0 + %s7962_s15]]   ;;  %s7966_s15 = smov 31  }
  0x2c   :  { %s8134_s9 = sld [smem:[%s8905_s0 + %s7963_s22]]   ;;  %s7967_s22 = smov 32  }
  0x2f   :  { %8932 = sst [smem:[#allocation19_spill]] %s8119_s4 }
  0x30   :  { %8933 = sst [smem:[#allocation20_spill]] %s8124_s21 }
  0x31   :  { %8934 = sst [smem:[#allocation21_spill]] %s8129_s17 }
  0x32   :  { %8935 = sst [smem:[#allocation22_spill]] %s8134_s9 }
  0x33   :  { %s8139_s4 = sld [smem:[%s8905_s0 + %s7964_s28]]   ;;  %s7968_s28 = smov 33  }
  0x34   :  { %s8144_s21 = sld [smem:[%s8905_s0 + %s7965_s7]]   ;;  %s7969_s7 = smov 34  }
  0x35   :  { %s8149_s17 = sld [smem:[%s8905_s0 + %s7966_s15]]   ;;  %s7970_s15 = smov 35  }
  0x36   :  { %s8154_s9 = sld [smem:[%s8905_s0 + %s7967_s22]]  }
  0x39   :  { %8936 = sst [smem:[#allocation23_spill]] %s8139_s4 }
  0x3a   :  { %8937 = sst [smem:[#allocation24_spill]] %s8144_s21 }
  0x3b   :  { %8938 = sst [smem:[#allocation25_spill]] %s8149_s17 }
  0x3c   :  { %s8159_s4 = sld [smem:[%s8905_s0 + %s7968_s28]]  }
  0x3d   :  { %s8164_s21 = sld [smem:[%s8905_s0 + %s7969_s7]]  }
  0x3e   :  { %s8169_s17 = sld [smem:[%s8905_s0 + %s7970_s15]]  }
  0x3f   :  { %77 = vsyncpa [#allocation3], 0  ;;  %v152_v0 = vld [vmem:[%s8019_s25 + $0x18] sm:$0xff]  ;;  %v151_v1 = vld [vmem:[%s8019_s25 + $0x10] sm:$0xff]  ;;  %vm183_vm0 = vcmask 261120  }
  0x40   :  { %7202 = vmatprep.subr.mxu0 %v152_v0  ;;  %v8174_v2 = vld [vmem:[%s7994_s5] sm:$0xff]  ;;  %v150_v3 = vld [vmem:[%s8019_s25 + $0x8] sm:$0xff] }
  0x41   :  { %7203 = vmatpush3.msra.mxu0 %v152_v0  ;;  %7210 = vmatprep.mubr.msk.f32.mxu0 %vm183_vm0, %v8174_v2 }
  0x42   :  { %78 = vsyncpa [#allocation5], 0  ;;  %7204 = vmatprep.subr.mxu0 %v151_v1  ;;  %v149_v4 = vld [vmem:[%s8019_s25] sm:$0xff]  ;;  %v8181_v5 = vld [vmem:[%s7994_s5 + $0x8] sm:$0xff]  ;;  %vm271_vm1 = vcmask 64512   ;;  %s7971_s0 = smov 96  }
  0x43   :  { %7205 = vmatpush3.msra.mxu0 %v151_v1  ;;  %v6695_v6 = vld [vmem:[%s8024_s29] ss:$0 sm:$0xff]  ;;  %v8206_v18 = vld [vmem:[%s8004_s13 + $0x8] sm:$0xff]  ;;  %vm359_vm2 = vcmask 130048   ;;  %s7972_s5 = smov 64   ;;  %s7973_s22 = smov 120  }
  0x44   :  { %7206 = vmatprep.subr.mxu0 %v150_v3  ;;  %v8203_v15 = vld [vmem:[%s8004_s13] sm:$0xff]  ;;  %s7974_s23 = smov 88   ;;  %s7975_s26 = smov 56   ;;  %vm1561_vm5 = vcmask 523264   ;;  %vm7983_vm8 = vmmov 0   ;;  %vm3392_vm9 = vcmask 320512  }
  0x45   :  { %7207 = vmatpush3.msra.mxu0 %v150_v3  ;;  %v154_v45 = vld [vmem:[%s8029_s3] sm:$0xff]  ;;  %s7976_s28 = smov 112   ;;  %s7977_s1 = smov 72   ;;  %vm4804_vm10 = vcmask 1041408   ;;  %vm4797_vm13 = vcmask 15360  }
  0x46   :  { %7208 = vmatprep.subr.mxu0 %v149_v4  ;;  %s7978_s2 = smov 104   ;;  %s7979_s7 = smov 80  }
  0x47   :  { %7209 = vmatpush3.msra.mxu0 %v149_v4  ;;  %s7980_s10 = smov 48   ;;  %s7981_s11 = smov 40  }
  0x48   :  { %7211 = vmatmul.mubr.msk.f32.vlgmr.msra.gmra.mxu0 %vm183_vm0, %v8181_v5  ;;  %s8952_s15 = sld [smem:[#allocation18_spill]] }
  0x49   :  { %s8953_s16 = sld [smem:[#allocation21_spill]] }
  0x4a   :  { %s8954_s18 = sld [smem:[#allocation22_spill]] }
 0x108   :  { %v7212_v7 = vpop.f32.mrf.mxu0 }
 0x109   :  { %v8186_v8 = vadd.f32 %v7212_v7, %v6695_v6 }
 0x10a   :  { %v256_v9 = vpop.f32.mrf.mxu0 }
 0x10b   :  { %v8188_v10 = vadd.f32 %v6695_v6, %v256_v9  ;;  %269 = vrot.lane.b32.xlu0 %v8186_v8, %s7971_s0  ;;  %v155_v9 = vld [vmem:[%s8029_s3 + $0x8] sm:$0xff] }
 0x10d   :  { %7217 = vmatprep.mubr.msk.f32.mxu1 %vm271_vm1, %v8188_v10 }
 0x10f   :  { %267 = vrot.lane.b32.xlu0 %v8188_v10, %s7971_s0 }
 0x17d   :  { %v270_v11 = vpop.permute.xlu0 %269 }
 0x17e   :  { %7213 = vmatprep.subr.msk.mxu1 %vm271_vm1, %v270_v11 }
 0x17f   :  { %7214 = vmatpush3.xpose.msk.msra.mxu1 %vm271_vm1, %v270_v11 }
 0x181   :  { %v268_v12 = vpop.permute.xlu0 %267 }
 0x182   :  { %7215 = vmatprep.subr.msk.mxu1 %vm271_vm1, %v268_v12 }
 0x183   :  { %7216 = vmatpush3.xpose.msk.msra.mxu1 %vm271_vm1, %v268_v12 }
 0x186   :  { %7218 = vmatmul.mubr.msk.f32.vlgmr.msra.gmra.mxu1 %vm271_vm1, %v8186_v8 }
 0x246   :  { %v7219_v13 = vpop.f32.mrf.mxu1 }
 0x247   :  { %v356_v16 = vmul.f32 0.35355338, %v7219_v13 }
 0x248   :  { %v346_v14 = vpop.f32.mrf.mxu1 }
 0x249   :  { %v355_v17 = vmul.f32 0.35355338, %v346_v14  ;;  %v358_v21 = vadd.f32 %v356_v16, %v8206_v18 }
 0x24b   :  { %v357_v19 = vadd.f32 %v355_v17, %v8203_v15  ;;  %v363_v22 = vsel %vm359_vm2, %v358_v21, -inf }
 0x24d   :  { %v360_v20 = vsel %vm359_vm2, %v357_v19, -inf }
 0x24e   :  { %361 = vmax.xlane.f32.xlu1 %v360_v20 }
 0x252   :  { %364 = vmax.xlane.f32.xlu1 %v363_v22 }
 0x2d7   :  { %v362_v23 = vpop.xlane.xlu1 %361 }
 0x2d8   :  { %v366_v24 = vsub.f32 %v357_v19, %v362_v23 }
 0x2da   :  { %v368_v25 = vmul.f32 1.442695, %v366_v24 }
 0x2db   :  { %v365_v26 = vpop.xlane.xlu1 %364 }
 0x2dc   :  { %7728 = vpow2.f32 %v368_v25  ;;  %v367_v27 = vsub.f32 %v358_v21, %v365_v26 }
 0x2de   :  { %v370_v28 = vmul.f32 1.442695, %v367_v27 }
 0x2e0   :  { %7730 = vpow2.f32 %v370_v28 }
 0x2e9   :  { %v7729_v29 = vpop.eup %7728 }
 0x2ea   :  { %v372_v30 = vsel %vm359_vm2, %v7729_v29, 0.0 }
 0x2eb   :  { %373 = vadd.xlane.f32.xlu0 %v372_v30 }
 0x2ed   :  { %v7731_v31 = vpop.eup %7730 }
 0x2ee   :  { %v375_v32 = vsel %vm359_vm2, %v7731_v31, 0.0 }
 0x2ef   :  { %376 = vadd.xlane.f32.xlu1 %v375_v32 }
 0x300   :  { %384 = vrot.lane.b32.xlu1 %v8186_v8, %s7972_s5 }
 0x301   :  { %469 = vrot.lane.b32.xlu0 %v8188_v10, %s7973_s22 }
 0x304   :  { %382 = vrot.lane.b32.xlu1 %v8188_v10, %s7972_s5 }
 0x308   :  { %475 = vrot.lane.b32.xlu1 %v8186_v8, %s7974_s23 }
 0x30c   :  { %473 = vrot.lane.b32.xlu1 %v8188_v10, %s7974_s23 }
 0x310   :  { %471 = vrot.lane.b32.xlu1 %v8186_v8, %s7973_s22 }
 0x374   :  { %v374_v33 = vpop.xlane.xlu0 %373 }
 0x375   :  { %7732 = vrcp.f32 %v374_v33 }
 0x378   :  { %v377_v34 = vpop.xlane.xlu1 %376  ;;  %v470_v43 = vpop.permute.xlu0 %469 }
 0x379   :  { %7734 = vrcp.f32 %v377_v34 }
 0x37c   :  { %v385_v35 = vpop.permute.xlu1 %384 }
 0x37d   :  { %7220 = vmatprep.subr.mxu1 %v385_v35 }
 0x37e   :  { %7221 = vmatpush3.msra.mxu1 %v385_v35 }
 0x380   :  { %v383_v36 = vpop.permute.xlu1 %382 }
 0x381   :  { %7222 = vmatprep.subr.mxu1 %v383_v36 }
 0x382   :  { %v7733_v37 = vpop.eup %7732  ;;  %7223 = vmatpush3.msra.mxu1 %v383_v36 }
 0x383   :  { %v380_v38 = vmul.f32 %v7733_v37, %v7729_v29 }
 0x384   :  { %v476_v39 = vpop.permute.xlu1 %475 }
 0x385   :  { %7224 = vmatprep.mubr.msk.f32.mxu1 %vm359_vm2, %v380_v38  ;;  %7227 = vmatprep.subr.msk.mxu1 %vm271_vm1, %v476_v39 }
 0x386   :  { %v7735_v40 = vpop.eup %7734 }
 0x387   :  { %v381_v41 = vmul.f32 %v7735_v40, %v7731_v31 }
 0x388   :  { %v474_v42 = vpop.permute.xlu1 %473 }
 0x389   :  { %7225 = vmatmul.mubr.msk.f32.vlgmr.msra.gmra.mxu1 %vm359_vm2, %v381_v41 }
 0x38a   :  { %7228 = vmatpush3.xpose.msk.msra.mxu1 %vm271_vm1, %v476_v39  ;;  %7231 = vmatprep.mubr.msk.f32.mxu1 %vm271_vm1, %v470_v43 }
 0x38b   :  { %7229 = vmatprep.subr.msk.mxu1 %vm271_vm1, %v474_v42 }
 0x38c   :  { %v472_v44 = vpop.permute.xlu1 %471 }
 0x38e   :  { %7230 = vmatpush3.xpose.msk.msra.mxu1 %vm271_vm1, %v474_v42 }
 0x38f   :  { %7246 = vmatprep.subr.mxu1 %v154_v45 }
 0x391   :  { %7232 = vmatmul.mubr.msk.f32.vlgmr.msra.gmra.mxu1 %vm271_vm1, %v472_v44 }
 0x392   :  { %7247 = vmatpush3.msra.mxu1 %v154_v45 }
 0x449   :  { %v7226_v46 = vpop.f32.mrf.mxu1 }
 0x44b   :  { %v460_v47 = vpop.f32.mrf.mxu1 }
 0x44c   :  { %7248 = vmatprep.mubr.msk.f32.mxu1 %vm271_vm1, %v460_v47 }
 0x44d   :  { %7249 = vmatmul.mubr.msk.f32.vlgmr.msra.gmra.mxu1 %vm271_vm1, %v7226_v46 }
 0x451   :  { %v7233_v48 = vpop.f32.mrf.mxu1 }
 0x452   :  { %v561_v49 = vmul.f32 0.35355338, %v7233_v48 }
 0x453   :  { %v551_v50 = vpop.f32.mrf.mxu1 }
 0x454   :  { %v560_v51 = vmul.f32 0.35355338, %v551_v50  ;;  %v563_v52 = vadd.f32 %v561_v49, %v8206_v18 }
 0x456   :  { %v567_v53 = vsel %vm359_vm2, %v563_v52, -inf  ;;  %v562_v54 = vadd.f32 %v560_v51, %v8203_v15 }
 0x457   :  { %568 = vmax.xlane.f32.xlu0 %v567_v53 }
 0x458   :  { %v564_v55 = vsel %vm359_vm2, %v562_v54, -inf }
 0x459   :  { %565 = vmax.xlane.f32.xlu1 %v564_v55 }
 0x46d   :  { %586 = vrot.lane.b32.xlu0 %v8188_v10, %s7975_s26 }
 0x471   :  { %835 = vrot.lane.b32.xlu0 %v8188_v10, %s7976_s28 }
 0x475   :  { %1128 = vrot.lane.b32.xlu0 %v8186_v8, %s7977_s1 }
 0x479   :  { %1122 = vrot.lane.b32.xlu0 %v8188_v10, %s7978_s2 }
 0x4e0   :  { %v569_v56 = vpop.xlane.xlu0 %568 }
 0x4e1   :  { %v571_v57 = vsub.f32 %v563_v52, %v569_v56 }
 0x4e2   :  { %v566_v58 = vpop.xlane.xlu1 %565 }
 0x4e3   :  { %v574_v59 = vmul.f32 1.442695, %v571_v57  ;;  %v570_v60 = vsub.f32 %v562_v54, %v566_v58 }
 0x4e4   :  { %v587_v7 = vpop.permute.xlu0 %586 }
 0x4e5   :  { %7736 = vpow2.f32 %v574_v59  ;;  %v572_v61 = vmul.f32 1.442695, %v570_v60 }
 0x4e7   :  { %7738 = vpow2.f32 %v572_v61 }
 0x4e8   :  { %v836_v17 = vpop.permute.xlu0 %835 }
 0x4ec   :  { %v1129_v22 = vpop.permute.xlu0 %1128 }
 0x4f0   :  { %v1123_v24 = vpop.permute.xlu0 %1122 }
 0x4f2   :  { %v7737_v62 = vpop.eup %7736 }
 0x4f3   :  { %v579_v63 = vsel %vm359_vm2, %v7737_v62, 0.0 }
 0x4f4   :  { %v7739_v0 = vpop.eup %7738  ;;  %580 = vadd.xlane.f32.xlu1 %v579_v63 }
 0x4f5   :  { %v576_v1 = vsel %vm359_vm2, %v7739_v0, 0.0 }
 0x4f8   :  { %577 = vadd.xlane.f32.xlu1 %v576_v1 }
 0x509   :  { %588 = vrot.lane.b32.xlu1 %v8186_v8, %s7975_s26 }
 0x50d   :  { %841 = vrot.lane.b32.xlu1 %v8186_v8, %s7979_s7 }
 0x511   :  { %839 = vrot.lane.b32.xlu1 %v8188_v10, %s7979_s7 }
 0x515   :  { %837 = vrot.lane.b32.xlu1 %v8186_v8, %s7976_s28 }
 0x519   :  { %1126 = vrot.lane.b32.xlu1 %v8188_v10, %s7977_s1 }
 0x51d   :  { %1124 = vrot.lane.b32.xlu1 %v8186_v8, %s7978_s2 }
 0x57d   :  { %v581_v3 = vpop.xlane.xlu1 %580 }
 0x57e   :  { %7740 = vrcp.f32 %v581_v3 }
 0x581   :  { %v578_v4 = vpop.xlane.xlu1 %577 }
 0x582   :  { %7742 = vrcp.f32 %v578_v4 }
 0x585   :  { %v589_v6 = vpop.permute.xlu1 %588 }
 0x586   :  { %7234 = vmatprep.subr.mxu0 %v589_v6 }
 0x587   :  { %7235 = vmatpush3.msra.mxu0 %v589_v6 }
 0x588   :  { %7236 = vmatprep.subr.mxu0 %v587_v7 }
 0x589   :  { %7237 = vmatpush3.msra.mxu0 %v587_v7  ;;  %v842_v16 = vpop.permute.xlu1 %841 }
 0x58a   :  { %7241 = vmatprep.subr.mxu0 %v155_v9 }
 0x58b   :  { %v7741_v11 = vpop.eup %7740 }
 0x58c   :  { %v585_v14 = vmul.f32 %v7741_v11, %v7737_v62 }
 0x58d   :  { %v840_v20 = vpop.permute.xlu1 %839 }
 0x58f   :  { %v7743_v12 = vpop.eup %7742 }
 0x590   :  { %v584_v13 = vmul.f32 %v7743_v12, %v7739_v0  ;;  %v156_v0 = vld [vmem:[%s8029_s3 + $0x10] sm:$0xff] }
 0x591   :  { %v838_v23 = vpop.permute.xlu1 %837 }
 0x592   :  { %7238 = vmatprep.mubr.msk.f32.mxu0 %vm359_vm2, %v584_v13 }
 0x593   :  { %7239 = vmatmul.mubr.msk.f32.vlgmr.msra.gmra.mxu0 %vm359_vm2, %v585_v14 }
 0x594   :  { %7242 = vmatpush3.msra.mxu0 %v155_v9 }
 0x595   :  { %7251 = vmatprep.subr.msk.mxu0 %vm271_vm1, %v842_v16  ;;  %v1127_v25 = vpop.permute.xlu1 %1126 }
 0x599   :  { %v1125_v26 = vpop.permute.xlu1 %1124 }
 0x653   :  { %v7240_v19 = vpop.f32.mrf.mxu0 }
 0x655   :  { %v664_v21 = vpop.f32.mrf.mxu0 }
 0x656   :  { %7243 = vmatprep.mubr.msk.f32.mxu0 %vm271_vm1, %v664_v21 }
 0x657   :  { %7244 = vmatmul.mubr.msk.f32.vlgmr.msra.gmra.mxu0 %vm271_vm1, %v7240_v19 }
 0x658   :  { %7252 = vmatpush3.xpose.msk.msra.mxu0 %vm271_vm1, %v842_v16  ;;  %7255 = vmatprep.mubr.msk.f32.mxu0 %vm271_vm1, %v836_v17  ;;  %v7250_v16 = vpop.f32.mrf.mxu1 }
 0x659   :  { %7253 = vmatprep.subr.msk.mxu0 %vm271_vm1, %v840_v20 }
 0x65a   :  { %v826_v17 = vpop.f32.mrf.mxu1 }
 0x65c   :  { %7254 = vmatpush3.xpose.msk.msra.mxu0 %vm271_vm1, %v840_v20 }
 0x65d   :  { %7270 = vmatprep.subr.msk.mxu0 %vm271_vm1, %v1129_v22 }
 0x65f   :  { %7256 = vmatmul.mubr.msk.f32.vlgmr.msra.gmra.mxu0 %vm271_vm1, %v838_v23 }
 0x660   :  { %7271 = vmatpush3.xpose.msk.msra.mxu0 %vm271_vm1, %v1129_v22  ;;  %7274 = vmatprep.mubr.msk.f32.mxu0 %vm271_vm1, %v1123_v24 }
 0x661   :  { %7272 = vmatprep.subr.msk.mxu0 %vm271_vm1, %v1127_v25 }
 0x664   :  { %7273 = vmatpush3.xpose.msk.msra.mxu0 %vm271_vm1, %v1127_v25 }
 0x667   :  { %7275 = vmatmul.mubr.msk.f32.vlgmr.msra.gmra.mxu0 %vm271_vm1, %v1125_v26  ;;  %v157_v26 = vld [vmem:[%s8029_s3 + $0x18] sm:$0xff] }
 0x717   :  { %v8280_v27 = vpop.f32.mrf.mxu0 }
 0x719   :  { %v8282_v28 = vpop.f32.mrf.mxu0 }
 0x71f   :  { %v7257_v29 = vpop.f32.mrf.mxu0 }
 0x720   :  { %v927_v30 = vmul.f32 0.35355338, %v7257_v29  ;;  %v832_v29 = vadd.f32 %v7250_v16, %v8280_v27 }
 0x721   :  { %v917_v31 = vpop.f32.mrf.mxu0 }
 0x722   :  { %v926_v32 = vmul.f32 0.35355338, %v917_v31  ;;  %v929_v33 = vadd.f32 %v927_v30, %v8206_v18  ;;  %v827_v31 = vadd.f32 %v826_v17, %v8282_v28 }
 0x724   :  { %v933_v34 = vsel %vm359_vm2, %v929_v33, -inf  ;;  %v928_v35 = vadd.f32 %v926_v32, %v8203_v15 }
 0x725   :  { %934 = vmax.xlane.f32.xlu1 %v933_v34 }
 0x726   :  { %v930_v36 = vsel %vm359_vm2, %v928_v35, -inf }
 0x727   :  { %931 = vmax.xlane.f32.xlu0 %v930_v36  ;;  %v7276_v37 = vpop.f32.mrf.mxu0 }
 0x728   :  { %v1214_v56 = vmul.f32 0.35355338, %v7276_v37 }
 0x729   :  { %v1204_v38 = vpop.f32.mrf.mxu0 }
 0x72a   :  { %v1213_v39 = vmul.f32 0.35355338, %v1204_v38  ;;  %v1216_v59 = vadd.f32 %v1214_v56, %v8206_v18  ;;  %v160_v56 = vld [vmem:[%s8039_s14 + $0x8] sm:$0xff] }
 0x72c   :  { %v1215_v40 = vadd.f32 %v1213_v39, %v8203_v15  ;;  %v1220_v60 = vsel %vm359_vm2, %v1216_v59, -inf }
 0x72e   :  { %v1217_v41 = vsel %vm359_vm2, %v1215_v40, -inf }
 0x736   :  { %954 = vrot.lane.b32.xlu1 %v8186_v8, %s7980_s10 }
 0x75a   :  { %1218 = vmax.xlane.f32.xlu1 %v1217_v41 }
 0x7ae   :  { %v935_v42 = vpop.xlane.xlu1 %934 }
 0x7af   :  { %v937_v43 = vsub.f32 %v929_v33, %v935_v42 }
 0x7b0   :  { %v932_v44 = vpop.xlane.xlu0 %931 }
 0x7b1   :  { %v940_v45 = vmul.f32 1.442695, %v937_v43  ;;  %v936_v46 = vsub.f32 %v928_v35, %v932_v44 }
 0x7b2   :  { %v955_v47 = vpop.permute.xlu1 %954 }
 0x7b3   :  { %7744 = vpow2.f32 %v940_v45  ;;  %v938_v48 = vmul.f32 1.442695, %v936_v46  ;;  %7258 = vmatprep.subr.mxu1 %v955_v47 }
 0x7b4   :  { %7259 = vmatpush3.msra.mxu1 %v955_v47 }
 0x7b5   :  { %7746 = vpow2.f32 %v938_v48 }
 0x7c0   :  { %v7745_v49 = vpop.eup %7744 }
 0x7c1   :  { %v945_v50 = vsel %vm359_vm2, %v7745_v49, 0.0 }
 0x7c2   :  { %v7747_v51 = vpop.eup %7746  ;;  %946 = vadd.xlane.f32.xlu0 %v945_v50 }
 0x7c3   :  { %v942_v52 = vsel %vm359_vm2, %v7747_v51, 0.0 }
 0x7c6   :  { %943 = vadd.xlane.f32.xlu0 %v942_v52 }
 0x7dc   :  { %952 = vrot.lane.b32.xlu0 %v8188_v10, %s7980_s10 }
 0x7e3   :  { %v1219_v53 = vpop.xlane.xlu1 %1218 }
 0x7e4   :  { %v1223_v54 = vsub.f32 %v1215_v40, %v1219_v53  ;;  %v6730_v40 = vld [vmem:[%s8034_s8] ss:$0 sm:$0xff] }
 0x7e6   :  { %v1225_v55 = vmul.f32 1.442695, %v1223_v54  ;;  %v162_v54 = vld [vmem:[%s8039_s14 + $0x18] sm:$0xff] }
 0x7e7   :  { %7289 = vmatprep.subr.mxu0 %v162_v54 }
 0x7e8   :  { %7748 = vpow2.f32 %v1225_v55  ;;  %v161_v55 = vld [vmem:[%s8039_s14 + $0x10] sm:$0xff]  ;;  %7290 = vmatpush3.msra.mxu0 %v162_v54 }
 0x7e9   :  { %7291 = vmatprep.subr.mxu0 %v161_v55 }
 0x7ea   :  { %7292 = vmatpush3.msra.mxu0 %v161_v55 }
 0x7eb   :  { %7293 = vmatprep.subr.mxu0 %v160_v56 }
 0x7ec   :  { %7294 = vmatpush3.msra.mxu0 %v160_v56 }
 0x7f5   :  { %v7749_v57 = vpop.eup %7748 }
 0x7f6   :  { %v1229_v58 = vsel %vm359_vm2, %v7749_v57, 0.0 }
 0x7f7   :  { %1230 = vadd.xlane.f32.xlu1 %v1229_v58  ;;  %v171_v58 = vld [vmem:[%s8049_s24 + $0x38] sm:$0xff] }
 0x7fb   :  { %1221 = vmax.xlane.f32.xlu0 %v1220_v60  ;;  %v169_v60 = vld [vmem:[%s8049_s24 + $0x28] sm:$0xff] }
 0x808   :  { %1241 = vrot.lane.b32.xlu1 %v8186_v8, %s7981_s11 }
 0x84b   :  { %v947_v61 = vpop.xlane.xlu0 %946 }
 0x84c   :  { %7750 = vrcp.f32 %v947_v61  ;;  %v168_v61 = vld [vmem:[%s8049_s24 + $0x20] sm:$0xff] }
 0x84f   :  { %v944_v62 = vpop.xlane.xlu0 %943 }
 0x850   :  { %7752 = vrcp.f32 %v944_v62 }
 0x853   :  { %v953_v63 = vpop.permute.xlu0 %952 }
 0x854   :  { %7260 = vmatprep.subr.mxu1 %v953_v63 }
 0x855   :  { %7261 = vmatpush3.msra.mxu1 %v953_v63 }
 0x856   :  { %7265 = vmatprep.subr.mxu1 %v156_v0 }
 0x859   :  { %v7751_v1 = vpop.eup %7750 }
 0x85a   :  { %v951_v6 = vmul.f32 %v7751_v1, %v7745_v49 }
 0x85d   :  { %v7753_v3 = vpop.eup %7752 }
 0x85e   :  { %v950_v4 = vmul.f32 %v7753_v3, %v7747_v51 }
 0x860   :  { %7262 = vmatprep.mubr.msk.f32.mxu1 %vm359_vm2, %v950_v4 }
 0x861   :  { %7263 = vmatmul.mubr.msk.f32.vlgmr.msra.gmra.mxu1 %vm359_vm2, %v951_v6 }
 0x862   :  { %7266 = vmatpush3.msra.mxu1 %v156_v0 }
 0x880   :  { %v1231_v7 = vpop.xlane.xlu1 %1230 }
 0x884   :  { %v1222_v8 = vpop.xlane.xlu0 %1221  ;;  %v1242_v9 = vpop.permute.xlu1 %1241 }
 0x885   :  { %v1224_v11 = vsub.f32 %v1216_v59, %v1222_v8  ;;  %7277 = vmatprep.subr.mxu1 %v1242_v9  ;;  %v170_v59 = vld [vmem:[%s8049_s24 + $0x30] sm:$0xff] }
 0x887   :  { %v1227_v12 = vmul.f32 1.442695, %v1224_v11 }
 0x889   :  { %7754 = vpow2.f32 %v1227_v12 }
 0x88a   :  { %7756 = vrcp.f32 %v1231_v7  ;;  %v6731_v7 = vld [vmem:[%s8059_s6] ss:$0 sm:$0xff] }
 0x896   :  { %v7755_v13 = vpop.eup %7754 }
 0x897   :  { %v1232_v14 = vsel %vm359_vm2, %v7755_v13, 0.0  ;;  %v7757_v19 = vpop.eup %7756 }
 0x898   :  { %1233 = vadd.xlane.f32.xlu0 %v1232_v14  ;;  %v1237_v23 = vmul.f32 %v7757_v19, %v7749_v57  ;;  %v159_v57 = vld [vmem:[%s8039_s14] sm:$0xff]  ;;  %v167_v19 = vld [vmem:[%s8049_s24 + $0x18] sm:$0xff] }
 0x899   :  { %7295 = vmatprep.subr.mxu0 %v159_v57 }
 0x89a   :  { %7296 = vmatpush3.msra.mxu0 %v159_v57 }
 0x8ae   :  { %1239 = vrot.lane.b32.xlu0 %v8188_v10, %s7981_s11 }
 0x921   :  { %v1234_v20 = vpop.xlane.xlu0 %1233  ;;  %v7264_v21 = vpop.f32.mrf.mxu1 }
 0x922   :  { %7758 = vrcp.f32 %v1234_v20  ;;  %v166_v20 = vld [vmem:[%s8049_s24 + $0x10] sm:$0xff] }
 0x923   :  { %v1030_v22 = vpop.f32.mrf.mxu1 }
 0x924   :  { %7267 = vmatprep.mubr.msk.f32.mxu1 %vm271_vm1, %v1030_v22  ;;  %v164_v22 = vld [vmem:[%s8049_s24] sm:$0xff] }
 0x925   :  { %v1240_v24 = vpop.permute.xlu0 %1239  ;;  %7268 = vmatmul.mubr.msk.f32.vlgmr.msra.gmra.mxu1 %vm271_vm1, %v7264_v21  ;;  %v165_v21 = vld [vmem:[%s8049_s24 + $0x8] sm:$0xff] }
 0x926   :  { %7278 = vmatpush3.msra.mxu1 %v1242_v9  ;;  %7281 = vmatprep.mubr.msk.f32.mxu1 %vm359_vm2, %v1237_v23  ;;  %v6733_v23 = vld [vmem:[%s8044_s19] ss:$0 sm:$0xff] }
 0x927   :  { %7279 = vmatprep.subr.mxu1 %v1240_v24 }
 0x928   :  { %7280 = vmatpush3.msra.mxu1 %v1240_v24 }
 0x929   :  { %7284 = vmatprep.subr.mxu1 %v157_v26 }
 0x92f   :  { %v7759_v10 = vpop.eup %7758 }
 0x930   :  { %v1238_v25 = vmul.f32 %v7759_v10, %v7755_v13  ;;  %v6732_v13 = vld [vmem:[%s8064_s12] ss:$0 sm:$0xff] }
 0x932   :  { %7282 = vmatmul.mubr.msk.f32.vlgmr.msra.gmra.mxu1 %vm359_vm2, %v1238_v25 }
 0x933   :  { %7285 = vmatpush3.msra.mxu1 %v157_v26 }
 0x934   :  { %7300 = vmatprep.subr.mxu1 %v171_v58 }
 0x9e5   :  { %v7269_v30 = vpop.f32.mrf.mxu1 }
 0x9e6   :  { %v1121_v32 = vadd.f32 %v7269_v30, %v832_v29 }
 0x9e7   :  { %v1111_v33 = vpop.f32.mrf.mxu1 }
 0x9e8   :  { %v1120_v34 = vadd.f32 %v1111_v33, %v827_v31  ;;  %v6736_v33 = vld [vmem:[%s8054_s30] ss:$0 sm:$0xff] }
 0x9f2   :  { %v7283_v35 = vpop.f32.mrf.mxu1 }
 0x9f4   :  { %v1317_v36 = vpop.f32.mrf.mxu1 }
 0x9f5   :  { %7286 = vmatprep.mubr.msk.f32.mxu1 %vm271_vm1, %v1317_v36 }
 0x9f6   :  { %7287 = vmatmul.mubr.msk.f32.vlgmr.msra.gmra.mxu1 %vm271_vm1, %v7283_v35 }
 0x9f7   :  { %7301 = vmatpush3.msra.mxu1 %v171_v58 }
 0x9f8   :  { %7302 = vmatprep.subr.mxu1 %v170_v59 }
 0x9f9   :  { %7303 = vmatpush3.msra.mxu1 %v170_v59  ;;  %v6739_v59 = vld [vmem:[%s8069_s20] ss:$0 sm:$0xff] }
 0x9fa   :  { %7304 = vmatprep.subr.mxu1 %v169_v60 }
 0x9fb   :  { %7305 = vmatpush3.msra.mxu1 %v169_v60 }
 0x9fc   :  { %7306 = vmatprep.subr.mxu1 %v168_v61 }
 0x9fd   :  { %7307 = vmatpush3.msra.mxu1 %v168_v61 }
 0x9fe   :  { %7308 = vmatprep.subr.mxu1 %v167_v19 }
 0x9ff   :  { %7309 = vmatpush3.msra.mxu1 %v167_v19 }
 0xa00   :  { %7310 = vmatprep.subr.mxu1 %v166_v20 }
 0xa01   :  { %7311 = vmatpush3.msra.mxu1 %v166_v20 }
 0xa02   :  { %7312 = vmatprep.subr.mxu1 %v165_v21 }
 0xa03   :  { %7313 = vmatpush3.msra.mxu1 %v165_v21 }
 0xa04   :  { %7314 = vmatprep.subr.mxu1 %v164_v22 }
 0xa05   :  { %7315 = vmatpush3.msra.mxu1 %v164_v22 }
 0xab6   :  { %v7288_v37 = vpop.f32.mrf.mxu1 }
 0xab7   :  { %v1408_v38 = vadd.f32 %v7288_v37, %v1121_v32 }
 0xab8   :  { %v1398_v39 = vpop.f32.mrf.mxu1 }
 0xab9   :  { %v1410_v41 = vadd.f32 %v1408_v38, %v8181_v5  ;;  %v1407_v42 = vadd.f32 %v1398_v39, %v1120_v34 }
 0xabb   :  { %v1409_v27 = vadd.f32 %v1407_v42, %v8174_v2  ;;  %v1418_v43 = vadd.f32 %v6730_v40, %v1410_v41 }
 0xabd   :  { %v1422_v28 = vsel %vm183_vm0, %v1418_v43, 0.0  ;;  %v1417_v44 = vadd.f32 %v6730_v40, %v1409_v27 }
 0xabe   :  { %1423 = vadd.xlane.f32.xlu0 %v1422_v28 }
 0xabf   :  { %v1419_v45 = vsel %vm183_vm0, %v1417_v44, 0.0 }
 0xac0   :  { %1420 = vadd.xlane.f32.xlu1 %v1419_v45 }
 0xb47   :  { %v1424_v46 = vpop.xlane.xlu0 %1423 }
 0xb48   :  { %v1427_v47 = vmul.f32 0.03125, %v1424_v46 }
 0xb49   :  { %v1421_v48 = vpop.xlane.xlu1 %1420 }
 0xb4a   :  { %v1429_v49 = vsub.f32 %v1418_v43, %v1427_v47  ;;  %v1426_v5 = vmul.f32 0.03125, %v1421_v48 }
 0xb4c   :  { %v1428_v50 = vsub.f32 %v1417_v44, %v1426_v5  ;;  %v1431_v51 = vmul.f32 %v1429_v49, %v1429_v49  ;;  %v6744_v5 = vld [vmem:[%s8019_s25 + $0x38] sm:$0xff] }
 0xb4d   :  { %7319 = vmatprep.subr.mxu0 %v6744_v5 }
 0xb4e   :  { %v1435_v2 = vsel %vm183_vm0, %v1431_v51, 0.0  ;;  %v1430_v52 = vmul.f32 %v1428_v50, %v1428_v50  ;;  %v6742_v51 = vld [vmem:[%s8019_s25 + $0x28] sm:$0xff] }
 0xb4f   :  { %1436 = vadd.xlane.f32.xlu0 %v1435_v2  ;;  %v6741_v2 = vld [vmem:[%s8019_s25 + $0x20] sm:$0xff] }
 0xb50   :  { %v1432_v53 = vsel %vm183_vm0, %v1430_v52, 0.0 }
 0xb51   :  { %1433 = vadd.xlane.f32.xlu1 %v1432_v53 }
 0xbd8   :  { %v1437_v62 = vpop.xlane.xlu0 %1436 }
 0xbd9   :  { %v1439_v63 = vmul.f32 0.03125, %v1437_v62 }
 0xbda   :  { %v1434_v0 = vpop.xlane.xlu1 %1433 }
 0xbdb   :  { %v1441_v1 = vadd.f32 1e-05, %v1439_v63  ;;  %v1438_v3 = vmul.f32 0.03125, %v1434_v0  ;;  %v6740_v0 = vld [vmem:[%s8074_s27] ss:$0 sm:$0xff] }
 0xbdd   :  { %7760 = vrsqrt.f32 %v1441_v1  ;;  %v1440_v4 = vadd.f32 1e-05, %v1438_v3 }
 0xbdf   :  { %7762 = vrsqrt.f32 %v1440_v4 }
 0xbea   :  { %v7761_v6 = vpop.eup %7760 }
 0xbeb   :  { %v1445_v8 = vmul.f32 %v7761_v6, %v1429_v49  ;;  %v6769_v6 = vld [vmem:[%s8024_s29 + $0x1] ss:$0 sm:$0xff]  ;;  %s8940_s29 = sld [smem:[#allocation8_spill]] }
 0xbec   :  { %v7763_v9 = vpop.eup %7762 }
 0xbed   :  { %v1444_v11 = vmul.f32 %v7763_v9, %v1428_v50  ;;  %v1453_v12 = vmul.f32 %v6731_v7, %v1445_v8  ;;  %v6743_v50 = vld [vmem:[%s8019_s25 + $0x30] sm:$0xff]  ;;  %s8939_s25 = sld [smem:[#allocation11_spill]] }
 0xbef   :  { %v1452_v14 = vmul.f32 %v6731_v7, %v1444_v11  ;;  %v1461_v17 = vadd.f32 %v6732_v13, %v1453_v12 }
 0xbf1   :  { %v1460_v16 = vadd.f32 %v6732_v13, %v1452_v14 }
 0xbf3   :  { %7297 = vmatprep.mubr.msk.f32.mxu0 %vm183_vm0, %v1460_v16 }
 0xbf4   :  { %7298 = vmatmul.mubr.msk.f32.vlgmr.msra.gmra.mxu0 %vm183_vm0, %v1461_v17 }
 0xbf5   :  { %7320 = vmatpush3.msra.mxu0 %v6744_v5 }
 0xbf6   :  { %7321 = vmatprep.subr.mxu0 %v6743_v50 }
 0xbf7   :  { %7322 = vmatpush3.msra.mxu0 %v6743_v50 }
 0xbf8   :  { %7323 = vmatprep.subr.mxu0 %v6742_v51 }
 0xbf9   :  { %7324 = vmatpush3.msra.mxu0 %v6742_v51 }
 0xbfa   :  { %7325 = vmatprep.subr.mxu0 %v6741_v2 }
 0xbfb   :  { %7326 = vmatpush3.msra.mxu0 %v6741_v2 }
 0xcb4   :  { %v7299_v24 = vpop.f32.mrf.mxu0 }
 0xcb5   :  { %v1546_v10 = vadd.f32 %v7299_v24, %v6733_v23 }
 0xcb6   :  { %v1540_v25 = vpop.f32.mrf.mxu0 }
 0xcb7   :  { %v1541_v26 = vadd.f32 %v6733_v23, %v1540_v25  ;;  %v1552_v29 = vmul.f32 0.01, %v1546_v10  ;;  %vm1550_vm3 = vcmp.ge.f32.partialorder %v1546_v10, 0.0 }
 0xcb9   :  { %vm1549_vm4 = vcmp.ge.f32.partialorder %v1541_v26, 0.0  ;;  %v1551_v30 = vmul.f32 0.01, %v1541_v26  ;;  %v1554_v32 = vsel %vm1550_vm3, %v1546_v10, %v1552_v29 }
 0xcbb   :  { %v1553_v31 = vsel %vm1549_vm4, %v1541_v26, %v1551_v30 }
 0xcbc   :  { %7316 = vmatprep.mubr.msk.f32.mxu1 %vm1561_vm5, %v1553_v31 }
 0xcbd   :  { %7317 = vmatmul.mubr.msk.f32.vlgmr.msra.gmra.mxu1 %vm1561_vm5, %v1554_v32 }
 0xd7d   :  { %v7318_v34 = vpop.f32.mrf.mxu1 }
 0xd7e   :  { %v1640_v35 = vadd.f32 %v7318_v34, %v6736_v33 }
 0xd7f   :  { %v1634_v36 = vpop.f32.mrf.mxu1 }
 0xd80   :  { %v1635_v37 = vadd.f32 %v6736_v33, %v1634_v36  ;;  %v1644_v38 = vadd.f32 %v1640_v35, %v1461_v17 }
 0xd82   :  { %v1648_v39 = vsel %vm183_vm0, %v1644_v38, 0.0  ;;  %v1643_v40 = vadd.f32 %v1635_v37, %v1460_v16 }
 0xd83   :  { %1649 = vadd.xlane.f32.xlu0 %v1648_v39 }
 0xd84   :  { %v1645_v41 = vsel %vm183_vm0, %v1643_v40, 0.0 }
 0xd85   :  { %1646 = vadd.xlane.f32.xlu1 %v1645_v41 }
 0xe0c   :  { %v1650_v42 = vpop.xlane.xlu0 %1649 }
 0xe0d   :  { %v1652_v27 = vmul.f32 0.03125, %v1650_v42 }
 0xe0e   :  { %v1647_v43 = vpop.xlane.xlu1 %1646 }
 0xe0f   :  { %v1654_v28 = vsub.f32 %v1644_v38, %v1652_v27  ;;  %v1651_v44 = vmul.f32 0.03125, %v1647_v43 }
 0xe11   :  { %v1653_v45 = vsub.f32 %v1643_v40, %v1651_v44  ;;  %v1656_v46 = vmul.f32 %v1654_v28, %v1654_v28 }
 0xe13   :  { %v1660_v47 = vsel %vm183_vm0, %v1656_v46, 0.0  ;;  %v1655_v48 = vmul.f32 %v1653_v45, %v1653_v45 }
 0xe14   :  { %1661 = vadd.xlane.f32.xlu0 %v1660_v47 }
 0xe15   :  { %v1657_v49 = vsel %vm183_vm0, %v1655_v48, 0.0 }
 0xe16   :  { %1658 = vadd.xlane.f32.xlu1 %v1657_v49 }
 0xe9d   :  { %v1662_v52 = vpop.xlane.xlu0 %1661 }
 0xe9e   :  { %v1664_v53 = vmul.f32 0.03125, %v1662_v52 }
 0xe9f   :  { %v1659_v54 = vpop.xlane.xlu1 %1658 }
 0xea0   :  { %v1666_v55 = vadd.f32 1e-05, %v1664_v53  ;;  %v1663_v56 = vmul.f32 0.03125, %v1659_v54 }
 0xea2   :  { %7764 = vrsqrt.f32 %v1666_v55  ;;  %v1665_v57 = vadd.f32 1e-05, %v1663_v56 }
 0xea4   :  { %7766 = vrsqrt.f32 %v1665_v57 }
 0xeaf   :  { %v7765_v58 = vpop.eup %7764 }
 0xeb0   :  { %v1670_v60 = vmul.f32 %v7765_v58, %v1654_v28 }
 0xeb1   :  { %v7767_v61 = vpop.eup %7766 }
 0xeb2   :  { %v1669_v62 = vmul.f32 %v7767_v61, %v1653_v45  ;;  %v1678_v63 = vmul.f32 %v6739_v59, %v1670_v60  ;;  %v6746_v45 = vld [vmem:[%s8029_s3 + $0x20] sm:$0xff] }
 0xeb4   :  { %v1677_v1 = vmul.f32 %v6739_v59, %v1669_v62  ;;  %v8355_v4 = vadd.f32 %v6740_v0, %v1678_v63 }
 0xeb6   :  { %v8353_v3 = vadd.f32 %v6740_v0, %v1677_v1 }
 0xeb8   :  { %7327 = vmatprep.mubr.msk.f32.mxu0 %vm183_vm0, %v8353_v3 }
 0xeb9   :  { %7328 = vmatmul.mubr.msk.f32.vlgmr.msra.gmra.mxu0 %vm183_vm0, %v8355_v4 }
 0xf79   :  { %v7329_v7 = vpop.f32.mrf.mxu0 }
 0xf7a   :  { %v8362_v8 = vadd.f32 %v7329_v7, %v6769_v6 }
 0xf7b   :  { %v1805_v9 = vpop.f32.mrf.mxu0 }
 0xf7c   :  { %v8364_v11 = vadd.f32 %v6769_v6, %v1805_v9  ;;  %1818 = vrot.lane.b32.xlu1 %v8362_v8, %s7971_s0  ;;  %v6747_v6 = vld [vmem:[%s8029_s3 + $0x28] sm:$0xff] }
 0xf7e   :  { %1816 = vrot.lane.b32.xlu0 %v8364_v11, %s7971_s0  ;;  %7334 = vmatprep.mubr.msk.f32.mxu0 %vm271_vm1, %v8364_v11 }
 0xfee   :  { %v1819_v12 = vpop.permute.xlu1 %1818 }
 0xfef   :  { %7330 = vmatprep.subr.msk.mxu0 %vm271_vm1, %v1819_v12 }
 0xff0   :  { %7331 = vmatpush3.xpose.msk.msra.mxu0 %vm271_vm1, %v1819_v12  ;;  %v1817_v13 = vpop.permute.xlu0 %1816 }
 0xff1   :  { %7332 = vmatprep.subr.msk.mxu0 %vm271_vm1, %v1817_v13 }
 0xff4   :  { %7333 = vmatpush3.xpose.msk.msra.mxu0 %vm271_vm1, %v1817_v13 }
 0xff7   :  { %7335 = vmatmul.mubr.msk.f32.vlgmr.msra.gmra.mxu0 %vm271_vm1, %v8362_v8 }
0x10b7   :  { %v7336_v14 = vpop.f32.mrf.mxu0 }
0x10b8   :  { %v1904_v16 = vmul.f32 0.35355338, %v7336_v14 }
0x10b9   :  { %v1894_v17 = vpop.f32.mrf.mxu0 }
0x10ba   :  { %v1903_v19 = vmul.f32 0.35355338, %v1894_v17  ;;  %v1906_v20 = vadd.f32 %v1904_v16, %v8206_v18 }
0x10bc   :  { %v1910_v21 = vsel %vm359_vm2, %v1906_v20, -inf  ;;  %v1905_v22 = vadd.f32 %v1903_v19, %v8203_v15 }
0x10bd   :  { %1911 = vmax.xlane.f32.xlu0 %v1910_v21 }
0x10be   :  { %v1907_v23 = vsel %vm359_vm2, %v1905_v22, -inf }
0x10bf   :  { %1908 = vmax.xlane.f32.xlu1 %v1907_v23 }
0x10d0   :  { %1931 = vrot.lane.b32.xlu1 %v8362_v8, %s7972_s5 }
0x10d4   :  { %2022 = vrot.lane.b32.xlu1 %v8362_v8, %s7974_s23 }
0x10d8   :  { %2020 = vrot.lane.b32.xlu1 %v8364_v11, %s7974_s23 }
0x1146   :  { %v1912_v24 = vpop.xlane.xlu0 %1911 }
0x1147   :  { %v1914_v10 = vsub.f32 %v1906_v20, %v1912_v24 }
0x1148   :  { %v1909_v25 = vpop.xlane.xlu1 %1908 }
0x1149   :  { %v1917_v26 = vmul.f32 1.442695, %v1914_v10  ;;  %v1913_v29 = vsub.f32 %v1905_v22, %v1909_v25 }
0x114b   :  { %7768 = vpow2.f32 %v1917_v26  ;;  %v1915_v30 = vmul.f32 1.442695, %v1913_v29 }
0x114c   :  { %v1932_v31 = vpop.permute.xlu1 %1931 }
0x114d   :  { %7770 = vpow2.f32 %v1915_v30  ;;  %7337 = vmatprep.subr.mxu1 %v1932_v31 }
0x114e   :  { %7338 = vmatpush3.msra.mxu1 %v1932_v31 }
0x1150   :  { %v2023_v36 = vpop.permute.xlu1 %2022 }
0x1154   :  { %v2021_v37 = vpop.permute.xlu1 %2020 }
0x1158   :  { %v7769_v32 = vpop.eup %7768 }
0x1159   :  { %v1922_v33 = vsel %vm359_vm2, %v7769_v32, 0.0 }
0x115a   :  { %v7771_v34 = vpop.eup %7770  ;;  %1923 = vadd.xlane.f32.xlu0 %v1922_v33  ;;  %v8455_v33 = vld [vmem:[%s8004_s13 + $0x8] sm:$0xff] }
0x115b   :  { %v1919_v35 = vsel %vm359_vm2, %v7771_v34, 0.0 }
0x115c   :  { %1920 = vadd.xlane.f32.xlu1 %v1919_v35 }
0x116d   :  { %2018 = vrot.lane.b32.xlu1 %v8362_v8, %s7973_s22 }
0x1170   :  { %1929 = vrot.lane.b32.xlu0 %v8364_v11, %s7972_s5 }
0x1174   :  { %2016 = vrot.lane.b32.xlu0 %v8364_v11, %s7973_s22 }
0x11e3   :  { %v1924_v38 = vpop.xlane.xlu0 %1923 }
0x11e4   :  { %7772 = vrcp.f32 %v1924_v38 }
0x11e5   :  { %v1921_v39 = vpop.xlane.xlu1 %1920 }
0x11e6   :  { %7774 = vrcp.f32 %v1921_v39 }
0x11e7   :  { %v1930_v40 = vpop.permute.xlu0 %1929 }
0x11e8   :  { %7339 = vmatprep.subr.mxu1 %v1930_v40 }
0x11e9   :  { %7340 = vmatpush3.msra.mxu1 %v1930_v40  ;;  %v2019_v44 = vpop.permute.xlu1 %2018 }
0x11ea   :  { %7344 = vmatprep.subr.msk.mxu1 %vm271_vm1, %v2023_v36 }
0x11eb   :  { %v2017_v28 = vpop.permute.xlu0 %2016 }
0x11f1   :  { %v7773_v41 = vpop.eup %7772 }
0x11f2   :  { %v1928_v43 = vmul.f32 %v7773_v41, %v7769_v32 }
0x11f3   :  { %v7775_v42 = vpop.eup %7774 }
0x11f4   :  { %v1927_v27 = vmul.f32 %v7775_v42, %v7771_v34 }
0x11f6   :  { %7341 = vmatprep.mubr.msk.f32.mxu1 %vm359_vm2, %v1927_v27 }
0x11f7   :  { %7342 = vmatmul.mubr.msk.f32.vlgmr.msra.gmra.mxu1 %vm359_vm2, %v1928_v43 }
0x11f8   :  { %7345 = vmatpush3.xpose.msk.msra.mxu1 %vm271_vm1, %v2023_v36  ;;  %7348 = vmatprep.mubr.msk.f32.mxu1 %vm271_vm1, %v2017_v28  ;;  %v8460_v36 = vld [vmem:[%s8004_s13] sm:$0xff] }
0x11f9   :  { %7346 = vmatprep.subr.msk.mxu1 %vm271_vm1, %v2021_v37 }
0x11fc   :  { %7347 = vmatpush3.xpose.msk.msra.mxu1 %vm271_vm1, %v2021_v37 }
0x11fd   :  { %7363 = vmatprep.subr.mxu1 %v6746_v45 }
0x11ff   :  { %7349 = vmatmul.mubr.msk.f32.vlgmr.msra.gmra.mxu1 %vm271_vm1, %v2019_v44 }
0x1200   :  { %7364 = vmatpush3.msra.mxu1 %v6746_v45 }
0x12b7   :  { %v7343_v46 = vpop.f32.mrf.mxu1 }
0x12b9   :  { %v2007_v47 = vpop.f32.mrf.mxu1 }
0x12ba   :  { %7365 = vmatprep.mubr.msk.f32.mxu1 %vm271_vm1, %v2007_v47 }
0x12bb   :  { %7366 = vmatmul.mubr.msk.f32.vlgmr.msra.gmra.mxu1 %vm271_vm1, %v7343_v46 }
0x12bf   :  { %v7350_v48 = vpop.f32.mrf.mxu1 }
0x12c0   :  { %v2108_v49 = vmul.f32 0.35355338, %v7350_v48 }
0x12c1   :  { %v2098_v5 = vpop.f32.mrf.mxu1 }
0x12c2   :  { %v2107_v50 = vmul.f32 0.35355338, %v2098_v5  ;;  %v2110_v51 = vadd.f32 %v2108_v49, %v8206_v18 }
0x12c4   :  { %v2114_v2 = vsel %vm359_vm2, %v2110_v51, -inf  ;;  %v2109_v52 = vadd.f32 %v2107_v50, %v8203_v15 }
0x12c5   :  { %2115 = vmax.xlane.f32.xlu1 %v2114_v2 }
0x12c6   :  { %v2111_v53 = vsel %vm359_vm2, %v2109_v52, -inf }
0x12c7   :  { %2112 = vmax.xlane.f32.xlu0 %v2111_v53 }
0x12d6   :  { %2135 = vrot.lane.b32.xlu1 %v8362_v8, %s7975_s26 }
0x12da   :  { %2388 = vrot.lane.b32.xlu1 %v8362_v8, %s7979_s7 }
0x12de   :  { %2386 = vrot.lane.b32.xlu1 %v8364_v11, %s7979_s7 }
0x12e2   :  { %2384 = vrot.lane.b32.xlu1 %v8362_v8, %s7976_s28 }
0x12e6   :  { %2673 = vrot.lane.b32.xlu1 %v8364_v11, %s7977_s1 }
0x12ea   :  { %2671 = vrot.lane.b32.xlu1 %v8362_v8, %s7978_s2 }
0x134e   :  { %v2116_v15 = vpop.xlane.xlu1 %2115 }
0x134f   :  { %v2118_v18 = vsub.f32 %v2110_v51, %v2116_v15 }
0x1350   :  { %v2113_v54 = vpop.xlane.xlu0 %2112 }
0x1351   :  { %v2121_v55 = vmul.f32 1.442695, %v2118_v18  ;;  %v2117_v56 = vsub.f32 %v2109_v52, %v2113_v54 }
0x1352   :  { %v2136_v57 = vpop.permute.xlu1 %2135 }
0x1353   :  { %7776 = vpow2.f32 %v2121_v55  ;;  %v2119_v58 = vmul.f32 1.442695, %v2117_v56  ;;  %7351 = vmatprep.subr.mxu0 %v2136_v57 }
0x1354   :  { %7352 = vmatpush3.msra.mxu0 %v2136_v57 }
0x1355   :  { %7778 = vpow2.f32 %v2119_v58 }
0x1356   :  { %v2389_v14 = vpop.permute.xlu1 %2388 }
0x135a   :  { %v2387_v19 = vpop.permute.xlu1 %2386 }
0x135e   :  { %v2385_v22 = vpop.permute.xlu1 %2384 }
0x1360   :  { %v7777_v59 = vpop.eup %7776 }
0x1361   :  { %v2126_v60 = vsel %vm359_vm2, %v7777_v59, 0.0 }
0x1362   :  { %v7779_v61 = vpop.eup %7778  ;;  %2127 = vadd.xlane.f32.xlu0 %v2126_v60  ;;  %v2674_v24 = vpop.permute.xlu1 %2673  ;;  %v6748_v60 = vld [vmem:[%s8029_s3 + $0x30] sm:$0xff] }
0x1363   :  { %v2123_v62 = vsel %vm359_vm2, %v7779_v61, 0.0 }
0x1366   :  { %2124 = vadd.xlane.f32.xlu0 %v2123_v62  ;;  %v2672_v10 = vpop.permute.xlu1 %2671 }
0x137c   :  { %2133 = vrot.lane.b32.xlu0 %v8364_v11, %s7975_s26 }
0x1380   :  { %2382 = vrot.lane.b32.xlu0 %v8364_v11, %s7976_s28 }
0x1384   :  { %2675 = vrot.lane.b32.xlu0 %v8362_v8, %s7977_s1 }
0x1388   :  { %2669 = vrot.lane.b32.xlu0 %v8364_v11, %s7978_s2 }
0x13eb   :  { %v2128_v63 = vpop.xlane.xlu0 %2127 }
0x13ec   :  { %7780 = vrcp.f32 %v2128_v63 }
0x13ef   :  { %v2125_v0 = vpop.xlane.xlu0 %2124 }
0x13f0   :  { %7782 = vrcp.f32 %v2125_v0 }
0x13f3   :  { %v2134_v1 = vpop.permute.xlu0 %2133 }
0x13f4   :  { %7353 = vmatprep.subr.mxu0 %v2134_v1 }
0x13f5   :  { %7354 = vmatpush3.msra.mxu0 %v2134_v1 }
0x13f6   :  { %7358 = vmatprep.subr.mxu0 %v6747_v6 }
0x13f7   :  { %v2383_v16 = vpop.permute.xlu0 %2382 }
0x13f9   :  { %v7781_v7 = vpop.eup %7780 }
0x13fa   :  { %v2132_v13 = vmul.f32 %v7781_v7, %v7777_v59 }
0x13fb   :  { %v2676_v21 = vpop.permute.xlu0 %2675 }
0x13fd   :  { %v7783_v9 = vpop.eup %7782 }
0x13fe   :  { %v2131_v12 = vmul.f32 %v7783_v9, %v7779_v61 }
0x13ff   :  { %v2670_v23 = vpop.permute.xlu0 %2669 }
0x1400   :  { %7355 = vmatprep.mubr.msk.f32.mxu0 %vm359_vm2, %v2131_v12 }
0x1401   :  { %7356 = vmatmul.mubr.msk.f32.vlgmr.msra.gmra.mxu0 %vm359_vm2, %v2132_v13 }
0x1402   :  { %7359 = vmatpush3.msra.mxu0 %v6747_v6 }
0x1403   :  { %7368 = vmatprep.subr.msk.mxu0 %vm271_vm1, %v2389_v14 }
0x14c1   :  { %v7357_v17 = vpop.f32.mrf.mxu0 }
0x14c3   :  { %v2211_v20 = vpop.f32.mrf.mxu0 }
0x14c4   :  { %7360 = vmatprep.mubr.msk.f32.mxu0 %vm271_vm1, %v2211_v20 }
0x14c5   :  { %7361 = vmatmul.mubr.msk.f32.vlgmr.msra.gmra.mxu0 %vm271_vm1, %v7357_v17 }
0x14c6   :  { %7369 = vmatpush3.xpose.msk.msra.mxu0 %vm271_vm1, %v2389_v14  ;;  %7372 = vmatprep.mubr.msk.f32.mxu0 %vm271_vm1, %v2383_v16  ;;  %v7367_v14 = vpop.f32.mrf.mxu1 }
0x14c7   :  { %7370 = vmatprep.subr.msk.mxu0 %vm271_vm1, %v2387_v19 }
0x14c8   :  { %v2373_v16 = vpop.f32.mrf.mxu1 }
0x14ca   :  { %7371 = vmatpush3.xpose.msk.msra.mxu0 %vm271_vm1, %v2387_v19 }
0x14cb   :  { %7387 = vmatprep.subr.msk.mxu0 %vm271_vm1, %v2676_v21 }
0x14cd   :  { %7373 = vmatmul.mubr.msk.f32.vlgmr.msra.gmra.mxu0 %vm271_vm1, %v2385_v22 }
0x14ce   :  { %7388 = vmatpush3.xpose.msk.msra.mxu0 %vm271_vm1, %v2676_v21  ;;  %7391 = vmatprep.mubr.msk.f32.mxu0 %vm271_vm1, %v2670_v23 }
0x14cf   :  { %7389 = vmatprep.subr.msk.mxu0 %vm271_vm1, %v2674_v24 }
0x14d2   :  { %7390 = vmatpush3.xpose.msk.msra.mxu0 %vm271_vm1, %v2674_v24 }
0x14d5   :  { %7392 = vmatmul.mubr.msk.f32.vlgmr.msra.gmra.mxu0 %vm271_vm1, %v2672_v10  ;;  %v6749_v10 = vld [vmem:[%s8029_s3 + $0x38] sm:$0xff]  ;;  %s8941_s3 = sld [smem:[#allocation12_spill]] }
0x1585   :  { %v8450_v25 = vpop.f32.mrf.mxu0 }
0x1587   :  { %v8452_v26 = vpop.f32.mrf.mxu0 }
0x158d   :  { %v7374_v29 = vpop.f32.mrf.mxu0 }
0x158e   :  { %v2474_v30 = vmul.f32 0.35355338, %v7374_v29  ;;  %v2379_v29 = vadd.f32 %v7367_v14, %v8450_v25 }
0x158f   :  { %v2464_v31 = vpop.f32.mrf.mxu0 }
0x1590   :  { %v2473_v32 = vmul.f32 0.35355338, %v2464_v31  ;;  %v2476_v34 = vadd.f32 %v8455_v33, %v2474_v30  ;;  %v2374_v31 = vadd.f32 %v2373_v16, %v8452_v26 }
0x1592   :  { %v2480_v35 = vsel %vm359_vm2, %v2476_v34, -inf  ;;  %v2475_v37 = vadd.f32 %v8460_v36, %v2473_v32 }
0x1593   :  { %2481 = vmax.xlane.f32.xlu1 %v2480_v35 }
0x1594   :  { %v2477_v38 = vsel %vm359_vm2, %v2475_v37, -inf }
0x1595   :  { %2478 = vmax.xlane.f32.xlu0 %v2477_v38  ;;  %v7393_v39 = vpop.f32.mrf.mxu0 }
0x1596   :  { %v2761_v15 = vmul.f32 0.35355338, %v7393_v39 }
0x1597   :  { %v2751_v40 = vpop.f32.mrf.mxu0 }
0x1598   :  { %v2760_v41 = vmul.f32 0.35355338, %v2751_v40  ;;  %v2763_v55 = vadd.f32 %v8455_v33, %v2761_v15  ;;  %v6752_v15 = vld [vmem:[%s8039_s14 + $0x28] sm:$0xff] }
0x159a   :  { %v2762_v42 = vadd.f32 %v8460_v36, %v2760_v41  ;;  %v2767_v56 = vsel %vm359_vm2, %v2763_v55, -inf }
0x159c   :  { %v2764_v27 = vsel %vm359_vm2, %v2762_v42, -inf }
0x15a4   :  { %2501 = vrot.lane.b32.xlu1 %v8362_v8, %s7980_s10 }
0x15c8   :  { %2765 = vmax.xlane.f32.xlu1 %v2764_v27 }
0x161c   :  { %v2482_v43 = vpop.xlane.xlu1 %2481 }
0x161d   :  { %v2484_v28 = vsub.f32 %v2476_v34, %v2482_v43 }
0x161e   :  { %v2479_v44 = vpop.xlane.xlu0 %2478 }
0x161f   :  { %v2487_v45 = vmul.f32 1.442695, %v2484_v28  ;;  %v2483_v46 = vsub.f32 %v2475_v37, %v2479_v44 }
0x1620   :  { %v2502_v47 = vpop.permute.xlu1 %2501 }
0x1621   :  { %7784 = vpow2.f32 %v2487_v45  ;;  %v2485_v48 = vmul.f32 1.442695, %v2483_v46  ;;  %7375 = vmatprep.subr.mxu1 %v2502_v47 }
0x1622   :  { %7376 = vmatpush3.msra.mxu1 %v2502_v47 }
0x1623   :  { %7786 = vpow2.f32 %v2485_v48 }
0x162e   :  { %v7785_v49 = vpop.eup %7784 }
0x162f   :  { %v2492_v5 = vsel %vm359_vm2, %v7785_v49, 0.0 }
0x1630   :  { %v7787_v50 = vpop.eup %7786  ;;  %2493 = vadd.xlane.f32.xlu0 %v2492_v5 }
0x1631   :  { %v2489_v51 = vsel %vm359_vm2, %v7787_v50, 0.0 }
0x1634   :  { %2490 = vadd.xlane.f32.xlu0 %v2489_v51 }
0x164a   :  { %2499 = vrot.lane.b32.xlu0 %v8364_v11, %s7980_s10 }
0x1651   :  { %v2766_v2 = vpop.xlane.xlu1 %2765 }
0x1652   :  { %v2770_v52 = vsub.f32 %v2762_v42, %v2766_v2  ;;  %v6804_v42 = vld [vmem:[%s8034_s8 + $0x1] ss:$0 sm:$0xff]  ;;  %s8942_s8 = sld [smem:[#allocation9_spill]] }
0x1654   :  { %v2772_v53 = vmul.f32 1.442695, %v2770_v52  ;;  %v6754_v52 = vld [vmem:[%s8039_s14 + $0x38] sm:$0xff] }
0x1655   :  { %7406 = vmatprep.subr.mxu0 %v6754_v52 }
0x1656   :  { %7788 = vpow2.f32 %v2772_v53  ;;  %v6753_v53 = vld [vmem:[%s8039_s14 + $0x30] sm:$0xff]  ;;  %7407 = vmatpush3.msra.mxu0 %v6754_v52  ;;  %v7982_v52 = vmov 0.0  }
0x1657   :  { %7408 = vmatprep.subr.mxu0 %v6753_v53 }
0x1658   :  { %7409 = vmatpush3.msra.mxu0 %v6753_v53  ;;  %v6818_v53 = vld [vmem:[%s8941_s3] ss:$0 sm:$0xff] }
0x1659   :  { %7410 = vmatprep.subr.mxu0 %v6752_v15 }
0x165a   :  { %7411 = vmatpush3.msra.mxu0 %v6752_v15 }
0x1663   :  { %v7789_v18 = vpop.eup %7788 }
0x1664   :  { %v2776_v54 = vsel %vm359_vm2, %v7789_v18, 0.0 }
0x1665   :  { %2777 = vadd.xlane.f32.xlu1 %v2776_v54  ;;  %v6763_v54 = vld [vmem:[%s8049_s24 + $0x78] sm:$0xff] }
0x1669   :  { %2768 = vmax.xlane.f32.xlu0 %v2767_v56  ;;  %v6761_v56 = vld [vmem:[%s8049_s24 + $0x68] sm:$0xff] }
0x1676   :  { %2788 = vrot.lane.b32.xlu1 %v8362_v8, %s7981_s11 }
0x16b9   :  { %v2494_v57 = vpop.xlane.xlu0 %2493 }
0x16ba   :  { %7790 = vrcp.f32 %v2494_v57  ;;  %v6760_v57 = vld [vmem:[%s8049_s24 + $0x60] sm:$0xff] }
0x16bd   :  { %v2491_v58 = vpop.xlane.xlu0 %2490 }
0x16be   :  { %7792 = vrcp.f32 %v2491_v58 }
0x16c1   :  { %v2500_v59 = vpop.permute.xlu0 %2499 }
0x16c2   :  { %7377 = vmatprep.subr.mxu1 %v2500_v59 }
0x16c3   :  { %7378 = vmatpush3.msra.mxu1 %v2500_v59 }
0x16c4   :  { %7382 = vmatprep.subr.mxu1 %v6748_v60 }
0x16c7   :  { %v7791_v61 = vpop.eup %7790 }
0x16c8   :  { %v2498_v0 = vmul.f32 %v7791_v61, %v7785_v49 }
0x16cb   :  { %v7793_v62 = vpop.eup %7792 }
0x16cc   :  { %v2497_v63 = vmul.f32 %v7793_v62, %v7787_v50 }
0x16ce   :  { %7379 = vmatprep.mubr.msk.f32.mxu1 %vm359_vm2, %v2497_v63 }
0x16cf   :  { %7380 = vmatmul.mubr.msk.f32.vlgmr.msra.gmra.mxu1 %vm359_vm2, %v2498_v0 }
0x16d0   :  { %7383 = vmatpush3.msra.mxu1 %v6748_v60 }
0x16ee   :  { %v2778_v1 = vpop.xlane.xlu1 %2777 }
0x16f2   :  { %v2789_v8 = vpop.permute.xlu1 %2788  ;;  %v2769_v6 = vpop.xlane.xlu0 %2768 }
0x16f3   :  { %v2771_v7 = vsub.f32 %v2763_v55, %v2769_v6  ;;  %7394 = vmatprep.subr.mxu1 %v2789_v8  ;;  %v6762_v55 = vld [vmem:[%s8049_s24 + $0x70] sm:$0xff] }
0x16f5   :  { %v2774_v9 = vmul.f32 1.442695, %v2771_v7 }
0x16f7   :  { %7794 = vpow2.f32 %v2774_v9 }
0x16f8   :  { %7796 = vrcp.f32 %v2778_v1  ;;  %v6805_v1 = vld [vmem:[%s8059_s6 + $0x1] ss:$0 sm:$0xff]  ;;  %s8947_s6 = sld [smem:[#allocation15_spill]] }
0x1704   :  { %v7795_v12 = vpop.eup %7794 }
0x1705   :  { %v2779_v13 = vsel %vm359_vm2, %v7795_v12, 0.0  ;;  %v7797_v17 = vpop.eup %7796 }
0x1706   :  { %2780 = vadd.xlane.f32.xlu0 %v2779_v13  ;;  %v2784_v22 = vmul.f32 %v7797_v17, %v7789_v18  ;;  %v6751_v18 = vld [vmem:[%s8039_s14 + $0x20] sm:$0xff]  ;;  %v6759_v17 = vld [vmem:[%s8049_s24 + $0x58] sm:$0xff]  ;;  %s8943_s14 = sld [smem:[#allocation23_spill]] }
0x1707   :  { %7412 = vmatprep.subr.mxu0 %v6751_v18 }
0x1708   :  { %7413 = vmatpush3.msra.mxu0 %v6751_v18 }
0x1709   :  { %7436 = vmatprep.subr.mxu0 %v7982_v52 }
0x171c   :  { %2786 = vrot.lane.b32.xlu0 %v8364_v11, %s7981_s11 }
0x178f   :  { %v7381_v19 = vpop.f32.mrf.mxu1  ;;  %v2781_v20 = vpop.xlane.xlu0 %2780 }
0x1790   :  { %7798 = vrcp.f32 %v2781_v20  ;;  %v6757_v20 = vld [vmem:[%s8049_s24 + $0x48] sm:$0xff] }
0x1791   :  { %v2577_v21 = vpop.f32.mrf.mxu1 }
0x1792   :  { %7384 = vmatprep.mubr.msk.f32.mxu1 %vm271_vm1, %v2577_v21  ;;  %v6756_v21 = vld [vmem:[%s8049_s24 + $0x40] sm:$0xff] }
0x1793   :  { %7385 = vmatmul.mubr.msk.f32.vlgmr.msra.gmra.mxu1 %vm271_vm1, %v7381_v19  ;;  %v2787_v23 = vpop.permute.xlu0 %2786  ;;  %v6758_v19 = vld [vmem:[%s8049_s24 + $0x50] sm:$0xff]  ;;  %s8945_s24 = sld [smem:[#allocation13_spill]] }
0x1794   :  { %7395 = vmatpush3.msra.mxu1 %v2789_v8  ;;  %7398 = vmatprep.mubr.msk.f32.mxu1 %vm359_vm2, %v2784_v22  ;;  %v6807_v22 = vld [vmem:[%s8044_s19 + $0x1] ss:$0 sm:$0xff]  ;;  %s8944_s19 = sld [smem:[#allocation24_spill]] }
0x1795   :  { %7396 = vmatprep.subr.mxu1 %v2787_v23 }
0x1796   :  { %7397 = vmatpush3.msra.mxu1 %v2787_v23 }
0x1797   :  { %7401 = vmatprep.subr.mxu1 %v6749_v10 }
0x179d   :  { %v7799_v11 = vpop.eup %7798 }
0x179e   :  { %v2785_v24 = vmul.f32 %v7799_v11, %v7795_v12  ;;  %v6806_v12 = vld [vmem:[%s8064_s12 + $0x1] ss:$0 sm:$0xff]  ;;  %s8948_s12 = sld [smem:[#allocation19_spill]] }
0x17a0   :  { %7399 = vmatmul.mubr.msk.f32.vlgmr.msra.gmra.mxu1 %vm359_vm2, %v2785_v24 }
0x17a1   :  { %7402 = vmatpush3.msra.mxu1 %v6749_v10 }
0x17a2   :  { %7417 = vmatprep.subr.mxu1 %v6763_v54 }
0x1853   :  { %v7386_v30 = vpop.f32.mrf.mxu1 }
0x1854   :  { %v2668_v32 = vadd.f32 %v7386_v30, %v2379_v29 }
0x1855   :  { %v2658_v34 = vpop.f32.mrf.mxu1 }
0x1856   :  { %v2667_v35 = vadd.f32 %v2658_v34, %v2374_v31  ;;  %v6810_v34 = vld [vmem:[%s8054_s30 + $0x1] ss:$0 sm:$0xff]  ;;  %s8946_s30 = sld [smem:[#allocation14_spill]] }
0x1860   :  { %v7400_v37 = vpop.f32.mrf.mxu1 }
0x1862   :  { %v2864_v38 = vpop.f32.mrf.mxu1 }
0x1863   :  { %7403 = vmatprep.mubr.msk.f32.mxu1 %vm271_vm1, %v2864_v38 }
0x1864   :  { %7404 = vmatmul.mubr.msk.f32.vlgmr.msra.gmra.mxu1 %vm271_vm1, %v7400_v37 }
0x1865   :  { %7418 = vmatpush3.msra.mxu1 %v6763_v54 }
0x1866   :  { %7419 = vmatprep.subr.mxu1 %v6762_v55 }
0x1867   :  { %7420 = vmatpush3.msra.mxu1 %v6762_v55 }
0x1868   :  { %7421 = vmatprep.subr.mxu1 %v6761_v56 }
0x1869   :  { %7422 = vmatpush3.msra.mxu1 %v6761_v56 }
0x186a   :  { %7423 = vmatprep.subr.mxu1 %v6760_v57 }
0x186b   :  { %7424 = vmatpush3.msra.mxu1 %v6760_v57 }
0x186c   :  { %7425 = vmatprep.subr.mxu1 %v6759_v17 }
0x186d   :  { %7426 = vmatpush3.msra.mxu1 %v6759_v17  ;;  %v3310_v17 = vld [vmem:[%s8943_s14 + $0x10] sm:$0xff] }
0x186e   :  { %7427 = vmatprep.subr.mxu1 %v6758_v19 }
0x186f   :  { %7428 = vmatpush3.msra.mxu1 %v6758_v19  ;;  %v3309_v19 = vld [vmem:[%s8943_s14 + $0x8] sm:$0xff] }
0x1870   :  { %7429 = vmatprep.subr.mxu1 %v6757_v20 }
0x1871   :  { %7430 = vmatpush3.msra.mxu1 %v6757_v20  ;;  %v3308_v20 = vld [vmem:[%s8943_s14] sm:$0xff] }
0x1872   :  { %7431 = vmatprep.subr.mxu1 %v6756_v21 }
0x1873   :  { %7432 = vmatpush3.msra.mxu1 %v6756_v21 }
0x1924   :  { %v7405_v39 = vpop.f32.mrf.mxu1 }
0x1925   :  { %v2955_v40 = vadd.f32 %v7405_v39, %v2668_v32 }
0x1926   :  { %v2945_v41 = vpop.f32.mrf.mxu1 }
0x1927   :  { %v2957_v27 = vadd.f32 %v2955_v40, %v8355_v4  ;;  %v2954_v43 = vadd.f32 %v2945_v41, %v2667_v35 }
0x1929   :  { %v2956_v25 = vadd.f32 %v2954_v43, %v8353_v3  ;;  %v2965_v28 = vadd.f32 %v6804_v42, %v2957_v27  ;;  %v3399_v43 = vld [vmem:[%s8939_s25 + $0x18] sm:$0xff] }
0x192a   :  { %7454 = vmatprep.subr.mxu1 %v3399_v43 }
0x192b   :  { %v2969_v26 = vsel %vm183_vm0, %v2965_v28, 0.0  ;;  %v2964_v44 = vadd.f32 %v6804_v42, %v2956_v25  ;;  %v3398_v25 = vld [vmem:[%s8939_s25 + $0x10] sm:$0xff] }
0x192c   :  { %2970 = vadd.xlane.f32.xlu0 %v2969_v26  ;;  %v3397_v26 = vld [vmem:[%s8939_s25 + $0x8] sm:$0xff] }
0x192d   :  { %v2966_v45 = vsel %vm183_vm0, %v2964_v44, 0.0 }
0x192e   :  { %2967 = vadd.xlane.f32.xlu1 %v2966_v45  ;;  %v8531_v45 = vld [vmem:[%s8940_s29 + $0x8] sm:$0xff] }
0x19b5   :  { %v2971_v46 = vpop.xlane.xlu0 %2970 }
0x19b6   :  { %v2973_v47 = vmul.f32 0.03125, %v2971_v46 }
0x19b7   :  { %v2968_v48 = vpop.xlane.xlu1 %2967 }
0x19b8   :  { %v2975_v49 = vsub.f32 %v2965_v28, %v2973_v47  ;;  %v2972_v4 = vmul.f32 0.03125, %v2968_v48  ;;  %v8524_v28 = vld [vmem:[%s8940_s29] sm:$0xff] }
0x19ba   :  { %v2974_v5 = vsub.f32 %v2964_v44, %v2972_v4  ;;  %v2977_v50 = vmul.f32 %v2975_v49, %v2975_v49  ;;  %v3396_v44 = vld [vmem:[%s8939_s25] sm:$0xff] }
0x19bc   :  { %v2981_v3 = vsel %vm183_vm0, %v2977_v50, 0.0  ;;  %v2976_v51 = vmul.f32 %v2974_v5, %v2974_v5 }
0x19bd   :  { %2982 = vadd.xlane.f32.xlu0 %v2981_v3 }
0x19be   :  { %v2978_v2 = vsel %vm183_vm0, %v2976_v51, 0.0 }
0x19bf   :  { %2979 = vadd.xlane.f32.xlu1 %v2978_v2 }
0x1a46   :  { %v2983_v58 = vpop.xlane.xlu0 %2982 }
0x1a47   :  { %v2985_v59 = vmul.f32 0.03125, %v2983_v58 }
0x1a48   :  { %v2980_v60 = vpop.xlane.xlu1 %2979 }
0x1a49   :  { %v2987_v61 = vadd.f32 1e-05, %v2985_v59  ;;  %v2984_v62 = vmul.f32 0.03125, %v2980_v60 }
0x1a4b   :  { %7800 = vrsqrt.f32 %v2987_v61  ;;  %v2986_v63 = vadd.f32 1e-05, %v2984_v62 }
0x1a4d   :  { %7802 = vrsqrt.f32 %v2986_v63  ;;  %v6813_v63 = vld [vmem:[%s8069_s20 + $0x1] ss:$0 sm:$0xff]  ;;  %s8949_s20 = sld [smem:[#allocation20_spill]] }
0x1a58   :  { %v7801_v0 = vpop.eup %7800 }
0x1a59   :  { %v2991_v8 = vmul.f32 %v7801_v0, %v2975_v49 }
0x1a5a   :  { %v7803_v6 = vpop.eup %7802 }
0x1a5b   :  { %v2990_v7 = vmul.f32 %v7803_v6, %v2974_v5  ;;  %v2999_v9 = vmul.f32 %v6805_v1, %v2991_v8  ;;  %v6814_v8 = vld [vmem:[%s8074_s27 + $0x1] ss:$0 sm:$0xff]  ;;  %s8950_s27 = sld [smem:[#allocation17_spill]] }
0x1a5d   :  { %v2998_v13 = vmul.f32 %v6805_v1, %v2990_v7  ;;  %v3007_v16 = vadd.f32 %v6806_v12, %v2999_v9 }
0x1a5f   :  { %v3006_v14 = vadd.f32 %v6806_v12, %v2998_v13 }
0x1a61   :  { %7414 = vmatprep.mubr.msk.f32.mxu0 %vm183_vm0, %v3006_v14 }
0x1a62   :  { %7415 = vmatmul.mubr.msk.f32.vlgmr.msra.gmra.mxu0 %vm183_vm0, %v3007_v16 }
0x1a63   :  { %7440 = vmatprep.mubr.msk.f32.mxu0 %vm7983_vm8, %v7982_v52 }
0x1b22   :  { %v7416_v23 = vpop.f32.mrf.mxu0 }
0x1b23   :  { %v3092_v11 = vadd.f32 %v7416_v23, %v6807_v22 }
0x1b24   :  { %v3086_v24 = vpop.f32.mrf.mxu0 }
0x1b25   :  { %v3087_v10 = vadd.f32 %v6807_v22, %v3086_v24  ;;  %v3098_v29 = vmul.f32 0.01, %v3092_v11  ;;  %vm3096_vm6 = vcmp.ge.f32.partialorder %v3092_v11, 0.0 }
0x1b27   :  { %vm3095_vm7 = vcmp.ge.f32.partialorder %v3087_v10, 0.0  ;;  %v3097_v30 = vmul.f32 0.01, %v3087_v10  ;;  %v3100_v32 = vsel %vm3096_vm6, %v3092_v11, %v3098_v29 }
0x1b29   :  { %v3099_v31 = vsel %vm3095_vm7, %v3087_v10, %v3097_v30 }
0x1b2a   :  { %7433 = vmatprep.mubr.msk.f32.mxu1 %vm1561_vm5, %v3099_v31  ;;  %v6816_v31 = vld [vmem:[%s8944_s19] ss:$0 sm:$0xff] }
0x1b2b   :  { %7434 = vmatmul.mubr.msk.f32.vlgmr.msra.gmra.mxu1 %vm1561_vm5, %v3100_v32 }
0x1b2c   :  { %7455 = vmatpush3.msra.mxu1 %v3399_v43  ;;  %7462 = vmatprep.mubr.msk.f32.mxu1 %vm183_vm0, %v8524_v28 }
0x1b2d   :  { %7456 = vmatprep.subr.mxu1 %v3398_v25 }
0x1b2e   :  { %7457 = vmatpush3.msra.mxu1 %v3398_v25 }
0x1b2f   :  { %7458 = vmatprep.subr.mxu1 %v3397_v26 }
0x1b30   :  { %7459 = vmatpush3.msra.mxu1 %v3397_v26 }
0x1b31   :  { %7460 = vmatprep.subr.mxu1 %v3396_v44 }
0x1b32   :  { %7461 = vmatpush3.msra.mxu1 %v3396_v44 }
0x1b33   :  { %7463 = vmatmul.mubr.msk.f32.vlgmr.msra.gmra.mxu1 %vm183_vm0, %v8531_v45 }
0x1beb   :  { %v7435_v35 = vpop.f32.mrf.mxu1 }
0x1bec   :  { %v3185_v37 = vadd.f32 %v7435_v35, %v6810_v34 }
0x1bed   :  { %v3179_v38 = vpop.f32.mrf.mxu1 }
0x1bee   :  { %v3180_v39 = vadd.f32 %v6810_v34, %v3179_v38  ;;  %v3189_v40 = vadd.f32 %v3185_v37, %v3007_v16  ;;  %v3311_v16 = vld [vmem:[%s8943_s14 + $0x18] sm:$0xff] }
0x1bf0   :  { %v3193_v41 = vsel %vm183_vm0, %v3189_v40, 0.0  ;;  %v3188_v42 = vadd.f32 %v3180_v39, %v3006_v14  ;;  %v3234_v14 = vld [vmem:[%s8942_s8] sm:$0x3] }
0x1bf1   :  { %3194 = vadd.xlane.f32.xlu1 %v3193_v41 }
0x1bf2   :  { %v3190_v27 = vsel %vm183_vm0, %v3188_v42, 0.0 }
0x1bf3   :  { %3191 = vadd.xlane.f32.xlu0 %v3190_v27  ;;  %v7464_v15 = vpop.f32.mrf.mxu1 }
0x1bf4   :  { %v8541_v18 = vadd.f32 %v7464_v15, %v6818_v53 }
0x1bf5   :  { %v3495_v54 = vpop.f32.mrf.mxu1 }
0x1bf6   :  { %v8545_v55 = vadd.f32 %v6818_v53, %v3495_v54 }
0x1c7a   :  { %v3195_v46 = vpop.xlane.xlu1 %3194 }
0x1c7b   :  { %v3197_v47 = vmul.f32 0.03125, %v3195_v46 }
0x1c7c   :  { %v3192_v48 = vpop.xlane.xlu0 %3191 }
0x1c7d   :  { %v3199_v49 = vsub.f32 %v3189_v40, %v3197_v47  ;;  %v3196_v4 = vmul.f32 0.03125, %v3192_v48 }
0x1c7f   :  { %v3198_v5 = vsub.f32 %v3188_v42, %v3196_v4  ;;  %v3201_v50 = vmul.f32 %v3199_v49, %v3199_v49 }
0x1c81   :  { %v3205_v3 = vsel %vm183_vm0, %v3201_v50, 0.0  ;;  %v3200_v51 = vmul.f32 %v3198_v5, %v3198_v5 }
0x1c82   :  { %3206 = vadd.xlane.f32.xlu1 %v3205_v3 }
0x1c83   :  { %v3202_v2 = vsel %vm183_vm0, %v3200_v51, 0.0 }
0x1c84   :  { %3203 = vadd.xlane.f32.xlu0 %v3202_v2 }
0x1c93   :  { %3508 = vrot.lane.b32.xlu1 %v8541_v18, %s7971_s0 }
0x1c97   :  { %3712 = vrot.lane.b32.xlu1 %v8541_v18, %s7974_s23 }
0x1c9a   :  { %3506 = vrot.lane.b32.xlu0 %v8545_v55, %s7971_s0 }
0x1c9b   :  { %3710 = vrot.lane.b32.xlu1 %v8545_v55, %s7974_s23 }
0x1c9e   :  { %3706 = vrot.lane.b32.xlu0 %v8545_v55, %s7973_s22 }
0x1c9f   :  { %3708 = vrot.lane.b32.xlu1 %v8541_v18, %s7973_s22 }
0x1d0b   :  { %v3207_v56 = vpop.xlane.xlu1 %3206 }
0x1d0c   :  { %v3209_v57 = vmul.f32 0.03125, %v3207_v56 }
0x1d0d   :  { %v3204_v58 = vpop.xlane.xlu0 %3203 }
0x1d0e   :  { %v3211_v59 = vadd.f32 1e-05, %v3209_v57  ;;  %v3208_v60 = vmul.f32 0.03125, %v3204_v58 }
0x1d0f   :  { %v3509_v21 = vpop.permute.xlu1 %3508 }
0x1d10   :  { %7804 = vrsqrt.f32 %v3211_v59  ;;  %v3210_v61 = vadd.f32 1e-05, %v3208_v60 }
0x1d11   :  { %v3507_v23 = vpop.permute.xlu0 %3506 }
0x1d12   :  { %7806 = vrsqrt.f32 %v3210_v61 }
0x1d13   :  { %v3713_v24 = vpop.permute.xlu1 %3712 }
0x1d15   :  { %v3707_v10 = vpop.permute.xlu0 %3706 }
0x1d17   :  { %v3711_v29 = vpop.permute.xlu1 %3710 }
0x1d1b   :  { %v3709_v30 = vpop.permute.xlu1 %3708 }
0x1d1d   :  { %v7805_v62 = vpop.eup %7804 }
0x1d1e   :  { %v3215_v0 = vmul.f32 %v7805_v62, %v3199_v49 }
0x1d1f   :  { %v7807_v1 = vpop.eup %7806 }
0x1d20   :  { %v3223_v6 = vmul.f32 %v6813_v63, %v3215_v0  ;;  %v3214_v7 = vmul.f32 %v7807_v1, %v3198_v5 }
0x1d22   :  { %v3231_v9 = vadd.f32 %v6814_v8, %v3223_v6  ;;  %v3222_v12 = vmul.f32 %v6813_v63, %v3214_v7 }
0x1d24   :  { %3233 = vst.msk [vmem:[%s8159_s4 + $0x8] sm:$0xff] %vm183_vm0, %v3231_v9  ;;  %7437 = vmatpush3.msra.mxu0 %v3231_v9  ;;  %v3230_v13 = vadd.f32 %v6814_v8, %v3222_v12 }
0x1d25   :  { %7438 = vmatprep.subr.mxu0 %v7982_v52 }
0x1d26   :  { %3232 = vst.msk [vmem:[%s8159_s4] sm:$0xff] %vm183_vm0, %v3230_v13  ;;  %7439 = vmatpush3.msra.mxu0 %v3230_v13  ;;  %s8951_s4 = sld [smem:[#allocation16_spill]] }
0x1d27   :  { %7441 = vmatmul.mubr.msk.f32.vlgmr.msra.gmra.mxu0 %vm359_vm2, %v3234_v14  ;;  %7443 = vmatprep.subr.mxu0 %v7982_v52 }
0x1d28   :  { %7444 = vmatpush3.msra.mxu0 %v3311_v16  ;;  %7451 = vmatprep.mubr.msk.f32.mxu0 %vm7983_vm8, %v7982_v52 }
0x1d29   :  { %7445 = vmatprep.subr.mxu0 %v7982_v52 }
0x1d2a   :  { %7446 = vmatpush3.msra.mxu0 %v3310_v17 }
0x1d2b   :  { %7447 = vmatprep.subr.mxu0 %v7982_v52 }
0x1d2c   :  { %7448 = vmatpush3.msra.mxu0 %v3309_v19 }
0x1d2d   :  { %7449 = vmatprep.subr.mxu0 %v7982_v52 }
0x1d2e   :  { %7450 = vmatpush3.msra.mxu0 %v3308_v20 }
0x1d2f   :  { %7465 = vmatprep.subr.msk.mxu0 %vm271_vm1, %v3509_v21 }
0x1de7   :  { %v3304_v22 = vpop.f32.mrf.mxu0 }
0x1de8   :  { %7452 = vmatmul.mubr.msk.f32.vlgmr.msra.gmra.mxu0 %vm183_vm0, %v3304_v22 }
0x1de9   :  { %7466 = vmatpush3.xpose.msk.msra.mxu0 %vm271_vm1, %v3509_v21  ;;  %v7442_v11 = vpop.f32.mrf.mxu0  ;;  %7469 = vmatprep.mubr.msk.f32.mxu0 %vm271_vm1, %v8545_v55 }
0x1dea   :  { %7467 = vmatprep.subr.msk.mxu0 %vm271_vm1, %v3507_v23  ;;  %v3402_v11 = vld [vmem:[%s8945_s24 + $0x8] sm:$0xff] }
0x1ded   :  { %7468 = vmatpush3.xpose.msk.msra.mxu0 %vm271_vm1, %v3507_v23 }
0x1dee   :  { %7479 = vmatprep.subr.msk.mxu0 %vm271_vm1, %v3713_v24 }
0x1df0   :  { %7470 = vmatmul.mubr.msk.f32.vlgmr.msra.gmra.mxu0 %vm271_vm1, %v8541_v18 }
0x1df1   :  { %7480 = vmatpush3.xpose.msk.msra.mxu0 %vm271_vm1, %v3713_v24  ;;  %7483 = vmatprep.mubr.msk.f32.mxu0 %vm271_vm1, %v3707_v10 }
0x1df2   :  { %7481 = vmatprep.subr.msk.mxu0 %vm271_vm1, %v3711_v29 }
0x1df5   :  { %7482 = vmatpush3.xpose.msk.msra.mxu0 %vm271_vm1, %v3711_v29 }
0x1df8   :  { %7484 = vmatmul.mubr.msk.f32.vlgmr.msra.gmra.mxu0 %vm271_vm1, %v3709_v30 }
0x1ea8   :  { %v3388_v32 = vpop.f32.mrf.mxu0 }
0x1ea9   :  { %v3389_v34 = vadd.f32 %v6816_v31, %v3388_v32  ;;  %v3401_v32 = vld [vmem:[%s8945_s24] sm:$0xff] }
0x1eaa   :  { %v7453_v35 = vpop.f32.mrf.mxu0  ;;  %7498 = vmatprep.subr.mxu0 %v3401_v32 }
0x1eab   :  { %3393 = vst.msk [vmem:[#allocation2] sm:$0x3] %vm3392_vm9, %v3389_v34  ;;  %7499 = vmatpush3.msra.mxu0 %v3401_v32 }
0x1eb0   :  { %v7471_v37 = vpop.f32.mrf.mxu0 }
0x1eb1   :  { %v3594_v38 = vmul.f32 0.35355338, %v7471_v37 }
0x1eb2   :  { %v3584_v39 = vpop.f32.mrf.mxu0 }
0x1eb3   :  { %v3596_v40 = vadd.f32 %v8455_v33, %v3594_v38  ;;  %v3593_v41 = vmul.f32 0.35355338, %v3584_v39 }
0x1eb5   :  { %v3600_v42 = vsel %vm359_vm2, %v3596_v40, -inf  ;;  %v3595_v27 = vadd.f32 %v8460_v36, %v3593_v41 }
0x1eb6   :  { %3601 = vmax.xlane.f32.xlu1 %v3600_v42 }
0x1eb7   :  { %v3597_v43 = vsel %vm359_vm2, %v3595_v27, -inf }
0x1eb8   :  { %3598 = vmax.xlane.f32.xlu0 %v3597_v43  ;;  %v7485_v25 = vpop.f32.mrf.mxu0 }
0x1eb9   :  { %v3798_v44 = vmul.f32 0.35355338, %v7485_v25 }
0x1eba   :  { %v3788_v26 = vpop.f32.mrf.mxu0 }
0x1ebb   :  { %v3797_v46 = vmul.f32 0.35355338, %v3788_v26  ;;  %v3800_v49 = vadd.f32 %v8455_v33, %v3798_v44 }
0x1ebd   :  { %v3799_v47 = vadd.f32 %v8460_v36, %v3797_v46  ;;  %v3804_v4 = vsel %vm359_vm2, %v3800_v49, -inf }
0x1ebf   :  { %v3801_v48 = vsel %vm359_vm2, %v3799_v47, -inf }
0x1ec0   :  { %3802 = vmax.xlane.f32.xlu0 %v3801_v48 }
0x1ec4   :  { %3805 = vmax.xlane.f32.xlu0 %v3804_v4 }
0x1ec7   :  { %3621 = vrot.lane.b32.xlu1 %v8541_v18, %s7972_s5 }
0x1f3f   :  { %v3602_v5 = vpop.xlane.xlu1 %3601 }
0x1f40   :  { %v3604_v50 = vsub.f32 %v3596_v40, %v3602_v5 }
0x1f41   :  { %v3599_v3 = vpop.xlane.xlu0 %3598 }
0x1f42   :  { %v3607_v51 = vmul.f32 1.442695, %v3604_v50  ;;  %v3603_v2 = vsub.f32 %v3595_v27, %v3599_v3 }
0x1f43   :  { %v3622_v53 = vpop.permute.xlu1 %3621 }
0x1f44   :  { %7808 = vpow2.f32 %v3607_v51  ;;  %v3605_v15 = vmul.f32 1.442695, %v3603_v2  ;;  %7472 = vmatprep.subr.mxu1 %v3622_v53 }
0x1f45   :  { %7473 = vmatpush3.msra.mxu1 %v3622_v53 }
0x1f46   :  { %7810 = vpow2.f32 %v3605_v15 }
0x1f49   :  { %v3803_v54 = vpop.xlane.xlu0 %3802 }
0x1f4a   :  { %v3807_v1 = vsub.f32 %v3799_v47, %v3803_v54 }
0x1f4c   :  { %v3809_v8 = vmul.f32 1.442695, %v3807_v1 }
0x1f4d   :  { %v3806_v56 = vpop.xlane.xlu0 %3805 }
0x1f4e   :  { %v3808_v57 = vsub.f32 %v3800_v49, %v3806_v56 }
0x1f50   :  { %v3811_v58 = vmul.f32 1.442695, %v3808_v57 }
0x1f51   :  { %v7809_v59 = vpop.eup %7808 }
0x1f52   :  { %7812 = vpow2.f32 %v3811_v58  ;;  %v3612_v60 = vsel %vm359_vm2, %v7809_v59, 0.0 }
0x1f53   :  { %v7811_v61 = vpop.eup %7810  ;;  %3613 = vadd.xlane.f32.xlu0 %v3612_v60  ;;  %7814 = vpow2.f32 %v3809_v8 }
0x1f54   :  { %v3609_v62 = vsel %vm359_vm2, %v7811_v61, 0.0 }
0x1f55   :  { %3610 = vadd.xlane.f32.xlu1 %v3609_v62 }
0x1f5f   :  { %v7813_v63 = vpop.eup %7812 }
0x1f60   :  { %v3816_v0 = vsel %vm359_vm2, %v7813_v63, 0.0  ;;  %v7815_v6 = vpop.eup %7814 }
0x1f61   :  { %3817 = vadd.xlane.f32.xlu0 %v3816_v0  ;;  %v3813_v7 = vsel %vm359_vm2, %v7815_v6, 0.0 }
0x1f66   :  { %3825 = vrot.lane.b32.xlu1 %v8541_v18, %s7975_s26 }
0x1f77   :  { %3619 = vrot.lane.b32.xlu0 %v8545_v55, %s7972_s5 }
0x1f7b   :  { %4078 = vrot.lane.b32.xlu0 %v8541_v18, %s7979_s7 }
0x1f7f   :  { %4072 = vrot.lane.b32.xlu0 %v8545_v55, %s7976_s28 }
0x1f83   :  { %4365 = vrot.lane.b32.xlu0 %v8541_v18, %s7977_s1 }
0x1f87   :  { %4359 = vrot.lane.b32.xlu0 %v8545_v55, %s7978_s2 }
0x1f8a   :  { %3814 = vadd.xlane.f32.xlu1 %v3813_v7 }
0x1f9b   :  { %3823 = vrot.lane.b32.xlu1 %v8545_v55, %s7975_s26 }
0x1f9f   :  { %4076 = vrot.lane.b32.xlu1 %v8545_v55, %s7979_s7 }
0x1fa3   :  { %4074 = vrot.lane.b32.xlu1 %v8541_v18, %s7976_s28 }
0x1fa7   :  { %4363 = vrot.lane.b32.xlu1 %v8545_v55, %s7977_s1 }
0x1fab   :  { %4361 = vrot.lane.b32.xlu1 %v8541_v18, %s7978_s2 }
0x1fdc   :  { %v3614_v9 = vpop.xlane.xlu0 %3613 }
0x1fdd   :  { %7816 = vrcp.f32 %v3614_v9 }
0x1fde   :  { %v3611_v12 = vpop.xlane.xlu1 %3610 }
0x1fdf   :  { %7818 = vrcp.f32 %v3611_v12 }
0x1fe2   :  { %v3826_v21 = vpop.permute.xlu1 %3825 }
0x1fea   :  { %v3818_v13 = vpop.xlane.xlu0 %3817  ;;  %v7817_v14 = vpop.eup %7816 }
0x1feb   :  { %v3618_v20 = vmul.f32 %v7817_v14, %v7809_v59  ;;  %7820 = vrcp.f32 %v3818_v13 }
0x1fec   :  { %v7819_v16 = vpop.eup %7818 }
0x1fed   :  { %v3617_v17 = vmul.f32 %v7819_v16, %v7811_v61 }
0x1fee   :  { %v3620_v19 = vpop.permute.xlu0 %3619 }
0x1fef   :  { %7474 = vmatprep.subr.mxu1 %v3620_v19  ;;  %7476 = vmatprep.mubr.msk.f32.mxu1 %vm359_vm2, %v3617_v17 }
0x1ff0   :  { %7475 = vmatpush3.msra.mxu1 %v3620_v19 }
0x1ff1   :  { %7477 = vmatmul.mubr.msk.f32.vlgmr.msra.gmra.mxu1 %vm359_vm2, %v3618_v20  ;;  %7486 = vmatprep.subr.mxu1 %v3826_v21 }
0x1ff2   :  { %7487 = vmatpush3.msra.mxu1 %v3826_v21  ;;  %v4079_v31 = vpop.permute.xlu0 %4078 }
0x1ff6   :  { %v4073_v37 = vpop.permute.xlu0 %4072 }
0x1ff8   :  { %v7821_v24 = vpop.eup %7820 }
0x1ff9   :  { %v3822_v30 = vmul.f32 %v7821_v24, %v7813_v63 }
0x1ffa   :  { %v4366_v41 = vpop.permute.xlu0 %4365 }
0x1ffe   :  { %v4360_v27 = vpop.permute.xlu0 %4359 }
0x2013   :  { %v3815_v22 = vpop.xlane.xlu1 %3814 }
0x2014   :  { %7822 = vrcp.f32 %v3815_v22 }
0x2017   :  { %v3824_v23 = vpop.permute.xlu1 %3823 }
0x2018   :  { %7488 = vmatprep.subr.mxu1 %v3824_v23 }
0x2019   :  { %7489 = vmatpush3.msra.mxu1 %v3824_v23  ;;  %v3403_v23 = vld [vmem:[%s8945_s24 + $0x10] sm:$0xff] }
0x201a   :  { %7493 = vmatprep.subr.mxu1 %v3402_v11 }
0x201b   :  { %v4077_v39 = vpop.permute.xlu1 %4076 }
0x201f   :  { %v4075_v42 = vpop.permute.xlu1 %4074 }
0x2021   :  { %v7823_v10 = vpop.eup %7822 }
0x2022   :  { %v3821_v29 = vmul.f32 %v7823_v10, %v7815_v6 }
0x2023   :  { %v4364_v43 = vpop.permute.xlu1 %4363 }
0x2024   :  { %7490 = vmatprep.mubr.msk.f32.mxu1 %vm359_vm2, %v3821_v29 }
0x2025   :  { %7491 = vmatmul.mubr.msk.f32.vlgmr.msra.gmra.mxu1 %vm359_vm2, %v3822_v30 }
0x2026   :  { %7494 = vmatpush3.msra.mxu1 %v3402_v11 }
0x2027   :  { %7503 = vmatprep.subr.msk.mxu1 %vm271_vm1, %v4079_v31  ;;  %v4362_v25 = vpop.permute.xlu1 %4361 }
0x20b1   :  { %v7478_v34 = vpop.f32.mrf.mxu1 }
0x20b3   :  { %v3697_v35 = vpop.f32.mrf.mxu1 }
0x20b4   :  { %7500 = vmatprep.mubr.msk.f32.mxu0 %vm271_vm1, %v3697_v35 }
0x20b5   :  { %7501 = vmatmul.mubr.msk.f32.vlgmr.msra.gmra.mxu0 %vm271_vm1, %v7478_v34 }
0x20e5   :  { %v7492_v38 = vpop.f32.mrf.mxu1 }
0x20e7   :  { %v3901_v40 = vpop.f32.mrf.mxu1 }
0x20e8   :  { %7495 = vmatprep.mubr.msk.f32.mxu1 %vm271_vm1, %v3901_v40 }
0x20e9   :  { %7496 = vmatmul.mubr.msk.f32.vlgmr.msra.gmra.mxu1 %vm271_vm1, %v7492_v38 }
0x20ea   :  { %7504 = vmatpush3.xpose.msk.msra.mxu1 %vm271_vm1, %v4079_v31  ;;  %7507 = vmatprep.mubr.msk.f32.mxu1 %vm271_vm1, %v4073_v37 }
0x20eb   :  { %7505 = vmatprep.subr.msk.mxu1 %vm271_vm1, %v4077_v39 }
0x20ee   :  { %7506 = vmatpush3.xpose.msk.msra.mxu1 %vm271_vm1, %v4077_v39 }
0x20ef   :  { %7522 = vmatprep.subr.msk.mxu1 %vm271_vm1, %v4366_v41 }
0x20f1   :  { %7508 = vmatmul.mubr.msk.f32.vlgmr.msra.gmra.mxu1 %vm271_vm1, %v4075_v42 }
0x20f2   :  { %7523 = vmatpush3.xpose.msk.msra.mxu1 %vm271_vm1, %v4366_v41  ;;  %7526 = vmatprep.mubr.msk.f32.mxu1 %vm271_vm1, %v4360_v27 }
0x20f3   :  { %7524 = vmatprep.subr.msk.mxu1 %vm271_vm1, %v4364_v43 }
0x20f6   :  { %7525 = vmatpush3.xpose.msk.msra.mxu1 %vm271_vm1, %v4364_v43 }
0x20f9   :  { %7527 = vmatmul.mubr.msk.f32.vlgmr.msra.gmra.mxu1 %vm271_vm1, %v4362_v25  ;;  %v3404_v25 = vld [vmem:[%s8945_s24 + $0x18] sm:$0xff] }
0x2175   :  { %v7502_v26 = vpop.f32.mrf.mxu0 }
0x2177   :  { %v4063_v37 = vpop.f32.mrf.mxu0 }
0x21a9   :  { %v7497_v44 = vpop.f32.mrf.mxu1 }
0x21aa   :  { %v8650_v46 = vadd.f32 %v7502_v26, %v7497_v44 }
0x21ab   :  { %v8652_v47 = vpop.f32.mrf.mxu1 }
0x21ac   :  { %v4064_v44 = vadd.f32 %v4063_v37, %v8652_v47 }
0x21b1   :  { %v7509_v48 = vpop.f32.mrf.mxu1 }
0x21b2   :  { %v4164_v49 = vmul.f32 0.35355338, %v7509_v48 }
0x21b3   :  { %v4154_v4 = vpop.f32.mrf.mxu1 }
0x21b4   :  { %v4166_v5 = vadd.f32 %v8455_v33, %v4164_v49  ;;  %v4163_v50 = vmul.f32 0.35355338, %v4154_v4 }
0x21b6   :  { %v4165_v3 = vadd.f32 %v8460_v36, %v4163_v50  ;;  %v4170_v51 = vsel %vm359_vm2, %v4166_v5, -inf }
0x21b7   :  { %4171 = vmax.xlane.f32.xlu1 %v4170_v51 }
0x21b8   :  { %v4167_v2 = vsel %vm359_vm2, %v4165_v3, -inf }
0x21b9   :  { %4168 = vmax.xlane.f32.xlu0 %v4167_v2  ;;  %v7528_v53 = vpop.f32.mrf.mxu1 }
0x21ba   :  { %v4451_v13 = vmul.f32 0.35355338, %v7528_v53  ;;  %v6853_v53 = vld [vmem:[%s8946_s30] ss:$0 sm:$0xff] }
0x21bb   :  { %v4441_v15 = vpop.f32.mrf.mxu1 }
0x21bc   :  { %v4450_v54 = vmul.f32 0.35355338, %v4441_v15  ;;  %v4453_v16 = vadd.f32 %v8455_v33, %v4451_v13 }
0x21be   :  { %v4452_v56 = vadd.f32 %v8460_v36, %v4450_v54  ;;  %v4457_v19 = vsel %vm359_vm2, %v4453_v16, -inf }
0x21c0   :  { %v4454_v57 = vsel %vm359_vm2, %v4452_v56, -inf }
0x21c8   :  { %4191 = vrot.lane.b32.xlu1 %v8541_v18, %s7980_s10 }
0x21ec   :  { %4455 = vmax.xlane.f32.xlu1 %v4454_v57 }
0x2240   :  { %v4172_v58 = vpop.xlane.xlu1 %4171 }
0x2241   :  { %v4174_v59 = vsub.f32 %v4166_v5, %v4172_v58 }
0x2242   :  { %v4169_v60 = vpop.xlane.xlu0 %4168 }
0x2243   :  { %v4177_v61 = vmul.f32 1.442695, %v4174_v59  ;;  %v4173_v62 = vsub.f32 %v4165_v3, %v4169_v60 }
0x2244   :  { %v4192_v63 = vpop.permute.xlu1 %4191 }
0x2245   :  { %7824 = vpow2.f32 %v4177_v61  ;;  %v4175_v0 = vmul.f32 1.442695, %v4173_v62  ;;  %7510 = vmatprep.subr.mxu0 %v4192_v63 }
0x2246   :  { %7511 = vmatpush3.msra.mxu0 %v4192_v63 }
0x2247   :  { %7826 = vpow2.f32 %v4175_v0 }
0x2252   :  { %v7825_v1 = vpop.eup %7824 }
0x2253   :  { %v4182_v8 = vsel %vm359_vm2, %v7825_v1, 0.0 }
0x2254   :  { %v7827_v6 = vpop.eup %7826  ;;  %4183 = vadd.xlane.f32.xlu0 %v4182_v8 }
0x2255   :  { %v4179_v36 = vsel %vm359_vm2, %v7827_v6, 0.0 }
0x2258   :  { %4180 = vadd.xlane.f32.xlu0 %v4179_v36  ;;  %v3408_v36 = vld [vmem:[%s8947_s6 + $0x10] sm:$0xff] }
0x226e   :  { %4189 = vrot.lane.b32.xlu0 %v8545_v55, %s7980_s10 }
0x2275   :  { %v4456_v7 = vpop.xlane.xlu1 %4455 }
0x2276   :  { %v4460_v9 = vsub.f32 %v4452_v56, %v4456_v7  ;;  %v3407_v7 = vld [vmem:[%s8947_s6 + $0x8] sm:$0xff] }
0x2278   :  { %v4462_v12 = vmul.f32 1.442695, %v4460_v9  ;;  %v3406_v9 = vld [vmem:[%s8947_s6] sm:$0xff] }
0x227a   :  { %7828 = vpow2.f32 %v4462_v12 }
0x2287   :  { %v7829_v14 = vpop.eup %7828 }
0x2288   :  { %v4466_v17 = vsel %vm359_vm2, %v7829_v14, 0.0 }
0x2289   :  { %4467 = vadd.xlane.f32.xlu1 %v4466_v17 }
0x228d   :  { %4458 = vmax.xlane.f32.xlu0 %v4457_v19 }
0x229a   :  { %4478 = vrot.lane.b32.xlu1 %v8541_v18, %s7981_s11 }
0x22dd   :  { %v4184_v20 = vpop.xlane.xlu0 %4183 }
0x22de   :  { %7830 = vrcp.f32 %v4184_v20 }
0x22e1   :  { %v4181_v21 = vpop.xlane.xlu0 %4180 }
0x22e2   :  { %7832 = vrcp.f32 %v4181_v21  ;;  %v6854_v21 = vld [vmem:[%s8948_s12] ss:$0 sm:$0xff] }
0x22e5   :  { %v4190_v22 = vpop.permute.xlu0 %4189 }
0x22e6   :  { %7512 = vmatprep.subr.mxu0 %v4190_v22 }
0x22e7   :  { %7513 = vmatpush3.msra.mxu0 %v4190_v22 }
0x22e8   :  { %7517 = vmatprep.subr.mxu0 %v3403_v23 }
0x22eb   :  { %v7831_v11 = vpop.eup %7830 }
0x22ec   :  { %v4188_v10 = vmul.f32 %v7831_v11, %v7825_v1 }
0x22ef   :  { %v7833_v33 = vpop.eup %7832 }
0x22f0   :  { %v4187_v24 = vmul.f32 %v7833_v33, %v7827_v6  ;;  %v3409_v6 = vld [vmem:[%s8947_s6 + $0x18] sm:$0xff] }
0x22f1   :  { %7541 = vmatprep.subr.mxu1 %v3409_v6 }
0x22f2   :  { %7514 = vmatprep.mubr.msk.f32.mxu0 %vm359_vm2, %v4187_v24  ;;  %7542 = vmatpush3.msra.mxu1 %v3409_v6  ;;  %v6855_v24 = vld [vmem:[%s8949_s20] ss:$0 sm:$0xff] }
0x22f3   :  { %7515 = vmatmul.mubr.msk.f32.vlgmr.msra.gmra.mxu0 %vm359_vm2, %v4188_v10  ;;  %7543 = vmatprep.subr.mxu1 %v3408_v36 }
0x22f4   :  { %7518 = vmatpush3.msra.mxu0 %v3403_v23  ;;  %7544 = vmatpush3.msra.mxu1 %v3408_v36 }
0x22f5   :  { %7545 = vmatprep.subr.mxu1 %v3407_v7 }
0x22f6   :  { %7546 = vmatpush3.msra.mxu1 %v3407_v7  ;;  %v6864_v7 = vld [vmem:[%s8954_s18] ss:$0 sm:$0xff] }
0x22f7   :  { %7547 = vmatprep.subr.mxu1 %v3406_v9 }
0x22f8   :  { %7548 = vmatpush3.msra.mxu1 %v3406_v9 }
0x2312   :  { %v4468_v29 = vpop.xlane.xlu1 %4467 }
0x2316   :  { %v4479_v18 = vpop.permute.xlu1 %4478  ;;  %v4459_v30 = vpop.xlane.xlu0 %4458 }
0x2317   :  { %v4461_v31 = vsub.f32 %v4453_v16, %v4459_v30  ;;  %7529 = vmatprep.subr.mxu0 %v4479_v18  ;;  %v3411_v30 = vld [vmem:[%s8950_s27] sm:$0x3] }
0x2319   :  { %v4464_v32 = vmul.f32 1.442695, %v4461_v31  ;;  %v6856_v31 = vld [vmem:[%s8951_s4] ss:$0 sm:$0xff] }
0x231b   :  { %7834 = vpow2.f32 %v4464_v32 }
0x231c   :  { %7836 = vrcp.f32 %v4468_v29 }
0x2328   :  { %v7835_v34 = vpop.eup %7834 }
0x2329   :  { %v4469_v35 = vsel %vm359_vm2, %v7835_v34, 0.0  ;;  %v7837_v38 = vpop.eup %7836 }
0x232a   :  { %4470 = vadd.xlane.f32.xlu0 %v4469_v35  ;;  %v4474_v42 = vmul.f32 %v7837_v38, %v7829_v14 }
0x2340   :  { %4476 = vrot.lane.b32.xlu0 %v8545_v55, %s7981_s11 }
0x23b3   :  { %v7516_v39 = vpop.f32.mrf.mxu0  ;;  %v4471_v40 = vpop.xlane.xlu0 %4470 }
0x23b4   :  { %7838 = vrcp.f32 %v4471_v40 }
0x23b5   :  { %v4267_v41 = vpop.f32.mrf.mxu0 }
0x23b6   :  { %7519 = vmatprep.mubr.msk.f32.mxu0 %vm271_vm1, %v4267_v41 }
0x23b7   :  { %7520 = vmatmul.mubr.msk.f32.vlgmr.msra.gmra.mxu0 %vm271_vm1, %v7516_v39  ;;  %v4477_v27 = vpop.permute.xlu0 %4476 }
0x23b8   :  { %7530 = vmatpush3.msra.mxu0 %v4479_v18  ;;  %7533 = vmatprep.mubr.msk.f32.mxu0 %vm359_vm2, %v4474_v42  ;;  %v6859_v42 = vld [vmem:[%s8952_s15] ss:$0 sm:$0xff] }
0x23b9   :  { %7531 = vmatprep.subr.mxu0 %v4477_v27 }
0x23ba   :  { %7532 = vmatpush3.msra.mxu0 %v4477_v27 }
0x23bb   :  { %7536 = vmatprep.subr.mxu0 %v3404_v25 }
0x23c1   :  { %v7839_v55 = vpop.eup %7838 }
0x23c2   :  { %v4475_v43 = vmul.f32 %v7839_v55, %v7835_v34 }
0x23c4   :  { %7534 = vmatmul.mubr.msk.f32.vlgmr.msra.gmra.mxu0 %vm359_vm2, %v4475_v43 }
0x23c5   :  { %7537 = vmatpush3.msra.mxu0 %v3404_v25 }
0x23c6   :  { %7552 = vmatprep.subr.msk.mxu0 %vm4804_vm10, %v3411_v30 }
0x2477   :  { %v7521_v26 = vpop.f32.mrf.mxu0 }
0x2478   :  { %v4358_v48 = vadd.f32 %v7521_v26, %v8650_v46 }
0x2479   :  { %v4348_v49 = vpop.f32.mrf.mxu0 }
0x247a   :  { %v4357_v4 = vadd.f32 %v4348_v49, %v4064_v44 }
0x2484   :  { %v7535_v5 = vpop.f32.mrf.mxu0 }
0x2486   :  { %v4554_v50 = vpop.f32.mrf.mxu0 }
0x2487   :  { %7538 = vmatprep.mubr.msk.f32.mxu0 %vm271_vm1, %v4554_v50 }
0x2488   :  { %7539 = vmatmul.mubr.msk.f32.vlgmr.msra.gmra.mxu0 %vm271_vm1, %v7535_v5 }
0x2489   :  { %7553 = vmatpush3.msk.msra.mxu0 %vm4804_vm10, %v3411_v30  ;;  %v8758_v30 = vld [vmem:[%s8004_s13 + $0x8] sm:$0xff] }
0x2548   :  { %v7540_v3 = vpop.f32.mrf.mxu0 }
0x2549   :  { %v4645_v51 = vadd.f32 %v7540_v3, %v4358_v48 }
0x254a   :  { %v4635_v2 = vpop.f32.mrf.mxu0 }
0x254b   :  { %v4647_v15 = vadd.f32 %v4645_v51, %v8531_v45  ;;  %v4644_v54 = vadd.f32 %v4635_v2, %v4357_v4 }
0x254d   :  { %v4646_v56 = vadd.f32 %v4644_v54, %v8524_v28  ;;  %v4655_v47 = vadd.f32 %v6853_v53, %v4647_v15 }
0x254f   :  { %v4659_v46 = vsel %vm183_vm0, %v4655_v47, 0.0  ;;  %v4654_v57 = vadd.f32 %v6853_v53, %v4646_v56 }
0x2550   :  { %4660 = vadd.xlane.f32.xlu0 %v4659_v46  ;;  %v6867_v46 = vld [vmem:[%s8939_s25 + $0x30] sm:$0xff] }
0x2551   :  { %v4656_v58 = vsel %vm183_vm0, %v4654_v57, 0.0 }
0x2552   :  { %4657 = vadd.xlane.f32.xlu1 %v4656_v58  ;;  %v6865_v58 = vld [vmem:[%s8939_s25 + $0x20] sm:$0xff] }
0x25d9   :  { %v4661_v59 = vpop.xlane.xlu0 %4660 }
0x25da   :  { %v4663_v60 = vmul.f32 0.03125, %v4661_v59 }
0x25db   :  { %v4658_v61 = vpop.xlane.xlu1 %4657 }
0x25dc   :  { %v4665_v62 = vsub.f32 %v4655_v47, %v4663_v60  ;;  %v4662_v45 = vmul.f32 0.03125, %v4658_v61  ;;  %v6868_v47 = vld [vmem:[%s8939_s25 + $0x38] sm:$0xff] }
0x25dd   :  { %7557 = vmatprep.subr.mxu0 %v6868_v47 }
0x25de   :  { %v4664_v63 = vsub.f32 %v4654_v57, %v4662_v45  ;;  %v4667_v0 = vmul.f32 %v4665_v62, %v4665_v62  ;;  %v6866_v57 = vld [vmem:[%s8939_s25 + $0x28] sm:$0xff] }
0x25e0   :  { %v4671_v28 = vsel %vm183_vm0, %v4667_v0, 0.0  ;;  %v4666_v1 = vmul.f32 %v4664_v63, %v4664_v63 }
0x25e1   :  { %4672 = vadd.xlane.f32.xlu0 %v4671_v28  ;;  %v6863_v28 = vld [vmem:[%s8953_s16] ss:$0 sm:$0xff] }
0x25e2   :  { %v4668_v8 = vsel %vm183_vm0, %v4666_v1, 0.0 }
0x25e3   :  { %4669 = vadd.xlane.f32.xlu1 %v4668_v8 }
0x266a   :  { %v4673_v12 = vpop.xlane.xlu0 %4672 }
0x266b   :  { %v4675_v13 = vmul.f32 0.03125, %v4673_v12 }
0x266c   :  { %v4670_v14 = vpop.xlane.xlu1 %4669 }
0x266d   :  { %v4677_v16 = vadd.f32 1e-05, %v4675_v13  ;;  %v4674_v17 = vmul.f32 0.03125, %v4670_v14  ;;  %v6886_v14 = vld [vmem:[%s8941_s3 + $0x1] ss:$0 sm:$0xff] }
0x266f   :  { %7840 = vrsqrt.f32 %v4677_v16  ;;  %v4676_v19 = vadd.f32 1e-05, %v4674_v17 }
0x2671   :  { %7842 = vrsqrt.f32 %v4676_v19 }
0x267c   :  { %v7841_v20 = vpop.eup %7840 }
0x267d   :  { %v4681_v22 = vmul.f32 %v7841_v20, %v4665_v62 }
0x267e   :  { %v7843_v23 = vpop.eup %7842 }
0x267f   :  { %v4680_v11 = vmul.f32 %v7843_v23, %v4664_v63  ;;  %v4689_v33 = vmul.f32 %v6854_v21, %v4681_v22 }
0x2681   :  { %v4688_v10 = vmul.f32 %v6854_v21, %v4680_v11  ;;  %v4697_v18 = vadd.f32 %v6855_v24, %v4689_v33 }
0x2683   :  { %v4696_v29 = vadd.f32 %v6855_v24, %v4688_v10 }
0x2685   :  { %7549 = vmatprep.mubr.msk.f32.mxu1 %vm183_vm0, %v4696_v29 }
0x2686   :  { %7550 = vmatmul.mubr.msk.f32.vlgmr.msra.gmra.mxu1 %vm183_vm0, %v4697_v18 }
0x2746   :  { %v7551_v32 = vpop.f32.mrf.mxu1 }
0x2747   :  { %v4782_v34 = vadd.f32 %v7551_v32, %v6856_v31 }
0x2748   :  { %v4776_v35 = vpop.f32.mrf.mxu1 }
0x2749   :  { %v4777_v37 = vadd.f32 %v6856_v31, %v4776_v35  ;;  %v4788_v38 = vmul.f32 0.01, %v4782_v34  ;;  %vm4786_vm11 = vcmp.ge.f32.partialorder %v4782_v34, 0.0 }
0x274b   :  { %vm4785_vm12 = vcmp.ge.f32.partialorder %v4777_v37, 0.0  ;;  %v4787_v39 = vmul.f32 0.01, %v4777_v37  ;;  %v4790_v41 = vsel %vm4786_vm11, %v4782_v34, %v4788_v38  ;;  %v8762_v34 = vld [vmem:[%s8004_s13] sm:$0xff]  ;;  %s8955_s13 = sld [smem:[#allocation25_spill]] }
0x274d   :  { %v4789_v40 = vsel %vm4785_vm12, %v4777_v37, %v4787_v39 }
0x274e   :  { %7554 = vmatprep.mubr.msk.f32.mxu0 %vm4797_vm13, %v4789_v40 }
0x274f   :  { %7555 = vmatmul.mubr.msk.f32.vlgmr.msra.gmra.mxu0 %vm4797_vm13, %v4790_v41 }
0x2750   :  { %7558 = vmatpush3.msra.mxu0 %v6868_v47 }
0x2751   :  { %7559 = vmatprep.subr.mxu0 %v6867_v46 }
0x2752   :  { %7560 = vmatpush3.msra.mxu0 %v6867_v46 }
0x2753   :  { %7561 = vmatprep.subr.mxu0 %v6866_v57 }
0x2754   :  { %7562 = vmatpush3.msra.mxu0 %v6866_v57 }
0x2755   :  { %7563 = vmatprep.subr.mxu0 %v6865_v58 }
0x2756   :  { %7564 = vmatpush3.msra.mxu0 %v6865_v58 }
0x280f   :  { %v7556_v27 = vpop.f32.mrf.mxu0 }
0x2810   :  { %v4880_v55 = vadd.f32 %v7556_v27, %v6859_v42 }
0x2811   :  { %v4874_v43 = vpop.f32.mrf.mxu0 }
0x2812   :  { %v4884_v25 = vadd.f32 %v4880_v55, %v4697_v18  ;;  %v4875_v26 = vadd.f32 %v6859_v42, %v4874_v43 }
0x2814   :  { %v4883_v44 = vadd.f32 %v4875_v26, %v4696_v29  ;;  %v4888_v48 = vsel %vm183_vm0, %v4884_v25, 0.0 }
0x2815   :  { %4889 = vadd.xlane.f32.xlu0 %v4888_v48 }
0x2816   :  { %v4885_v49 = vsel %vm183_vm0, %v4883_v44, 0.0 }
0x2817   :  { %4886 = vadd.xlane.f32.xlu1 %v4885_v49 }
0x289e   :  { %v4890_v4 = vpop.xlane.xlu0 %4889 }
0x289f   :  { %v4892_v5 = vmul.f32 0.03125, %v4890_v4 }
0x28a0   :  { %v4887_v50 = vpop.xlane.xlu1 %4886 }
0x28a1   :  { %v4894_v3 = vsub.f32 %v4884_v25, %v4892_v5  ;;  %v4891_v51 = vmul.f32 0.03125, %v4887_v50 }
0x28a3   :  { %v4893_v2 = vsub.f32 %v4883_v44, %v4891_v51  ;;  %v4896_v53 = vmul.f32 %v4894_v3, %v4894_v3 }
0x28a5   :  { %v4900_v15 = vsel %vm183_vm0, %v4896_v53, 0.0  ;;  %v4895_v54 = vmul.f32 %v4893_v2, %v4893_v2 }
0x28a6   :  { %4901 = vadd.xlane.f32.xlu0 %v4900_v15 }
0x28a7   :  { %v4897_v56 = vsel %vm183_vm0, %v4895_v54, 0.0 }
0x28a8   :  { %4898 = vadd.xlane.f32.xlu1 %v4897_v56 }
0x292f   :  { %v4902_v59 = vpop.xlane.xlu0 %4901 }
0x2930   :  { %v4904_v60 = vmul.f32 0.03125, %v4902_v59 }
0x2931   :  { %v4899_v61 = vpop.xlane.xlu1 %4898 }
0x2932   :  { %v4906_v62 = vadd.f32 1e-05, %v4904_v60  ;;  %v4903_v45 = vmul.f32 0.03125, %v4899_v61 }
0x2934   :  { %7844 = vrsqrt.f32 %v4906_v62  ;;  %v4905_v63 = vadd.f32 1e-05, %v4903_v45 }
0x2936   :  { %7846 = vrsqrt.f32 %v4905_v63 }
0x2941   :  { %v7845_v0 = vpop.eup %7844 }
0x2942   :  { %v4910_v1 = vmul.f32 %v7845_v0, %v4894_v3 }
0x2943   :  { %v7847_v8 = vpop.eup %7846 }
0x2944   :  { %v4909_v6 = vmul.f32 %v7847_v8, %v4893_v2  ;;  %v4918_v36 = vmul.f32 %v6863_v28, %v4910_v1 }
0x2946   :  { %v4917_v9 = vmul.f32 %v6863_v28, %v4909_v6  ;;  %v8720_v13 = vadd.f32 %v6864_v7, %v4918_v36 }
0x2948   :  { %v8718_v12 = vadd.f32 %v6864_v7, %v4917_v9 }
0x294a   :  { %7565 = vmatprep.mubr.msk.f32.mxu0 %vm183_vm0, %v8718_v12 }
0x294b   :  { %7566 = vmatmul.mubr.msk.f32.vlgmr.msra.gmra.mxu0 %vm183_vm0, %v8720_v13 }
0x2a0b   :  { %v7567_v16 = vpop.f32.mrf.mxu0 }
0x2a0c   :  { %v8727_v17 = vadd.f32 %v7567_v16, %v6886_v14 }
0x2a0d   :  { %v5038_v19 = vpop.f32.mrf.mxu0 }
0x2a0e   :  { %v8729_v20 = vadd.f32 %v6886_v14, %v5038_v19  ;;  %5051 = vrot.lane.b32.xlu1 %v8727_v17, %s7971_s0  ;;  %v6871_v14 = vld [vmem:[%s8945_s24 + $0x28] sm:$0xff] }
0x2a10   :  { %5049 = vrot.lane.b32.xlu0 %v8729_v20, %s7971_s0  ;;  %7572 = vmatprep.mubr.msk.f32.mxu1 %vm271_vm1, %v8729_v20  ;;  %s8956_s0 = sld [smem:[#allocation10_spill]] }
0x2a12   :  { %5255 = vrot.lane.b32.xlu1 %v8727_v17, %s7974_s23 }
0x2a14   :  { %5249 = vrot.lane.b32.xlu0 %v8729_v20, %s7973_s22 }
0x2a16   :  { %5253 = vrot.lane.b32.xlu1 %v8729_v20, %s7974_s23 }
0x2a1a   :  { %5251 = vrot.lane.b32.xlu1 %v8727_v17, %s7973_s22 }
0x2a80   :  { %v5052_v21 = vpop.permute.xlu1 %5051 }
0x2a81   :  { %7568 = vmatprep.subr.msk.mxu1 %vm271_vm1, %v5052_v21 }
0x2a82   :  { %7569 = vmatpush3.xpose.msk.msra.mxu1 %vm271_vm1, %v5052_v21  ;;  %v5050_v22 = vpop.permute.xlu0 %5049 }
0x2a83   :  { %7570 = vmatprep.subr.msk.mxu1 %vm271_vm1, %v5050_v22 }
0x2a84   :  { %v5256_v23 = vpop.permute.xlu1 %5255 }
0x2a86   :  { %7571 = vmatpush3.xpose.msk.msra.mxu1 %vm271_vm1, %v5050_v22  ;;  %v5250_v11 = vpop.permute.xlu0 %5249 }
0x2a87   :  { %7582 = vmatprep.subr.msk.mxu1 %vm271_vm1, %v5256_v23 }
0x2a88   :  { %v5254_v33 = vpop.permute.xlu1 %5253 }
0x2a89   :  { %7573 = vmatmul.mubr.msk.f32.vlgmr.msra.gmra.mxu1 %vm271_vm1, %v8727_v17 }
0x2a8a   :  { %7583 = vmatpush3.xpose.msk.msra.mxu1 %vm271_vm1, %v5256_v23  ;;  %7586 = vmatprep.mubr.msk.f32.mxu1 %vm271_vm1, %v5250_v11  ;;  %v6870_v11 = vld [vmem:[%s8945_s24 + $0x20] sm:$0xff] }
0x2a8b   :  { %7584 = vmatprep.subr.msk.mxu1 %vm271_vm1, %v5254_v33 }
0x2a8c   :  { %v5252_v24 = vpop.permute.xlu1 %5251 }
0x2a8e   :  { %7585 = vmatpush3.xpose.msk.msra.mxu1 %vm271_vm1, %v5254_v33 }
0x2a8f   :  { %7601 = vmatprep.subr.mxu1 %v6870_v11 }
0x2a91   :  { %7587 = vmatmul.mubr.msk.f32.vlgmr.msra.gmra.mxu1 %vm271_vm1, %v5252_v24 }
0x2a92   :  { %7602 = vmatpush3.msra.mxu1 %v6870_v11 }
0x2b49   :  { %v7574_v10 = vpop.f32.mrf.mxu1 }
0x2b4a   :  { %v5137_v29 = vmul.f32 0.35355338, %v7574_v10 }
0x2b4b   :  { %v5127_v18 = vpop.f32.mrf.mxu1 }
0x2b4c   :  { %v5139_v31 = vadd.f32 %v8758_v30, %v5137_v29  ;;  %v5136_v32 = vmul.f32 0.35355338, %v5127_v18 }
0x2b4e   :  { %v5138_v35 = vadd.f32 %v8762_v34, %v5136_v32  ;;  %v5143_v37 = vsel %vm359_vm2, %v5139_v31, -inf }
0x2b4f   :  { %5144 = vmax.xlane.f32.xlu1 %v5143_v37 }
0x2b50   :  { %v5140_v38 = vsel %vm359_vm2, %v5138_v35, -inf }
0x2b51   :  { %v7588_v39 = vpop.f32.mrf.mxu1  ;;  %5141 = vmax.xlane.f32.xlu0 %v5140_v38 }
0x2b52   :  { %v5341_v41 = vmul.f32 0.35355338, %v7588_v39 }
0x2b53   :  { %v5331_v40 = vpop.f32.mrf.mxu1 }
0x2b54   :  { %v5340_v42 = vmul.f32 0.35355338, %v5331_v40  ;;  %v5343_v55 = vadd.f32 %v8758_v30, %v5341_v41 }
0x2b56   :  { %v5342_v27 = vadd.f32 %v8762_v34, %v5340_v42  ;;  %v5347_v25 = vsel %vm359_vm2, %v5343_v55, -inf }
0x2b58   :  { %v5344_v43 = vsel %vm359_vm2, %v5342_v27, -inf }
0x2b59   :  { %5345 = vmax.xlane.f32.xlu0 %v5344_v43 }
0x2b5d   :  { %5348 = vmax.xlane.f32.xlu0 %v5347_v25 }
0x2b60   :  { %5164 = vrot.lane.b32.xlu1 %v8727_v17, %s7972_s5 }
0x2bd8   :  { %v5145_v26 = vpop.xlane.xlu1 %5144 }
0x2bd9   :  { %v5147_v44 = vsub.f32 %v5139_v31, %v5145_v26 }
0x2bda   :  { %v5142_v48 = vpop.xlane.xlu0 %5141 }
0x2bdb   :  { %v5150_v49 = vmul.f32 1.442695, %v5147_v44  ;;  %v5146_v4 = vsub.f32 %v5138_v35, %v5142_v48 }
0x2bdc   :  { %v5165_v5 = vpop.permute.xlu1 %5164 }
0x2bdd   :  { %7848 = vpow2.f32 %v5150_v49  ;;  %v5148_v50 = vmul.f32 1.442695, %v5146_v4  ;;  %7575 = vmatprep.subr.mxu0 %v5165_v5 }
0x2bde   :  { %7576 = vmatpush3.msra.mxu0 %v5165_v5 }
0x2bdf   :  { %7850 = vpow2.f32 %v5148_v50 }
0x2be2   :  { %v5346_v3 = vpop.xlane.xlu0 %5345 }
0x2be3   :  { %v5350_v58 = vsub.f32 %v5342_v27, %v5346_v3 }
0x2be5   :  { %v5352_v59 = vmul.f32 1.442695, %v5350_v58 }
0x2be6   :  { %v5349_v51 = vpop.xlane.xlu0 %5348 }
0x2be7   :  { %v5351_v2 = vsub.f32 %v5343_v55, %v5349_v51 }
0x2be9   :  { %v5354_v53 = vmul.f32 1.442695, %v5351_v2 }
0x2bea   :  { %v7849_v15 = vpop.eup %7848 }
0x2beb   :  { %7852 = vpow2.f32 %v5354_v53  ;;  %v5155_v54 = vsel %vm359_vm2, %v7849_v15, 0.0 }
0x2bec   :  { %v7851_v56 = vpop.eup %7850  ;;  %5156 = vadd.xlane.f32.xlu0 %v5155_v54  ;;  %7854 = vpow2.f32 %v5352_v59 }
0x2bed   :  { %v5152_v47 = vsel %vm359_vm2, %v7851_v56, 0.0 }
0x2bee   :  { %5153 = vadd.xlane.f32.xlu1 %v5152_v47 }
0x2bf8   :  { %v7853_v46 = vpop.eup %7852 }
0x2bf9   :  { %v5359_v57 = vsel %vm359_vm2, %v7853_v46, 0.0  ;;  %v7855_v60 = vpop.eup %7854 }
0x2bfa   :  { %5360 = vadd.xlane.f32.xlu0 %v5359_v57  ;;  %v5356_v61 = vsel %vm359_vm2, %v7855_v60, 0.0 }
0x2bff   :  { %5368 = vrot.lane.b32.xlu1 %v8727_v17, %s7975_s26 }
0x2c10   :  { %5162 = vrot.lane.b32.xlu0 %v8729_v20, %s7972_s5  ;;  %s7984_s5 = smov [#allocation2]  }
0x2c11   :  { %s6636_s22 = sshll.u32 %s7984_s5, 4  ;;  %s6637_s22 = int_to_ptr.vmem [resolvable:$true] %s6636_s22 }
0x2c12   :  { %s7892_s23 = scalar_lea.vmem %s6637_s22, 32  ;;  %p7897_p1 = scmp.lt.s32.totalorder %s6637_s22, %s6637_s22 }
0x2c13   :  { %p7893_p0 = scmp.ne.s32.totalorder %s6637_s22, %s7892_s23  ;;  %p7898_p2 = scmp.lt.s32.totalorder %s7892_s23, %s7892_s23 }
0x2c14   :  { %5621 = vrot.lane.b32.xlu0 %v8727_v17, %s7979_s7 }
0x2c15   :  { %p7899_p3 = por %p7898_p2, %p7897_p1 }
0x2c17   :  { %p7900_p4 = pnand %p7899_p3, %p7893_p0 }
0x2c18   :  { %5615 = vrot.lane.b32.xlu0 %v8729_v20, %s7976_s28 }
0x2c1c   :  { %5908 = vrot.lane.b32.xlu0 %v8727_v17, %s7977_s1 }
0x2c20   :  { %5902 = vrot.lane.b32.xlu0 %v8729_v20, %s7978_s2 }
0x2c23   :  { %5357 = vadd.xlane.f32.xlu1 %v5356_v61 }
0x2c34   :  { %5366 = vrot.lane.b32.xlu1 %v8729_v20, %s7975_s26 }
0x2c38   :  { %5619 = vrot.lane.b32.xlu1 %v8729_v20, %s7979_s7 }
0x2c3c   :  { %5617 = vrot.lane.b32.xlu1 %v8727_v17, %s7976_s28 }
0x2c40   :  { %5906 = vrot.lane.b32.xlu1 %v8729_v20, %s7977_s1 }
0x2c44   :  { %5904 = vrot.lane.b32.xlu1 %v8727_v17, %s7978_s2 }
0x2c75   :  { %v5157_v62 = vpop.xlane.xlu0 %5156 }
0x2c76   :  { %7856 = vrcp.f32 %v5157_v62 }
0x2c77   :  { %v5154_v45 = vpop.xlane.xlu1 %5153 }
0x2c78   :  { %7858 = vrcp.f32 %v5154_v45 }
0x2c7b   :  { %v5369_v36 = vpop.permute.xlu1 %5368 }
0x2c83   :  { %v5361_v63 = vpop.xlane.xlu0 %5360  ;;  %v7857_v0 = vpop.eup %7856 }
0x2c84   :  { %v5161_v6 = vmul.f32 %v7857_v0, %v7849_v15  ;;  %7860 = vrcp.f32 %v5361_v63 }
0x2c85   :  { %v7859_v28 = vpop.eup %7858 }
0x2c86   :  { %v5160_v1 = vmul.f32 %v7859_v28, %v7851_v56 }
0x2c87   :  { %v5163_v8 = vpop.permute.xlu0 %5162 }
0x2c88   :  { %7577 = vmatprep.subr.mxu0 %v5163_v8  ;;  %7579 = vmatprep.mubr.msk.f32.mxu0 %vm359_vm2, %v5160_v1 }
0x2c89   :  { %7578 = vmatpush3.msra.mxu0 %v5163_v8 }
0x2c8a   :  { %7580 = vmatmul.mubr.msk.f32.vlgmr.msra.gmra.mxu0 %vm359_vm2, %v5161_v6  ;;  %7589 = vmatprep.subr.mxu0 %v5369_v36 }
0x2c8b   :  { %7590 = vmatpush3.msra.mxu0 %v5369_v36  ;;  %v5622_v23 = vpop.permute.xlu0 %5621 }
0x2c8f   :  { %v5616_v10 = vpop.permute.xlu0 %5615 }
0x2c91   :  { %v7861_v16 = vpop.eup %7860 }
0x2c92   :  { %v5365_v22 = vmul.f32 %v7861_v16, %v7853_v46 }
0x2c93   :  { %v5909_v32 = vpop.permute.xlu0 %5908 }
0x2c97   :  { %v5903_v37 = vpop.permute.xlu0 %5902 }
0x2cac   :  { %v5358_v7 = vpop.xlane.xlu1 %5357 }
0x2cad   :  { %7862 = vrcp.f32 %v5358_v7 }
0x2cb0   :  { %v5367_v9 = vpop.permute.xlu1 %5366 }
0x2cb1   :  { %7591 = vmatprep.subr.mxu0 %v5367_v9 }
0x2cb2   :  { %7592 = vmatpush3.msra.mxu0 %v5367_v9  ;;  %v6872_v9 = vld [vmem:[%s8945_s24 + $0x30] sm:$0xff] }
0x2cb3   :  { %7596 = vmatprep.subr.mxu0 %v6871_v14 }
0x2cb4   :  { %v5620_v18 = vpop.permute.xlu1 %5619 }
0x2cb8   :  { %v5618_v35 = vpop.permute.xlu1 %5617 }
0x2cba   :  { %v7863_v19 = vpop.eup %7862 }
0x2cbb   :  { %v5364_v21 = vmul.f32 %v7863_v19, %v7855_v60 }
0x2cbc   :  { %v5907_v38 = vpop.permute.xlu1 %5906 }
0x2cbd   :  { %7593 = vmatprep.mubr.msk.f32.mxu0 %vm359_vm2, %v5364_v21 }
0x2cbe   :  { %7594 = vmatmul.mubr.msk.f32.vlgmr.msra.gmra.mxu0 %vm359_vm2, %v5365_v22 }
0x2cbf   :  { %7597 = vmatpush3.msra.mxu0 %v6871_v14 }
0x2cc0   :  { %7606 = vmatprep.subr.msk.mxu0 %vm271_vm1, %v5622_v23  ;;  %v5905_v39 = vpop.permute.xlu1 %5904 }
0x2d4a   :  { %v7581_v33 = vpop.f32.mrf.mxu0 }
0x2d4c   :  { %v5240_v24 = vpop.f32.mrf.mxu0 }
0x2d4d   :  { %7603 = vmatprep.mubr.msk.f32.mxu1 %vm271_vm1, %v5240_v24 }
0x2d4e   :  { %7604 = vmatmul.mubr.msk.f32.vlgmr.msra.gmra.mxu1 %vm271_vm1, %v7581_v33 }
0x2d7e   :  { %v7595_v29 = vpop.f32.mrf.mxu0 }
0x2d80   :  { %v5444_v31 = vpop.f32.mrf.mxu0 }
0x2d81   :  { %7598 = vmatprep.mubr.msk.f32.mxu0 %vm271_vm1, %v5444_v31 }
0x2d82   :  { %7599 = vmatmul.mubr.msk.f32.vlgmr.msra.gmra.mxu0 %vm271_vm1, %v7595_v29 }
0x2d83   :  { %7607 = vmatpush3.xpose.msk.msra.mxu0 %vm271_vm1, %v5622_v23  ;;  %7610 = vmatprep.mubr.msk.f32.mxu0 %vm271_vm1, %v5616_v10 }
0x2d84   :  { %7608 = vmatprep.subr.msk.mxu0 %vm271_vm1, %v5620_v18 }
0x2d87   :  { %7609 = vmatpush3.xpose.msk.msra.mxu0 %vm271_vm1, %v5620_v18 }
0x2d88   :  { %7625 = vmatprep.subr.msk.mxu0 %vm271_vm1, %v5909_v32 }
0x2d8a   :  { %7611 = vmatmul.mubr.msk.f32.vlgmr.msra.gmra.mxu0 %vm271_vm1, %v5618_v35 }
0x2d8b   :  { %7626 = vmatpush3.xpose.msk.msra.mxu0 %vm271_vm1, %v5909_v32  ;;  %7629 = vmatprep.mubr.msk.f32.mxu0 %vm271_vm1, %v5903_v37 }
0x2d8c   :  { %7627 = vmatprep.subr.msk.mxu0 %vm271_vm1, %v5907_v38 }
0x2d8f   :  { %7628 = vmatpush3.xpose.msk.msra.mxu0 %vm271_vm1, %v5907_v38 }
0x2d92   :  { %7630 = vmatmul.mubr.msk.f32.vlgmr.msra.gmra.mxu0 %vm271_vm1, %v5905_v39  ;;  %v6873_v39 = vld [vmem:[%s8945_s24 + $0x38] sm:$0xff] }
0x2e0e   :  { %v7605_v40 = vpop.f32.mrf.mxu1 }
0x2e10   :  { %v5606_v10 = vpop.f32.mrf.mxu1 }
0x2e42   :  { %v7600_v41 = vpop.f32.mrf.mxu0 }
0x2e43   :  { %v8821_v42 = vadd.f32 %v7605_v40, %v7600_v41 }
0x2e44   :  { %v8823_v27 = vpop.f32.mrf.mxu0 }
0x2e45   :  { %v5607_v41 = vadd.f32 %v5606_v10, %v8823_v27 }
0x2e4a   :  { %v7612_v55 = vpop.f32.mrf.mxu0 }
0x2e4b   :  { %v5707_v43 = vmul.f32 0.35355338, %v7612_v55 }
0x2e4c   :  { %v5697_v25 = vpop.f32.mrf.mxu0 }
0x2e4d   :  { %v5709_v26 = vadd.f32 %v8758_v30, %v5707_v43  ;;  %v5706_v44 = vmul.f32 0.35355338, %v5697_v25 }
0x2e4f   :  { %v5708_v48 = vadd.f32 %v8762_v34, %v5706_v44  ;;  %v5713_v49 = vsel %vm359_vm2, %v5709_v26, -inf }
0x2e50   :  { %5714 = vmax.xlane.f32.xlu1 %v5713_v49 }
0x2e51   :  { %v5710_v4 = vsel %vm359_vm2, %v5708_v48, -inf }
0x2e52   :  { %5711 = vmax.xlane.f32.xlu0 %v5710_v4  ;;  %v7631_v5 = vpop.f32.mrf.mxu0 }
0x2e53   :  { %v5994_v63 = vmul.f32 0.35355338, %v7631_v5  ;;  %v6921_v5 = vld [vmem:[%s8946_s30 + $0x1] ss:$0 sm:$0xff] }
0x2e54   :  { %v5984_v50 = vpop.f32.mrf.mxu0 }
0x2e55   :  { %v5993_v3 = vmul.f32 0.35355338, %v5984_v50  ;;  %v5996_v28 = vadd.f32 %v8758_v30, %v5994_v63 }
0x2e57   :  { %v5995_v51 = vadd.f32 %v8762_v34, %v5993_v3  ;;  %v6000_v8 = vsel %vm359_vm2, %v5996_v28, -inf }
0x2e59   :  { %v5997_v2 = vsel %vm359_vm2, %v5995_v51, -inf }
0x2e61   :  { %5734 = vrot.lane.b32.xlu1 %v8727_v17, %s7980_s10 }
0x2e85   :  { %5998 = vmax.xlane.f32.xlu1 %v5997_v2 }
0x2ed9   :  { %v5715_v53 = vpop.xlane.xlu1 %5714 }
0x2eda   :  { %v5717_v15 = vsub.f32 %v5709_v26, %v5715_v53 }
0x2edb   :  { %v5712_v54 = vpop.xlane.xlu0 %5711 }
0x2edc   :  { %v5720_v56 = vmul.f32 1.442695, %v5717_v15  ;;  %v5716_v47 = vsub.f32 %v5708_v48, %v5712_v54 }
0x2edd   :  { %v5735_v46 = vpop.permute.xlu1 %5734 }
0x2ede   :  { %7864 = vpow2.f32 %v5720_v56  ;;  %v5718_v57 = vmul.f32 1.442695, %v5716_v47  ;;  %7613 = vmatprep.subr.mxu1 %v5735_v46 }
0x2edf   :  { %7614 = vmatpush3.msra.mxu1 %v5735_v46 }
0x2ee0   :  { %7866 = vpow2.f32 %v5718_v57 }
0x2eeb   :  { %v7865_v58 = vpop.eup %7864 }
0x2eec   :  { %v5725_v59 = vsel %vm359_vm2, %v7865_v58, 0.0 }
0x2eed   :  { %v7867_v60 = vpop.eup %7866  ;;  %5726 = vadd.xlane.f32.xlu0 %v5725_v59 }
0x2eee   :  { %v5722_v34 = vsel %vm359_vm2, %v7867_v60, 0.0 }
0x2ef1   :  { %5723 = vadd.xlane.f32.xlu0 %v5722_v34  ;;  %v6877_v34 = vld [vmem:[%s8947_s6 + $0x30] sm:$0xff] }
0x2f07   :  { %5732 = vrot.lane.b32.xlu0 %v8729_v20, %s7980_s10 }
0x2f0e   :  { %v5999_v61 = vpop.xlane.xlu1 %5998 }
0x2f0f   :  { %v6003_v62 = vsub.f32 %v5995_v51, %v5999_v61  ;;  %v6876_v61 = vld [vmem:[%s8947_s6 + $0x28] sm:$0xff] }
0x2f11   :  { %v6005_v45 = vmul.f32 1.442695, %v6003_v62  ;;  %v6875_v62 = vld [vmem:[%s8947_s6 + $0x20] sm:$0xff] }
0x2f13   :  { %7868 = vpow2.f32 %v6005_v45 }
0x2f20   :  { %v7869_v0 = vpop.eup %7868 }
0x2f21   :  { %v6009_v1 = vsel %vm359_vm2, %v7869_v0, 0.0 }
0x2f22   :  { %6010 = vadd.xlane.f32.xlu1 %v6009_v1 }
0x2f26   :  { %6001 = vmax.xlane.f32.xlu0 %v6000_v8 }
0x2f33   :  { %6021 = vrot.lane.b32.xlu1 %v8727_v17, %s7981_s11 }
0x2f76   :  { %v5727_v6 = vpop.xlane.xlu0 %5726 }
0x2f77   :  { %7870 = vrcp.f32 %v5727_v6 }
0x2f7a   :  { %v5724_v36 = vpop.xlane.xlu0 %5723 }
0x2f7b   :  { %7872 = vrcp.f32 %v5724_v36  ;;  %v6922_v36 = vld [vmem:[%s8948_s12 + $0x1] ss:$0 sm:$0xff] }
0x2f7e   :  { %v5733_v7 = vpop.permute.xlu0 %5732 }
0x2f7f   :  { %7615 = vmatprep.subr.mxu1 %v5733_v7 }
0x2f80   :  { %7616 = vmatpush3.msra.mxu1 %v5733_v7 }
0x2f81   :  { %7620 = vmatprep.subr.mxu1 %v6872_v9 }
0x2f84   :  { %v7871_v14 = vpop.eup %7870 }
0x2f85   :  { %v5731_v19 = vmul.f32 %v7871_v14, %v7865_v58 }
0x2f88   :  { %v7873_v30 = vpop.eup %7872 }
0x2f89   :  { %v5730_v16 = vmul.f32 %v7873_v30, %v7867_v60  ;;  %v6878_v60 = vld [vmem:[%s8947_s6 + $0x38] sm:$0xff] }
0x2f8a   :  { %7644 = vmatprep.subr.mxu0 %v6878_v60 }
0x2f8b   :  { %7617 = vmatprep.mubr.msk.f32.mxu1 %vm359_vm2, %v5730_v16  ;;  %7645 = vmatpush3.msra.mxu0 %v6878_v60  ;;  %v6923_v16 = vld [vmem:[%s8949_s20 + $0x1] ss:$0 sm:$0xff] }
0x2f8c   :  { %7618 = vmatmul.mubr.msk.f32.vlgmr.msra.gmra.mxu1 %vm359_vm2, %v5731_v19  ;;  %7646 = vmatprep.subr.mxu0 %v6877_v34 }
0x2f8d   :  { %7621 = vmatpush3.msra.mxu1 %v6872_v9  ;;  %7647 = vmatpush3.msra.mxu0 %v6877_v34 }
0x2f8e   :  { %7648 = vmatprep.subr.mxu0 %v6876_v61 }
0x2f8f   :  { %7649 = vmatpush3.msra.mxu0 %v6876_v61 }
0x2f90   :  { %7650 = vmatprep.subr.mxu0 %v6875_v62 }
0x2f91   :  { %7651 = vmatpush3.msra.mxu0 %v6875_v62 }
0x2f92   :  { %7667 = vmatprep.subr.mxu0 %v7982_v52 }
0x2fab   :  { %v6011_v21 = vpop.xlane.xlu1 %6010 }
0x2faf   :  { %v6022_v17 = vpop.permute.xlu1 %6021  ;;  %v6002_v22 = vpop.xlane.xlu0 %6001 }
0x2fb0   :  { %v6004_v23 = vsub.f32 %v5996_v28, %v6002_v22  ;;  %7632 = vmatprep.subr.mxu1 %v6022_v17  ;;  %v6880_v22 = vld [vmem:[%s8950_s27 + $0x2] sm:$0x3] }
0x2fb2   :  { %v6007_v11 = vmul.f32 1.442695, %v6004_v23  ;;  %v6924_v23 = vld [vmem:[%s8951_s4 + $0x1] ss:$0 sm:$0xff] }
0x2fb4   :  { %7874 = vpow2.f32 %v6007_v11 }
0x2fb5   :  { %7876 = vrcp.f32 %v6011_v21 }
0x2fc1   :  { %v7875_v33 = vpop.eup %7874 }
0x2fc2   :  { %v6012_v24 = vsel %vm359_vm2, %v7875_v33, 0.0  ;;  %v7877_v29 = vpop.eup %7876 }
0x2fc3   :  { %6013 = vadd.xlane.f32.xlu0 %v6012_v24  ;;  %v6017_v35 = vmul.f32 %v7877_v29, %v7869_v0 }
0x2fd9   :  { %6019 = vrot.lane.b32.xlu0 %v8729_v20, %s7981_s11 }
0x304c   :  { %v7619_v18 = vpop.f32.mrf.mxu1  ;;  %v6014_v31 = vpop.xlane.xlu0 %6013 }
0x304d   :  { %7878 = vrcp.f32 %v6014_v31 }
0x304e   :  { %v5810_v32 = vpop.f32.mrf.mxu1 }
0x304f   :  { %7622 = vmatprep.mubr.msk.f32.mxu1 %vm271_vm1, %v5810_v32 }
0x3050   :  { %7623 = vmatmul.mubr.msk.f32.vlgmr.msra.gmra.mxu1 %vm271_vm1, %v7619_v18  ;;  %v6020_v37 = vpop.permute.xlu0 %6019 }
0x3051   :  { %7633 = vmatpush3.msra.mxu1 %v6022_v17  ;;  %7636 = vmatprep.mubr.msk.f32.mxu1 %vm359_vm2, %v6017_v35  ;;  %v6927_v35 = vld [vmem:[%s8952_s15 + $0x1] ss:$0 sm:$0xff] }
0x3052   :  { %7634 = vmatprep.subr.mxu1 %v6020_v37 }
0x3053   :  { %7635 = vmatpush3.msra.mxu1 %v6020_v37 }
0x3054   :  { %7639 = vmatprep.subr.mxu1 %v6873_v39 }
0x305a   :  { %v7879_v20 = vpop.eup %7878 }
0x305b   :  { %v6018_v38 = vmul.f32 %v7879_v20, %v7875_v33 }
0x305d   :  { %7637 = vmatmul.mubr.msk.f32.vlgmr.msra.gmra.mxu1 %vm359_vm2, %v6018_v38 }
0x305e   :  { %7640 = vmatpush3.msra.mxu1 %v6873_v39 }
0x305f   :  { %7655 = vmatprep.subr.msk.mxu1 %vm4804_vm10, %v6880_v22 }
0x3110   :  { %v7624_v40 = vpop.f32.mrf.mxu1 }
0x3111   :  { %v5901_v55 = vadd.f32 %v7624_v40, %v8821_v42 }
0x3112   :  { %v5891_v43 = vpop.f32.mrf.mxu1 }
0x3113   :  { %v5900_v25 = vadd.f32 %v5891_v43, %v5607_v41 }
0x311d   :  { %v7638_v26 = vpop.f32.mrf.mxu1 }
0x311f   :  { %v6097_v44 = vpop.f32.mrf.mxu1 }
0x3120   :  { %7641 = vmatprep.mubr.msk.f32.mxu1 %vm271_vm1, %v6097_v44 }
0x3121   :  { %7642 = vmatmul.mubr.msk.f32.vlgmr.msra.gmra.mxu1 %vm271_vm1, %v7638_v26 }
0x3122   :  { %7656 = vmatpush3.msk.msra.mxu1 %vm4804_vm10, %v6880_v22 }
0x3123   :  { %7660 = vmatprep.subr.mxu1 %v7982_v52 }
0x31e1   :  { %v7643_v48 = vpop.f32.mrf.mxu1 }
0x31e2   :  { %v6188_v49 = vadd.f32 %v7643_v48, %v5901_v55 }
0x31e3   :  { %v6178_v4 = vpop.f32.mrf.mxu1 }
0x31e4   :  { %v6190_v50 = vadd.f32 %v6188_v49, %v8720_v13  ;;  %v6187_v3 = vadd.f32 %v6178_v4, %v5900_v25 }
0x31e6   :  { %v6189_v51 = vadd.f32 %v6187_v3, %v8718_v12  ;;  %v6198_v27 = vadd.f32 %v6921_v5, %v6190_v50 }
0x31e8   :  { %v6202_v42 = vsel %vm183_vm0, %v6198_v27, 0.0  ;;  %v6197_v2 = vadd.f32 %v6921_v5, %v6189_v51 }
0x31e9   :  { %6203 = vadd.xlane.f32.xlu0 %v6202_v42  ;;  %v6544_v42 = vld [vmem:[%s8955_s13 + $0x10] sm:$0xff] }
0x31ea   :  { %v6199_v53 = vsel %vm183_vm0, %v6197_v2, 0.0 }
0x31eb   :  { %6200 = vadd.xlane.f32.xlu1 %v6199_v53 }
0x3272   :  { %v6204_v15 = vpop.xlane.xlu0 %6203 }
0x3273   :  { %v6206_v54 = vmul.f32 0.03125, %v6204_v15 }
0x3274   :  { %v6201_v56 = vpop.xlane.xlu1 %6200 }
0x3275   :  { %v6208_v47 = vsub.f32 %v6198_v27, %v6206_v54  ;;  %v6205_v13 = vmul.f32 0.03125, %v6201_v56  ;;  %v6545_v27 = vld [vmem:[%s8955_s13 + $0x18] sm:$0xff] }
0x3277   :  { %v6207_v46 = vsub.f32 %v6197_v2, %v6205_v13  ;;  %v6210_v57 = vmul.f32 %v6208_v47, %v6208_v47  ;;  %v6543_v2 = vld [vmem:[%s8955_s13 + $0x8] sm:$0xff] }
0x3279   :  { %v6214_v12 = vsel %vm183_vm0, %v6210_v57, 0.0  ;;  %v6209_v58 = vmul.f32 %v6207_v46, %v6207_v46  ;;  %v6931_v57 = vld [vmem:[%s8953_s16 + $0x1] ss:$0 sm:$0xff] }
0x327a   :  { %6215 = vadd.xlane.f32.xlu0 %v6214_v12 }
0x327b   :  { %v6211_v59 = vsel %vm183_vm0, %v6209_v58, 0.0 }
0x327c   :  { %6212 = vadd.xlane.f32.xlu1 %v6211_v59  ;;  %v6932_v59 = vld [vmem:[%s8954_s18 + $0x1] ss:$0 sm:$0xff] }
0x3303   :  { %v6216_v45 = vpop.xlane.xlu0 %6215 }
0x3304   :  { %v6218_v63 = vmul.f32 0.03125, %v6216_v45 }
0x3305   :  { %v6213_v0 = vpop.xlane.xlu1 %6212 }
0x3306   :  { %v6220_v28 = vadd.f32 1e-05, %v6218_v63  ;;  %v6217_v1 = vmul.f32 0.03125, %v6213_v0  ;;  %v6468_v63 = vld [vmem:[%s8956_s0] sm:$0x3] }
0x3307   :  { %v6542_v0 = vld [vmem:[%s8955_s13] sm:$0xff] }
0x3308   :  { %7880 = vrsqrt.f32 %v6220_v28  ;;  %v6219_v8 = vadd.f32 1e-05, %v6217_v1 }
0x330a   :  { %7882 = vrsqrt.f32 %v6219_v8 }
0x3315   :  { %v7881_v6 = vpop.eup %7880 }
0x3316   :  { %v6224_v7 = vmul.f32 %v7881_v6, %v6208_v47 }
0x3317   :  { %v7883_v9 = vpop.eup %7882 }
0x3318   :  { %v6223_v14 = vmul.f32 %v7883_v9, %v6207_v46  ;;  %v6232_v30 = vmul.f32 %v6922_v36, %v6224_v7 }
0x331a   :  { %v6231_v19 = vmul.f32 %v6922_v36, %v6223_v14  ;;  %v6240_v17 = vadd.f32 %v6923_v16, %v6232_v30 }
0x331c   :  { %v6239_v21 = vadd.f32 %v6923_v16, %v6231_v19 }
0x331e   :  { %7652 = vmatprep.mubr.msk.f32.mxu0 %vm183_vm0, %v6239_v21 }
0x331f   :  { %7653 = vmatmul.mubr.msk.f32.vlgmr.msra.gmra.mxu0 %vm183_vm0, %v6240_v17 }
0x3320   :  { %7675 = vmatprep.mubr.msk.f32.mxu0 %vm7983_vm8, %v7982_v52  ;;  %7668 = vmatpush3.msra.mxu0 %v6545_v27 }
0x3321   :  { %7669 = vmatprep.subr.mxu0 %v7982_v52 }
0x3322   :  { %7670 = vmatpush3.msra.mxu0 %v6544_v42 }
0x3323   :  { %7671 = vmatprep.subr.mxu0 %v7982_v52 }
0x3324   :  { %7672 = vmatpush3.msra.mxu0 %v6543_v2 }
0x3325   :  { %7673 = vmatprep.subr.mxu0 %v7982_v52 }
0x3326   :  { %7674 = vmatpush3.msra.mxu0 %v6542_v0 }
0x33df   :  { %v7654_v11 = vpop.f32.mrf.mxu0 }
0x33e0   :  { %v6325_v33 = vadd.f32 %v7654_v11, %v6924_v23 }
0x33e1   :  { %v6319_v24 = vpop.f32.mrf.mxu0 }
0x33e2   :  { %v6320_v10 = vadd.f32 %v6924_v23, %v6319_v24  ;;  %v6331_v29 = vmul.f32 0.01, %v6325_v33  ;;  %vm6329_vm14 = vcmp.ge.f32.partialorder %v6325_v33, 0.0 }
0x33e4   :  { %vm6328_vm15 = vcmp.ge.f32.partialorder %v6320_v10, 0.0  ;;  %v6330_v18 = vmul.f32 0.01, %v6320_v10  ;;  %v6333_v32 = vsel %vm6329_vm14, %v6325_v33, %v6331_v29 }
0x33e6   :  { %v6332_v31 = vsel %vm6328_vm15, %v6320_v10, %v6330_v18 }
0x33e7   :  { %7657 = vmatprep.mubr.msk.f32.mxu1 %vm4797_vm13, %v6332_v31 }
0x33e8   :  { %7658 = vmatmul.mubr.msk.f32.vlgmr.msra.gmra.mxu1 %vm4797_vm13, %v6333_v32 }
0x33e9   :  { %7664 = vmatprep.mubr.msk.f32.mxu1 %vm7983_vm8, %v7982_v52 }
0x34a8   :  { %v7659_v37 = vpop.f32.mrf.mxu1 }
0x34a9   :  { %v6421_v20 = vadd.f32 %v7659_v37, %v6927_v35 }
0x34aa   :  { %v6415_v38 = vpop.f32.mrf.mxu1 }
0x34ab   :  { %v6425_v39 = vadd.f32 %v6421_v20, %v6240_v17  ;;  %v6416_v40 = vadd.f32 %v6927_v35, %v6415_v38 }
0x34ad   :  { %v6424_v41 = vadd.f32 %v6416_v40, %v6239_v21  ;;  %v6429_v55 = vsel %vm183_vm0, %v6425_v39, 0.0 }
0x34ae   :  { %6430 = vadd.xlane.f32.xlu1 %v6429_v55 }
0x34af   :  { %v6426_v43 = vsel %vm183_vm0, %v6424_v41, 0.0 }
0x34b0   :  { %6427 = vadd.xlane.f32.xlu0 %v6426_v43 }
0x3537   :  { %v6431_v25 = vpop.xlane.xlu1 %6430 }
0x3538   :  { %v6433_v26 = vmul.f32 0.03125, %v6431_v25 }
0x3539   :  { %v6428_v44 = vpop.xlane.xlu0 %6427 }
0x353a   :  { %v6435_v48 = vsub.f32 %v6425_v39, %v6433_v26  ;;  %v6432_v49 = vmul.f32 0.03125, %v6428_v44 }
0x353c   :  { %v6434_v4 = vsub.f32 %v6424_v41, %v6432_v49  ;;  %v6437_v5 = vmul.f32 %v6435_v48, %v6435_v48 }
0x353e   :  { %v6441_v50 = vsel %vm183_vm0, %v6437_v5, 0.0  ;;  %v6436_v3 = vmul.f32 %v6434_v4, %v6434_v4 }
0x353f   :  { %6442 = vadd.xlane.f32.xlu1 %v6441_v50 }
0x3540   :  { %v6438_v51 = vsel %vm183_vm0, %v6436_v3, 0.0 }
0x3541   :  { %6439 = vadd.xlane.f32.xlu0 %v6438_v51 }
0x35c8   :  { %v6443_v53 = vpop.xlane.xlu1 %6442 }
0x35c9   :  { %v6445_v15 = vmul.f32 0.03125, %v6443_v53 }
0x35ca   :  { %v6440_v54 = vpop.xlane.xlu0 %6439 }
0x35cb   :  { %v6447_v56 = vadd.f32 1e-05, %v6445_v15  ;;  %v6444_v47 = vmul.f32 0.03125, %v6440_v54 }
0x35cd   :  { %7884 = vrsqrt.f32 %v6447_v56  ;;  %v6446_v13 = vadd.f32 1e-05, %v6444_v47 }
0x35cf   :  { %7886 = vrsqrt.f32 %v6446_v13 }
0x35da   :  { %v7885_v46 = vpop.eup %7884 }
0x35db   :  { %v6451_v12 = vmul.f32 %v7885_v46, %v6435_v48 }
0x35dc   :  { %v7887_v58 = vpop.eup %7886 }
0x35dd   :  { %v6459_v60 = vmul.f32 %v6931_v57, %v6451_v12  ;;  %v6450_v34 = vmul.f32 %v7887_v58, %v6434_v4 }
0x35df   :  { %v6467_v61 = vadd.f32 %v6932_v59, %v6459_v60  ;;  %v6458_v62 = vmul.f32 %v6931_v57, %v6450_v34 }
0x35e1   :  { %7661 = vmatpush3.msra.mxu1 %v6467_v61  ;;  %v6466_v45 = vadd.f32 %v6932_v59, %v6458_v62 }
0x35e2   :  { %7662 = vmatprep.subr.mxu1 %v7982_v52 }
0x35e3   :  { %7663 = vmatpush3.msra.mxu1 %v6466_v45 }
0x35e4   :  { %7665 = vmatmul.mubr.msk.f32.vlgmr.msra.gmra.mxu1 %vm359_vm2, %v6468_v63 }
0x36a4   :  { %v6538_v28 = vpop.f32.mrf.mxu1 }
0x36a5   :  { %7676 = vmatmul.mubr.msk.f32.vlgmr.msra.gmra.mxu0 %vm183_vm0, %v6538_v28 }
0x36a6   :  { %v7666_v1 = vpop.f32.mrf.mxu1 }
0x36a7   :  { %7903 = shalt.err (!%p7900_p4)
}
0x36a8   :  { %6639 = dma.vmem_to_hbm [thread:$0]  %s6637_s22, 32, %s8164_s21, [#allocation3]   ;;  %v6934_v52 = vld [vmem:[%s8154_s9] ss:$0 sm:$0xff]  ;;  %vm6626_vm1 = vcmask 74752  }
0x36a9   :  { %s7985_s26 = smov [#allocation4]  }
0x36aa   :  { %s6646_s28 = sshll.u32 %s7985_s26, 4  ;;  %s6647_s28 = int_to_ptr.vmem [resolvable:$true] %s6646_s28 }
0x36ab   :  { %s7912_s1 = scalar_lea.vmem %s6647_s28, 32  ;;  %p7917_p6 = scmp.lt.s32.totalorder %s6647_s28, %s6647_s28 }
0x36ac   :  { %p7913_p5 = scmp.ne.s32.totalorder %s6647_s28, %s7912_s1  ;;  %p7918_p7 = scmp.lt.s32.totalorder %s7912_s1, %s7912_s1 }
0x36ae   :  { %p7919_p8 = por %p7918_p7, %p7917_p6 }
0x36b0   :  { %p7920_p9 = pnand %p7919_p8, %p7913_p5 }
0x3765   :  { %v6622_v8 = vpop.f32.mrf.mxu0 }
0x3766   :  { %v6623_v6 = vadd.f32 %v6934_v52, %v6622_v8 }
0x3767   :  { %v7677_v36 = vpop.f32.mrf.mxu0 }
0x3768   :  { %6627 = vst.msk [vmem:[#allocation4] sm:$0x3] %vm6626_vm1, %v6623_v6 }
0x3769   :  { %7923 = shalt.err (!%p7920_p9)
}
0x376a   :  { %6649 = dma.vmem_to_hbm [thread:$0]  %s6647_s28, 32, %s8169_s17, [#allocation5]  }
0x376b   :  { %7932 = dma.done.wait [#allocation3], 32  }
0x376c   :  { %7933 = vsyncadd [#allocation3], 4294967264 }
0x376d   :  { %7934 = dma.done.wait [#allocation5], 32  }
0x376e   :  { %7935 = vsyncadd [#allocation5], 4294967264 }
0x376f   :  { %6658 = vsyncpa [#allocation3], 1 }
0x3770   :  { %6659 = vsyncpa [#allocation5], 1 }

</bundles_post_ra>
